<compile_context>
chip_gen: v5e
topology: v5e:2x2
jax: 0.10.0
libtpu: 0.0.40
codegen_flags: <defaults>
</compile_context>

<pallas_src>
import jax
import jax.numpy as jnp
from jax.experimental import pallas as pl
from jax.experimental.pallas import tpu as pltpu

_EPS = 1e-5  # nn.InstanceNorm2d default eps


# ----------------------------- Pallas kernel ------------------------------- #

def _resnet_block_kernel(xp_ref, w1_ref, b1_ref, w2_ref, b2_ref, out_ref, hpad_ref):
    """Fused ResnetBlock forward for ONE image.

    xp_ref  : (1, H+2, W+2, Cp) bf16  reflection-padded, channel-padded input
    w1_ref  : (9, Cp, Cp)       bf16  conv1 weight, tap-major (kh*3 + kw), (Cin, Cout)
    b1_ref  : (1, Cp)           f32   conv1 bias
    w2_ref  : (9, Cp, Cp)       bf16  conv2 weight
    b2_ref  : (1, Cp)           f32   conv2 bias
    out_ref : (1, H*W, Cp)      f32   x + conv_block(x), spatially flattened
    hpad_ref: (H+2, W+2, Cp)    f32   VMEM scratch: reflection-padded stage-1 act
    """
    _, Hp, Wp, Cp = xp_ref.shape
    H, W = Hp - 2, Wp - 2
    HW = H * W
    inv_hw = 1.0 / float(HW)

    def conv3x3(tap_fn, w_ref, b_ref):
        # 3x3 conv as 9 shifted matmuls: bf16 MXU operands, f32 accumulation.
        acc = None
        for kh in range(3):
            for kw in range(3):
                tap = tap_fn(kh, kw).reshape(HW, Cp).astype(jnp.bfloat16)
                d = jnp.dot(tap, w_ref[kh * 3 + kw],
                            preferred_element_type=jnp.float32)
                acc = d if acc is None else acc + d
        return acc + b_ref[...]

    def instance_norm(y):
        # InstanceNorm2d(affine=False): per-channel stats over HW, single pass
        # (sum / sum-of-squares), all in f32.
        s = jnp.sum(y, axis=0, keepdims=True)
        ss = jnp.sum(y * y, axis=0, keepdims=True)
        mean = s * inv_hw
        var = jnp.maximum(ss * inv_hw - mean * mean, 0.0)
        return (y - mean) * jax.lax.rsqrt(var + _EPS)

    # Widen the padded input once to f32 so all shifted-window slicing happens
    # on the 32-bit layout; the bf16 -> f32 -> bf16 round trip at the MXU is exact.
    xpf = xp_ref[0].astype(jnp.float32)                        # (H+2, W+2, Cp)

    # ---- stage 1: conv3x3 -> InstanceNorm -> ReLU ---------------------------
    y1 = conv3x3(lambda kh, kw: xpf[kh:kh + H, kw:kw + W, :], w1_ref, b1_ref)
    h = jnp.maximum(instance_norm(y1), 0.0)                    # (HW, Cp) f32
    # TODO(synk): nn.Dropout(0.5) is the identity in eval mode; training-mode
    # stochastic dropout is not implemented here.

    # ---- ReflectionPad2d(1) of the stage-1 activation, entirely in VMEM -----
    h_img = h.reshape(H, W, Cp)
    hpad_ref[1:H + 1, 1:W + 1, :] = h_img
    hpad_ref[0:1, 1:W + 1, :] = h_img[1:2]                     # top row    <- row 1
    hpad_ref[H + 1:H + 2, 1:W + 1, :] = h_img[H - 2:H - 1]     # bottom row <- row H-2
    hpad_ref[:, 0:1, :] = hpad_ref[:, 2:3, :]                  # left col  (incl. corners)
    hpad_ref[:, W + 1:W + 2, :] = hpad_ref[:, W - 1:W, :]      # right col (incl. corners)

    # ---- stage 2: conv3x3 -> InstanceNorm, fused residual add ---------------
    y2 = conv3x3(lambda kh, kw: hpad_ref[kh:kh + H, kw:kw + W, :], w2_ref, b2_ref)
    res = xpf[1:H + 1, 1:W + 1, :].reshape(HW, Cp)
    out_ref[0] = (res + instance_norm(y2)).astype(out_ref.dtype)


# ------------------------------- wrapper ----------------------------------- #

def _round_up(x, m):
    return (x + m - 1) // m * m


@jax.jit
def resnet_block_forward(x_nchw, w1, b1, w2, b2):
    """ResnetBlock forward.  x: (N,C,H,W) f32, w1/w2: (3,3,C,C) HWIO, b1/b2: (C,).
    Returns NCHW f32."""
    N, C, H, W = x_nchw.shape
    Cp = _round_up(C, 128)                      # lane-dense / MXU-aligned channels

    # NCHW -> NHWC (channels on lanes), reflection pad, zero-pad channels, bf16.
    x = jnp.transpose(x_nchw, (0, 2, 3, 1)).astype(jnp.float32)
    xp = jnp.pad(x, ((0, 0), (1, 1), (1, 1), (0, 0)), mode="reflect")
    xp = jnp.pad(xp, ((0, 0), (0, 0), (0, 0), (0, Cp - C))).astype(jnp.bfloat16)

    def prep_w(w):   # (3,3,C,C) HWIO -> (9, Cp, Cp) bf16, tap-major
        wp = jnp.pad(w, ((0, 0), (0, 0), (0, Cp - C), (0, Cp - C)))
        return wp.reshape(9, Cp, Cp).astype(jnp.bfloat16)

    def prep_b(b):   # (C,) -> (1, Cp) f32
        return jnp.pad(b, (0, Cp - C)).reshape(1, Cp).astype(jnp.float32)

    # VMEM budget: double-buffered blocks + weights + scratch + f32 temporaries.
    est = (2 * (H + 2) * (W + 2) * Cp * 2        # padded-input block x2 bufs (bf16)
           + 2 * 2 * 9 * Cp * Cp * 2             # two weight tensors x2 bufs (bf16)
           + 2 * H * W * Cp * 4                  # output block x2 bufs (f32)
           + 2 * (H + 2) * (W + 2) * Cp * 4      # hpad scratch + widened input (f32)
           + 8 * H * W * Cp * 4)                 # conv accumulators / IN temporaries
    vmem_limit = int(min(max(2 * est, 16 * 2**20), 64 * 2**20))

    out = pl.pallas_call(
        _resnet_block_kernel,
        grid=(N,),
        in_specs=[
            pl.BlockSpec((1, H + 2, W + 2, Cp), lambda n: (n, 0, 0, 0)),
            pl.BlockSpec((9, Cp, Cp), lambda n: (0, 0, 0)),
            pl.BlockSpec((1, Cp), lambda n: (0, 0)),
            pl.BlockSpec((9, Cp, Cp), lambda n: (0, 0, 0)),
            pl.BlockSpec((1, Cp), lambda n: (0, 0)),
        ],
        out_specs=pl.BlockSpec((1, H * W, Cp), lambda n: (n, 0, 0)),
        out_shape=jax.ShapeDtypeStruct((N, H * W, Cp), jnp.float32),
        scratch_shapes=[pltpu.VMEM((H + 2, W + 2, Cp), jnp.float32)],
        compiler_params=pltpu.CompilerParams(
            dimension_semantics=("parallel",),   # batch shards across TCs (v7x)
            vmem_limit_bytes=vmem_limit),
    )(xp, prep_w(w1), prep_b(b1), prep_w(w2), prep_b(b2))

    out = out[:, :, :C].reshape(N, H, W, C)
    return jnp.transpose(out, (0, 3, 1, 2))      # back to NCHW


# ------------------------------ reference ---------------------------------- #

def _reference_forward(x_nchw, w1, b1, w2, b2):
    """XLA reference matching the PyTorch module (eval mode) with the kernel's
    numerics policy: bf16 conv operands, f32 accumulation + InstanceNorm stats,
    bf16 intermediate activation, bf16-quantized residual."""
    x = jnp.transpose(x_nchw, (0, 2, 3, 1)).astype(jnp.bfloat16)

    def conv_norm(inp_bf16, w, b):
        xp = jnp.pad(inp_bf16, ((0, 0), (1, 1), (1, 1), (0, 0)), mode="reflect")
        y = jax.lax.conv_general_dilated(
            xp, w.astype(jnp.bfloat16), (1, 1), "VALID",
            dimension_numbers=("NHWC", "HWIO", "NHWC"),
            preferred_element_type=jnp.float32) + b
        mean = jnp.mean(y, axis=(1, 2), keepdims=True)
        var = jnp.mean((y - mean) ** 2, axis=(1, 2), keepdims=True)
        return (y - mean) * jax.lax.rsqrt(var + _EPS)

    h = jax.nn.relu(conv_norm(x, w1, b1)).astype(jnp.bfloat16)
    out = x.astype(jnp.float32) + conv_norm(h, w2, b2)
    return jnp.transpose(out, (0, 3, 1, 2))


# --------------------------------- main ------------------------------------ #

if __name__ == "__main__":
    key = jax.random.PRNGKey(0)
    k_x, k_w1, k_b1, k_w2, k_b2 = jax.random.split(key, 5)

    N, C, H, W = 2, 4, 16, 16
    x = jax.random.normal(k_x, (N, C, H, W), jnp.float32)

    # Conv2d(dim, dim, 3, bias=True) x 2, PyTorch-like uniform(+-1/sqrt(fan_in)) init.
    fan_in = C * 3 * 3
    scale = 1.0 / (fan_in ** 0.5)
    w1 = jax.random.uniform(k_w1, (3, 3, C, C), jnp.float32, -scale, scale)
    b1 = jax.random.uniform(k_b1, (C,), jnp.float32, -scale, scale)
    w2 = jax.random.uniform(k_w2, (3, 3, C, C), jnp.float32, -scale, scale)
    b2 = jax.random.uniform(k_b2, (C,), jnp.float32, -scale, scale)

    out = jax.block_until_ready(resnet_block_forward(x, w1, b1, w2, b2))

    ref = _reference_forward(x, w1, b1, w2, b2)
    assert out.shape == (N, C, H, W), out.shape
    max_err = float(jnp.max(jnp.abs(out - ref)))
    # bf16 MXU operands: compare against the bf16-consistent reference; residual
    # differences are accumulation order plus rare 1-ulp bf16 rounding of the
    # intermediate activation.
    assert jnp.allclose(out, ref, atol=1e-2, rtol=1e-2), max_err

    print("KERNEL_OK")
</pallas_src>

<mosaic_0001>
module attributes {stable_mosaic.version = 11 : i64} {
  func.func @_resnet_block_kernel(%arg0: i32, %arg1: memref<1x18x18x128xbf16, #tpu.memory_space<vmem>>, %arg2: memref<9x128x128xbf16, #tpu.memory_space<vmem>>, %arg3: memref<1x128xf32, #tpu.memory_space<vmem>>, %arg4: memref<9x128x128xbf16, #tpu.memory_space<vmem>>, %arg5: memref<1x128xf32, #tpu.memory_space<vmem>>, %arg6: memref<1x256x128xf32, #tpu.memory_space<vmem>>, %arg7: memref<18x18x128xf32, #tpu.memory_space<vmem>>) attributes {dimension_semantics = [#tpu.dimension_semantics<parallel>], iteration_bounds = array<i64: 2>, scalar_prefetch = 0 : i64, scratch_operands = 1 : i64, tpu.core_type = #tpu.core_type<tc>, window_params = [{transform_indices = @transform_0, window_bounds = array<i64: 1, 18, 18, 128>}, {pipeline_mode = #tpu.pipeline_mode<synchronous>, transform_indices = @transform_1, window_bounds = array<i64: 9, 128, 128>}, {pipeline_mode = #tpu.pipeline_mode<synchronous>, transform_indices = @transform_2, window_bounds = array<i64: 1, 128>}, {pipeline_mode = #tpu.pipeline_mode<synchronous>, transform_indices = @transform_3, window_bounds = array<i64: 9, 128, 128>}, {pipeline_mode = #tpu.pipeline_mode<synchronous>, transform_indices = @transform_4, window_bounds = array<i64: 1, 128>}, {transform_indices = @transform_5, window_bounds = array<i64: 1, 256, 128>}]} {
    %c0 = arith.constant 0 : index
    %c0_0 = arith.constant 0 : index
    %c0_1 = arith.constant 0 : index
    %c0_2 = arith.constant 0 : index
    %0 = vector.load %arg1[%c0, %c0_0, %c0_1, %c0_2] : memref<1x18x18x128xbf16, #tpu.memory_space<vmem>>, vector<1x18x18x128xbf16>
    %1 = vector.shape_cast %0 : vector<1x18x18x128xbf16> to vector<18x18x128xbf16>
    %2 = arith.extf %1 : vector<18x18x128xbf16> to vector<18x18x128xf32>
    %3 = vector.extract_strided_slice %2 {offsets = [0, 0, 0], sizes = [16, 16, 128], strides = [1, 1, 1]} : vector<18x18x128xf32> to vector<16x16x128xf32>
    %4 = vector.shape_cast %3 : vector<16x16x128xf32> to vector<256x128xf32>
    %5 = arith.truncf %4 : vector<256x128xf32> to vector<256x128xbf16>
    %c0_3 = arith.constant 0 : index
    %c0_4 = arith.constant 0 : index
    %c0_5 = arith.constant 0 : index
    %6 = vector.load %arg2[%c0_3, %c0_4, %c0_5] : memref<9x128x128xbf16, #tpu.memory_space<vmem>>, vector<1x128x128xbf16>
    %7 = vector.shape_cast %6 : vector<1x128x128xbf16> to vector<128x128xbf16>
    %cst = arith.constant dense<0.000000e+00> : vector<256x128xf32>
    %8 = tpu.matmul %5, %7, %cst {dimension_numbers = #tpu.dot_dimension_numbers<[1], [0], [0], [1], [0, 0, 1, 1], [], []>} : vector<256x128xbf16>, vector<128x128xbf16>, vector<256x128xf32> -> vector<256x128xf32>
    %9 = vector.extract_strided_slice %2 {offsets = [0, 1, 0], sizes = [16, 16, 128], strides = [1, 1, 1]} : vector<18x18x128xf32> to vector<16x16x128xf32>
    %10 = vector.shape_cast %9 : vector<16x16x128xf32> to vector<256x128xf32>
    %11 = arith.truncf %10 : vector<256x128xf32> to vector<256x128xbf16>
    %c1 = arith.constant 1 : index
    %c0_6 = arith.constant 0 : index
    %c0_7 = arith.constant 0 : index
    %12 = vector.load %arg2[%c1, %c0_6, %c0_7] : memref<9x128x128xbf16, #tpu.memory_space<vmem>>, vector<1x128x128xbf16>
    %13 = vector.shape_cast %12 : vector<1x128x128xbf16> to vector<128x128xbf16>
    %cst_8 = arith.constant dense<0.000000e+00> : vector<256x128xf32>
    %14 = tpu.matmul %11, %13, %cst_8 {dimension_numbers = #tpu.dot_dimension_numbers<[1], [0], [0], [1], [0, 0, 1, 1], [], []>} : vector<256x128xbf16>, vector<128x128xbf16>, vector<256x128xf32> -> vector<256x128xf32>
    %15 = arith.addf %8, %14 : vector<256x128xf32>
    %16 = vector.extract_strided_slice %2 {offsets = [0, 2, 0], sizes = [16, 16, 128], strides = [1, 1, 1]} : vector<18x18x128xf32> to vector<16x16x128xf32>
    %17 = vector.shape_cast %16 : vector<16x16x128xf32> to vector<256x128xf32>
    %18 = arith.truncf %17 : vector<256x128xf32> to vector<256x128xbf16>
    %c2 = arith.constant 2 : index
    %c0_9 = arith.constant 0 : index
    %c0_10 = arith.constant 0 : index
    %19 = vector.load %arg2[%c2, %c0_9, %c0_10] : memref<9x128x128xbf16, #tpu.memory_space<vmem>>, vector<1x128x128xbf16>
    %20 = vector.shape_cast %19 : vector<1x128x128xbf16> to vector<128x128xbf16>
    %cst_11 = arith.constant dense<0.000000e+00> : vector<256x128xf32>
    %21 = tpu.matmul %18, %20, %cst_11 {dimension_numbers = #tpu.dot_dimension_numbers<[1], [0], [0], [1], [0, 0, 1, 1], [], []>} : vector<256x128xbf16>, vector<128x128xbf16>, vector<256x128xf32> -> vector<256x128xf32>
    %22 = arith.addf %15, %21 : vector<256x128xf32>
    %23 = vector.extract_strided_slice %2 {offsets = [1, 0, 0], sizes = [16, 16, 128], strides = [1, 1, 1]} : vector<18x18x128xf32> to vector<16x16x128xf32>
    %24 = vector.shape_cast %23 : vector<16x16x128xf32> to vector<256x128xf32>
    %25 = arith.truncf %24 : vector<256x128xf32> to vector<256x128xbf16>
    %c3 = arith.constant 3 : index
    %c0_12 = arith.constant 0 : index
    %c0_13 = arith.constant 0 : index
    %26 = vector.load %arg2[%c3, %c0_12, %c0_13] : memref<9x128x128xbf16, #tpu.memory_space<vmem>>, vector<1x128x128xbf16>
    %27 = vector.shape_cast %26 : vector<1x128x128xbf16> to vector<128x128xbf16>
    %cst_14 = arith.constant dense<0.000000e+00> : vector<256x128xf32>
    %28 = tpu.matmul %25, %27, %cst_14 {dimension_numbers = #tpu.dot_dimension_numbers<[1], [0], [0], [1], [0, 0, 1, 1], [], []>} : vector<256x128xbf16>, vector<128x128xbf16>, vector<256x128xf32> -> vector<256x128xf32>
    %29 = arith.addf %22, %28 : vector<256x128xf32>
    %30 = vector.extract_strided_slice %2 {offsets = [1, 1, 0], sizes = [16, 16, 128], strides = [1, 1, 1]} : vector<18x18x128xf32> to vector<16x16x128xf32>
    %31 = vector.shape_cast %30 : vector<16x16x128xf32> to vector<256x128xf32>
    %32 = arith.truncf %31 : vector<256x128xf32> to vector<256x128xbf16>
    %c4 = arith.constant 4 : index
    %c0_15 = arith.constant 0 : index
    %c0_16 = arith.constant 0 : index
    %33 = vector.load %arg2[%c4, %c0_15, %c0_16] : memref<9x128x128xbf16, #tpu.memory_space<vmem>>, vector<1x128x128xbf16>
    %34 = vector.shape_cast %33 : vector<1x128x128xbf16> to vector<128x128xbf16>
    %cst_17 = arith.constant dense<0.000000e+00> : vector<256x128xf32>
    %35 = tpu.matmul %32, %34, %cst_17 {dimension_numbers = #tpu.dot_dimension_numbers<[1], [0], [0], [1], [0, 0, 1, 1], [], []>} : vector<256x128xbf16>, vector<128x128xbf16>, vector<256x128xf32> -> vector<256x128xf32>
    %36 = arith.addf %29, %35 : vector<256x128xf32>
    %37 = vector.extract_strided_slice %2 {offsets = [1, 2, 0], sizes = [16, 16, 128], strides = [1, 1, 1]} : vector<18x18x128xf32> to vector<16x16x128xf32>
    %38 = vector.shape_cast %37 : vector<16x16x128xf32> to vector<256x128xf32>
    %39 = arith.truncf %38 : vector<256x128xf32> to vector<256x128xbf16>
    %c5 = arith.constant 5 : index
    %c0_18 = arith.constant 0 : index
    %c0_19 = arith.constant 0 : index
    %40 = vector.load %arg2[%c5, %c0_18, %c0_19] : memref<9x128x128xbf16, #tpu.memory_space<vmem>>, vector<1x128x128xbf16>
    %41 = vector.shape_cast %40 : vector<1x128x128xbf16> to vector<128x128xbf16>
    %cst_20 = arith.constant dense<0.000000e+00> : vector<256x128xf32>
    %42 = tpu.matmul %39, %41, %cst_20 {dimension_numbers = #tpu.dot_dimension_numbers<[1], [0], [0], [1], [0, 0, 1, 1], [], []>} : vector<256x128xbf16>, vector<128x128xbf16>, vector<256x128xf32> -> vector<256x128xf32>
    %43 = arith.addf %36, %42 : vector<256x128xf32>
    %44 = vector.extract_strided_slice %2 {offsets = [2, 0, 0], sizes = [16, 16, 128], strides = [1, 1, 1]} : vector<18x18x128xf32> to vector<16x16x128xf32>
    %45 = vector.shape_cast %44 : vector<16x16x128xf32> to vector<256x128xf32>
    %46 = arith.truncf %45 : vector<256x128xf32> to vector<256x128xbf16>
    %c6 = arith.constant 6 : index
    %c0_21 = arith.constant 0 : index
    %c0_22 = arith.constant 0 : index
    %47 = vector.load %arg2[%c6, %c0_21, %c0_22] : memref<9x128x128xbf16, #tpu.memory_space<vmem>>, vector<1x128x128xbf16>
    %48 = vector.shape_cast %47 : vector<1x128x128xbf16> to vector<128x128xbf16>
    %cst_23 = arith.constant dense<0.000000e+00> : vector<256x128xf32>
    %49 = tpu.matmul %46, %48, %cst_23 {dimension_numbers = #tpu.dot_dimension_numbers<[1], [0], [0], [1], [0, 0, 1, 1], [], []>} : vector<256x128xbf16>, vector<128x128xbf16>, vector<256x128xf32> -> vector<256x128xf32>
    %50 = arith.addf %43, %49 : vector<256x128xf32>
    %51 = vector.extract_strided_slice %2 {offsets = [2, 1, 0], sizes = [16, 16, 128], strides = [1, 1, 1]} : vector<18x18x128xf32> to vector<16x16x128xf32>
    %52 = vector.shape_cast %51 : vector<16x16x128xf32> to vector<256x128xf32>
    %53 = arith.truncf %52 : vector<256x128xf32> to vector<256x128xbf16>
    %c7 = arith.constant 7 : index
    %c0_24 = arith.constant 0 : index
    %c0_25 = arith.constant 0 : index
    %54 = vector.load %arg2[%c7, %c0_24, %c0_25] : memref<9x128x128xbf16, #tpu.memory_space<vmem>>, vector<1x128x128xbf16>
    %55 = vector.shape_cast %54 : vector<1x128x128xbf16> to vector<128x128xbf16>
    %cst_26 = arith.constant dense<0.000000e+00> : vector<256x128xf32>
    %56 = tpu.matmul %53, %55, %cst_26 {dimension_numbers = #tpu.dot_dimension_numbers<[1], [0], [0], [1], [0, 0, 1, 1], [], []>} : vector<256x128xbf16>, vector<128x128xbf16>, vector<256x128xf32> -> vector<256x128xf32>
    %57 = arith.addf %50, %56 : vector<256x128xf32>
    %58 = vector.extract_strided_slice %2 {offsets = [2, 2, 0], sizes = [16, 16, 128], strides = [1, 1, 1]} : vector<18x18x128xf32> to vector<16x16x128xf32>
    %59 = vector.shape_cast %58 : vector<16x16x128xf32> to vector<256x128xf32>
    %60 = arith.truncf %59 : vector<256x128xf32> to vector<256x128xbf16>
    %c8 = arith.constant 8 : index
    %c0_27 = arith.constant 0 : index
    %c0_28 = arith.constant 0 : index
    %61 = vector.load %arg2[%c8, %c0_27, %c0_28] : memref<9x128x128xbf16, #tpu.memory_space<vmem>>, vector<1x128x128xbf16>
    %62 = vector.shape_cast %61 : vector<1x128x128xbf16> to vector<128x128xbf16>
    %cst_29 = arith.constant dense<0.000000e+00> : vector<256x128xf32>
    %63 = tpu.matmul %60, %62, %cst_29 {dimension_numbers = #tpu.dot_dimension_numbers<[1], [0], [0], [1], [0, 0, 1, 1], [], []>} : vector<256x128xbf16>, vector<128x128xbf16>, vector<256x128xf32> -> vector<256x128xf32>
    %64 = arith.addf %57, %63 : vector<256x128xf32>
    %c0_30 = arith.constant 0 : index
    %c0_31 = arith.constant 0 : index
    %65 = vector.load %arg3[%c0_30, %c0_31] : memref<1x128xf32, #tpu.memory_space<vmem>>, vector<1x128xf32>
    %66 = vector.broadcast %65 : vector<1x128xf32> to vector<256x128xf32>
    %67 = arith.addf %64, %66 : vector<256x128xf32>
    %cst_32 = arith.constant dense<0.000000e+00> : vector<128xf32>
    %68 = vector.multi_reduction <add>, %67, %cst_32 [0] : vector<256x128xf32> to vector<128xf32>
    %69 = vector.shape_cast %68 : vector<128xf32> to vector<1x128xf32>
    %70 = arith.mulf %67, %67 : vector<256x128xf32>
    %cst_33 = arith.constant dense<0.000000e+00> : vector<128xf32>
    %71 = vector.multi_reduction <add>, %70, %cst_33 [0] : vector<256x128xf32> to vector<128xf32>
    %72 = vector.shape_cast %71 : vector<128xf32> to vector<1x128xf32>
    %cst_34 = arith.constant 3.906250e-03 : f32
    %73 = vector.broadcast %cst_34 : f32 to vector<1x128xf32>
    %74 = arith.mulf %69, %73 : vector<1x128xf32>
    %cst_35 = arith.constant 3.906250e-03 : f32
    %75 = vector.broadcast %cst_35 : f32 to vector<1x128xf32>
    %76 = arith.mulf %72, %75 : vector<1x128xf32>
    %77 = arith.mulf %74, %74 : vector<1x128xf32>
    %78 = arith.subf %76, %77 : vector<1x128xf32>
    %cst_36 = arith.constant 0.000000e+00 : f32
    %79 = vector.broadcast %cst_36 : f32 to vector<1x128xf32>
    %80 = arith.maximumf %78, %79 : vector<1x128xf32>
    %81 = vector.broadcast %74 : vector<1x128xf32> to vector<256x128xf32>
    %82 = arith.subf %67, %81 : vector<256x128xf32>
    %cst_37 = arith.constant 9.99999974E-6 : f32
    %83 = vector.broadcast %cst_37 : f32 to vector<1x128xf32>
    %84 = arith.addf %80, %83 : vector<1x128xf32>
    %85 = math.rsqrt %84 : vector<1x128xf32>
    %86 = vector.broadcast %85 : vector<1x128xf32> to vector<256x128xf32>
    %87 = arith.mulf %82, %86 : vector<256x128xf32>
    %cst_38 = arith.constant 0.000000e+00 : f32
    %88 = vector.broadcast %cst_38 : f32 to vector<256x128xf32>
    %89 = arith.maximumf %87, %88 : vector<256x128xf32>
    %90 = vector.shape_cast %89 : vector<256x128xf32> to vector<16x16x128xf32>
    %c1_39 = arith.constant 1 : index
    %c1_40 = arith.constant 1 : index
    %c0_41 = arith.constant 0 : index
    %91 = vector.load %arg7[%c1_39, %c1_40, %c0_41] : memref<18x18x128xf32, #tpu.memory_space<vmem>>, vector<16x16x128xf32>
    tpu.vector_store %arg7[%c1_39, %c1_40, %c0_41], %90 {strides = array<i32>} : memref<18x18x128xf32, #tpu.memory_space<vmem>>, vector<16x16x128xf32>,
    %92 = vector.extract_strided_slice %90 {offsets = [1, 0, 0], sizes = [1, 16, 128], strides = [1, 1, 1]} : vector<16x16x128xf32> to vector<1x16x128xf32>
    %c0_42 = arith.constant 0 : index
    %c1_43 = arith.constant 1 : index
    %c0_44 = arith.constant 0 : index
    %93 = vector.load %arg7[%c0_42, %c1_43, %c0_44] : memref<18x18x128xf32, #tpu.memory_space<vmem>>, vector<1x16x128xf32>
    tpu.vector_store %arg7[%c0_42, %c1_43, %c0_44], %92 {strides = array<i32>} : memref<18x18x128xf32, #tpu.memory_space<vmem>>, vector<1x16x128xf32>,
    %94 = vector.extract_strided_slice %90 {offsets = [14, 0, 0], sizes = [1, 16, 128], strides = [1, 1, 1]} : vector<16x16x128xf32> to vector<1x16x128xf32>
    %c17 = arith.constant 17 : index
    %c1_45 = arith.constant 1 : index
    %c0_46 = arith.constant 0 : index
    %95 = vector.load %arg7[%c17, %c1_45, %c0_46] : memref<18x18x128xf32, #tpu.memory_space<vmem>>, vector<1x16x128xf32>
    tpu.vector_store %arg7[%c17, %c1_45, %c0_46], %94 {strides = array<i32>} : memref<18x18x128xf32, #tpu.memory_space<vmem>>, vector<1x16x128xf32>,
    %c0_47 = arith.constant 0 : index
    %c2_48 = arith.constant 2 : index
    %c0_49 = arith.constant 0 : index
    %96 = vector.load %arg7[%c0_47, %c2_48, %c0_49] : memref<18x18x128xf32, #tpu.memory_space<vmem>>, vector<18x1x128xf32>
    %c0_50 = arith.constant 0 : index
    %c0_51 = arith.constant 0 : index
    %c0_52 = arith.constant 0 : index
    %97 = vector.load %arg7[%c0_50, %c0_51, %c0_52] : memref<18x18x128xf32, #tpu.memory_space<vmem>>, vector<18x1x128xf32>
    tpu.vector_store %arg7[%c0_50, %c0_51, %c0_52], %96 {strides = array<i32>} : memref<18x18x128xf32, #tpu.memory_space<vmem>>, vector<18x1x128xf32>,
    %c0_53 = arith.constant 0 : index
    %c15 = arith.constant 15 : index
    %c0_54 = arith.constant 0 : index
    %98 = vector.load %arg7[%c0_53, %c15, %c0_54] : memref<18x18x128xf32, #tpu.memory_space<vmem>>, vector<18x1x128xf32>
    %c0_55 = arith.constant 0 : index
    %c17_56 = arith.constant 17 : index
    %c0_57 = arith.constant 0 : index
    %99 = vector.load %arg7[%c0_55, %c17_56, %c0_57] : memref<18x18x128xf32, #tpu.memory_space<vmem>>, vector<18x1x128xf32>
    tpu.vector_store %arg7[%c0_55, %c17_56, %c0_57], %98 {strides = array<i32>} : memref<18x18x128xf32, #tpu.memory_space<vmem>>, vector<18x1x128xf32>,
    %c0_58 = arith.constant 0 : index
    %c0_59 = arith.constant 0 : index
    %c0_60 = arith.constant 0 : index
    %100 = vector.load %arg7[%c0_58, %c0_59, %c0_60] : memref<18x18x128xf32, #tpu.memory_space<vmem>>, vector<16x16x128xf32>
    %101 = vector.shape_cast %100 : vector<16x16x128xf32> to vector<256x128xf32>
    %102 = arith.truncf %101 : vector<256x128xf32> to vector<256x128xbf16>
    %c0_61 = arith.constant 0 : index
    %c0_62 = arith.constant 0 : index
    %c0_63 = arith.constant 0 : index
    %103 = vector.load %arg4[%c0_61, %c0_62, %c0_63] : memref<9x128x128xbf16, #tpu.memory_space<vmem>>, vector<1x128x128xbf16>
    %104 = vector.shape_cast %103 : vector<1x128x128xbf16> to vector<128x128xbf16>
    %cst_64 = arith.constant dense<0.000000e+00> : vector<256x128xf32>
    %105 = tpu.matmul %102, %104, %cst_64 {dimension_numbers = #tpu.dot_dimension_numbers<[1], [0], [0], [1], [0, 0, 1, 1], [], []>} : vector<256x128xbf16>, vector<128x128xbf16>, vector<256x128xf32> -> vector<256x128xf32>
    %c0_65 = arith.constant 0 : index
    %c1_66 = arith.constant 1 : index
    %c0_67 = arith.constant 0 : index
    %106 = vector.load %arg7[%c0_65, %c1_66, %c0_67] : memref<18x18x128xf32, #tpu.memory_space<vmem>>, vector<16x16x128xf32>
    %107 = vector.shape_cast %106 : vector<16x16x128xf32> to vector<256x128xf32>
    %108 = arith.truncf %107 : vector<256x128xf32> to vector<256x128xbf16>
    %c1_68 = arith.constant 1 : index
    %c0_69 = arith.constant 0 : index
    %c0_70 = arith.constant 0 : index
    %109 = vector.load %arg4[%c1_68, %c0_69, %c0_70] : memref<9x128x128xbf16, #tpu.memory_space<vmem>>, vector<1x128x128xbf16>
    %110 = vector.shape_cast %109 : vector<1x128x128xbf16> to vector<128x128xbf16>
    %cst_71 = arith.constant dense<0.000000e+00> : vector<256x128xf32>
    %111 = tpu.matmul %108, %110, %cst_71 {dimension_numbers = #tpu.dot_dimension_numbers<[1], [0], [0], [1], [0, 0, 1, 1], [], []>} : vector<256x128xbf16>, vector<128x128xbf16>, vector<256x128xf32> -> vector<256x128xf32>
    %112 = arith.addf %105, %111 : vector<256x128xf32>
    %c0_72 = arith.constant 0 : index
    %c2_73 = arith.constant 2 : index
    %c0_74 = arith.constant 0 : index
    %113 = vector.load %arg7[%c0_72, %c2_73, %c0_74] : memref<18x18x128xf32, #tpu.memory_space<vmem>>, vector<16x16x128xf32>
    %114 = vector.shape_cast %113 : vector<16x16x128xf32> to vector<256x128xf32>
    %115 = arith.truncf %114 : vector<256x128xf32> to vector<256x128xbf16>
    %c2_75 = arith.constant 2 : index
    %c0_76 = arith.constant 0 : index
    %c0_77 = arith.constant 0 : index
    %116 = vector.load %arg4[%c2_75, %c0_76, %c0_77] : memref<9x128x128xbf16, #tpu.memory_space<vmem>>, vector<1x128x128xbf16>
    %117 = vector.shape_cast %116 : vector<1x128x128xbf16> to vector<128x128xbf16>
    %cst_78 = arith.constant dense<0.000000e+00> : vector<256x128xf32>
    %118 = tpu.matmul %115, %117, %cst_78 {dimension_numbers = #tpu.dot_dimension_numbers<[1], [0], [0], [1], [0, 0, 1, 1], [], []>} : vector<256x128xbf16>, vector<128x128xbf16>, vector<256x128xf32> -> vector<256x128xf32>
    %119 = arith.addf %112, %118 : vector<256x128xf32>
    %c1_79 = arith.constant 1 : index
    %c0_80 = arith.constant 0 : index
    %c0_81 = arith.constant 0 : index
    %120 = vector.load %arg7[%c1_79, %c0_80, %c0_81] : memref<18x18x128xf32, #tpu.memory_space<vmem>>, vector<16x16x128xf32>
    %121 = vector.shape_cast %120 : vector<16x16x128xf32> to vector<256x128xf32>
    %122 = arith.truncf %121 : vector<256x128xf32> to vector<256x128xbf16>
    %c3_82 = arith.constant 3 : index
    %c0_83 = arith.constant 0 : index
    %c0_84 = arith.constant 0 : index
    %123 = vector.load %arg4[%c3_82, %c0_83, %c0_84] : memref<9x128x128xbf16, #tpu.memory_space<vmem>>, vector<1x128x128xbf16>
    %124 = vector.shape_cast %123 : vector<1x128x128xbf16> to vector<128x128xbf16>
    %cst_85 = arith.constant dense<0.000000e+00> : vector<256x128xf32>
    %125 = tpu.matmul %122, %124, %cst_85 {dimension_numbers = #tpu.dot_dimension_numbers<[1], [0], [0], [1], [0, 0, 1, 1], [], []>} : vector<256x128xbf16>, vector<128x128xbf16>, vector<256x128xf32> -> vector<256x128xf32>
    %126 = arith.addf %119, %125 : vector<256x128xf32>
    %c1_86 = arith.constant 1 : index
    %c1_87 = arith.constant 1 : index
    %c0_88 = arith.constant 0 : index
    %127 = vector.load %arg7[%c1_86, %c1_87, %c0_88] : memref<18x18x128xf32, #tpu.memory_space<vmem>>, vector<16x16x128xf32>
    %128 = vector.shape_cast %127 : vector<16x16x128xf32> to vector<256x128xf32>
    %129 = arith.truncf %128 : vector<256x128xf32> to vector<256x128xbf16>
    %c4_89 = arith.constant 4 : index
    %c0_90 = arith.constant 0 : index
    %c0_91 = arith.constant 0 : index
    %130 = vector.load %arg4[%c4_89, %c0_90, %c0_91] : memref<9x128x128xbf16, #tpu.memory_space<vmem>>, vector<1x128x128xbf16>
    %131 = vector.shape_cast %130 : vector<1x128x128xbf16> to vector<128x128xbf16>
    %cst_92 = arith.constant dense<0.000000e+00> : vector<256x128xf32>
    %132 = tpu.matmul %129, %131, %cst_92 {dimension_numbers = #tpu.dot_dimension_numbers<[1], [0], [0], [1], [0, 0, 1, 1], [], []>} : vector<256x128xbf16>, vector<128x128xbf16>, vector<256x128xf32> -> vector<256x128xf32>
    %133 = arith.addf %126, %132 : vector<256x128xf32>
    %c1_93 = arith.constant 1 : index
    %c2_94 = arith.constant 2 : index
    %c0_95 = arith.constant 0 : index
    %134 = vector.load %arg7[%c1_93, %c2_94, %c0_95] : memref<18x18x128xf32, #tpu.memory_space<vmem>>, vector<16x16x128xf32>
    %135 = vector.shape_cast %134 : vector<16x16x128xf32> to vector<256x128xf32>
    %136 = arith.truncf %135 : vector<256x128xf32> to vector<256x128xbf16>
    %c5_96 = arith.constant 5 : index
    %c0_97 = arith.constant 0 : index
    %c0_98 = arith.constant 0 : index
    %137 = vector.load %arg4[%c5_96, %c0_97, %c0_98] : memref<9x128x128xbf16, #tpu.memory_space<vmem>>, vector<1x128x128xbf16>
    %138 = vector.shape_cast %137 : vector<1x128x128xbf16> to vector<128x128xbf16>
    %cst_99 = arith.constant dense<0.000000e+00> : vector<256x128xf32>
    %139 = tpu.matmul %136, %138, %cst_99 {dimension_numbers = #tpu.dot_dimension_numbers<[1], [0], [0], [1], [0, 0, 1, 1], [], []>} : vector<256x128xbf16>, vector<128x128xbf16>, vector<256x128xf32> -> vector<256x128xf32>
    %140 = arith.addf %133, %139 : vector<256x128xf32>
    %c2_100 = arith.constant 2 : index
    %c0_101 = arith.constant 0 : index
    %c0_102 = arith.constant 0 : index
    %141 = vector.load %arg7[%c2_100, %c0_101, %c0_102] : memref<18x18x128xf32, #tpu.memory_space<vmem>>, vector<16x16x128xf32>
    %142 = vector.shape_cast %141 : vector<16x16x128xf32> to vector<256x128xf32>
    %143 = arith.truncf %142 : vector<256x128xf32> to vector<256x128xbf16>
    %c6_103 = arith.constant 6 : index
    %c0_104 = arith.constant 0 : index
    %c0_105 = arith.constant 0 : index
    %144 = vector.load %arg4[%c6_103, %c0_104, %c0_105] : memref<9x128x128xbf16, #tpu.memory_space<vmem>>, vector<1x128x128xbf16>
    %145 = vector.shape_cast %144 : vector<1x128x128xbf16> to vector<128x128xbf16>
    %cst_106 = arith.constant dense<0.000000e+00> : vector<256x128xf32>
    %146 = tpu.matmul %143, %145, %cst_106 {dimension_numbers = #tpu.dot_dimension_numbers<[1], [0], [0], [1], [0, 0, 1, 1], [], []>} : vector<256x128xbf16>, vector<128x128xbf16>, vector<256x128xf32> -> vector<256x128xf32>
    %147 = arith.addf %140, %146 : vector<256x128xf32>
    %c2_107 = arith.constant 2 : index
    %c1_108 = arith.constant 1 : index
    %c0_109 = arith.constant 0 : index
    %148 = vector.load %arg7[%c2_107, %c1_108, %c0_109] : memref<18x18x128xf32, #tpu.memory_space<vmem>>, vector<16x16x128xf32>
    %149 = vector.shape_cast %148 : vector<16x16x128xf32> to vector<256x128xf32>
    %150 = arith.truncf %149 : vector<256x128xf32> to vector<256x128xbf16>
    %c7_110 = arith.constant 7 : index
    %c0_111 = arith.constant 0 : index
    %c0_112 = arith.constant 0 : index
    %151 = vector.load %arg4[%c7_110, %c0_111, %c0_112] : memref<9x128x128xbf16, #tpu.memory_space<vmem>>, vector<1x128x128xbf16>
    %152 = vector.shape_cast %151 : vector<1x128x128xbf16> to vector<128x128xbf16>
    %cst_113 = arith.constant dense<0.000000e+00> : vector<256x128xf32>
    %153 = tpu.matmul %150, %152, %cst_113 {dimension_numbers = #tpu.dot_dimension_numbers<[1], [0], [0], [1], [0, 0, 1, 1], [], []>} : vector<256x128xbf16>, vector<128x128xbf16>, vector<256x128xf32> -> vector<256x128xf32>
    %154 = arith.addf %147, %153 : vector<256x128xf32>
    %c2_114 = arith.constant 2 : index
    %c2_115 = arith.constant 2 : index
    %c0_116 = arith.constant 0 : index
    %155 = vector.load %arg7[%c2_114, %c2_115, %c0_116] : memref<18x18x128xf32, #tpu.memory_space<vmem>>, vector<16x16x128xf32>
    %156 = vector.shape_cast %155 : vector<16x16x128xf32> to vector<256x128xf32>
    %157 = arith.truncf %156 : vector<256x128xf32> to vector<256x128xbf16>
    %c8_117 = arith.constant 8 : index
    %c0_118 = arith.constant 0 : index
    %c0_119 = arith.constant 0 : index
    %158 = vector.load %arg4[%c8_117, %c0_118, %c0_119] : memref<9x128x128xbf16, #tpu.memory_space<vmem>>, vector<1x128x128xbf16>
    %159 = vector.shape_cast %158 : vector<1x128x128xbf16> to vector<128x128xbf16>
    %cst_120 = arith.constant dense<0.000000e+00> : vector<256x128xf32>
    %160 = tpu.matmul %157, %159, %cst_120 {dimension_numbers = #tpu.dot_dimension_numbers<[1], [0], [0], [1], [0, 0, 1, 1], [], []>} : vector<256x128xbf16>, vector<128x128xbf16>, vector<256x128xf32> -> vector<256x128xf32>
    %161 = arith.addf %154, %160 : vector<256x128xf32>
    %c0_121 = arith.constant 0 : index
    %c0_122 = arith.constant 0 : index
    %162 = vector.load %arg5[%c0_121, %c0_122] : memref<1x128xf32, #tpu.memory_space<vmem>>, vector<1x128xf32>
    %163 = vector.broadcast %162 : vector<1x128xf32> to vector<256x128xf32>
    %164 = arith.addf %161, %163 : vector<256x128xf32>
    %165 = vector.extract_strided_slice %2 {offsets = [1, 1, 0], sizes = [16, 16, 128], strides = [1, 1, 1]} : vector<18x18x128xf32> to vector<16x16x128xf32>
    %166 = vector.shape_cast %165 : vector<16x16x128xf32> to vector<256x128xf32>
    %cst_123 = arith.constant dense<0.000000e+00> : vector<128xf32>
    %167 = vector.multi_reduction <add>, %164, %cst_123 [0] : vector<256x128xf32> to vector<128xf32>
    %168 = vector.shape_cast %167 : vector<128xf32> to vector<1x128xf32>
    %169 = arith.mulf %164, %164 : vector<256x128xf32>
    %cst_124 = arith.constant dense<0.000000e+00> : vector<128xf32>
    %170 = vector.multi_reduction <add>, %169, %cst_124 [0] : vector<256x128xf32> to vector<128xf32>
    %171 = vector.shape_cast %170 : vector<128xf32> to vector<1x128xf32>
    %cst_125 = arith.constant 3.906250e-03 : f32
    %172 = vector.broadcast %cst_125 : f32 to vector<1x128xf32>
    %173 = arith.mulf %168, %172 : vector<1x128xf32>
    %cst_126 = arith.constant 3.906250e-03 : f32
    %174 = vector.broadcast %cst_126 : f32 to vector<1x128xf32>
    %175 = arith.mulf %171, %174 : vector<1x128xf32>
    %176 = arith.mulf %173, %173 : vector<1x128xf32>
    %177 = arith.subf %175, %176 : vector<1x128xf32>
    %cst_127 = arith.constant 0.000000e+00 : f32
    %178 = vector.broadcast %cst_127 : f32 to vector<1x128xf32>
    %179 = arith.maximumf %177, %178 : vector<1x128xf32>
    %180 = vector.broadcast %173 : vector<1x128xf32> to vector<256x128xf32>
    %181 = arith.subf %164, %180 : vector<256x128xf32>
    %cst_128 = arith.constant 9.99999974E-6 : f32
    %182 = vector.broadcast %cst_128 : f32 to vector<1x128xf32>
    %183 = arith.addf %179, %182 : vector<1x128xf32>
    %184 = math.rsqrt %183 : vector<1x128xf32>
    %185 = vector.broadcast %184 : vector<1x128xf32> to vector<256x128xf32>
    %186 = arith.mulf %181, %185 : vector<256x128xf32>
    %187 = arith.addf %166, %186 : vector<256x128xf32>
    %c0_129 = arith.constant 0 : index
    %c0_130 = arith.constant 0 : index
    %c0_131 = arith.constant 0 : index
    %188 = vector.load %arg6[%c0_129, %c0_130, %c0_131] : memref<1x256x128xf32, #tpu.memory_space<vmem>>, vector<1x256x128xf32>
    %189 = vector.shape_cast %188 : vector<1x256x128xf32> to vector<256x128xf32>
    %190 = vector.shape_cast %187 : vector<256x128xf32> to vector<1x256x128xf32>
    tpu.vector_store %arg6[%c0_129, %c0_130, %c0_131], %190 {strides = array<i32>} : memref<1x256x128xf32, #tpu.memory_space<vmem>>, vector<1x256x128xf32>,
    return
  }
  func.func @transform_0(%arg0: i32) -> (i32, i32, i32, i32) {
    %c0_i32 = arith.constant 0 : i32
    %c0_i32_0 = arith.constant 0 : i32
    %c0_i32_1 = arith.constant 0 : i32
    %c0_i32_2 = arith.constant 0 : i32
    return %arg0, %c0_i32, %c0_i32_0, %c0_i32_1 : i32, i32, i32, i32
  }
  func.func @transform_1(%arg0: i32) -> (i32, i32, i32) {
    %c0_i32 = arith.constant 0 : i32
    %c0_i32_0 = arith.constant 0 : i32
    %c0_i32_1 = arith.constant 0 : i32
    %c0_i32_2 = arith.constant 0 : i32
    return %c0_i32, %c0_i32_0, %c0_i32_1 : i32, i32, i32
  }
  func.func @transform_2(%arg0: i32) -> (i32, i32) {
    %c0_i32 = arith.constant 0 : i32
    %c0_i32_0 = arith.constant 0 : i32
    %c0_i32_1 = arith.constant 0 : i32
    return %c0_i32, %c0_i32_0 : i32, i32
  }
  func.func @transform_3(%arg0: i32) -> (i32, i32, i32) {
    %c0_i32 = arith.constant 0 : i32
    %c0_i32_0 = arith.constant 0 : i32
    %c0_i32_1 = arith.constant 0 : i32
    %c0_i32_2 = arith.constant 0 : i32
    return %c0_i32, %c0_i32_0, %c0_i32_1 : i32, i32, i32
  }
  func.func @transform_4(%arg0: i32) -> (i32, i32) {
    %c0_i32 = arith.constant 0 : i32
    %c0_i32_0 = arith.constant 0 : i32
    %c0_i32_1 = arith.constant 0 : i32
    return %c0_i32, %c0_i32_0 : i32, i32
  }
  func.func @transform_5(%arg0: i32) -> (i32, i32, i32) {
    %c0_i32 = arith.constant 0 : i32
    %c0_i32_0 = arith.constant 0 : i32
    %c0_i32_1 = arith.constant 0 : i32
    return %arg0, %c0_i32, %c0_i32_0 : i32, i32, i32
  }
}

</mosaic_0001>

<bundles_post_ra>
// kernel: resnet_block_forward.1
= control target key start
LH: loop header
LB: loop body
LE: loop exit
PB: predicated region body
PF: predicated region fallthrough
CT: control target
= control target key end

     0   :  { %s6158_s18 = smov 0   ;;  %s8934_s0 = inlined_call_operand.vmem [shape: bf16[2,18,18,128], index: 0, kind: input, shape index: {}]   ;;  %s8935_s1 = inlined_call_operand.vmem [shape: bf16[9,128,128], index: 1, kind: input, shape index: {}]   ;;  %s8936_s2 = inlined_call_operand.vmem [shape: f32[1,128], index: 2, kind: input, shape index: {}]   ;;  %s8937_s3 = inlined_call_operand.vmem [shape: bf16[9,128,128], index: 3, kind: input, shape index: {}]   ;;  %s8938_s4 = inlined_call_operand.vmem [shape: f32[1,128], index: 4, kind: input, shape index: {}]   ;;  %s8939_s5 = inlined_call_operand.vmem [shape: f32[2,256,128], index: 5, kind: output, shape index: {}]  }
   0x1 LB: > { %s5051_s19 = sadd.s32 4294967295, %s6126_s18   ;;  %p5055_p0 = scmp.ge.s32.totalorder %s6126_s18, 1  ;;  %s6126_s18 = sphi %s6158_s18, %s15_s18  }
   0x2   : > { %p187_p1 = scmp.lt.s32.totalorder %s6126_s18, 3 }
   0x4   : > { %p188_p2 = pnand %p5055_p0, %p187_p1 }
   0x6   : > { %191 = sbr.rel (%p188_p2) target bundleno = 1845 (0x735), region = 40 }
   0xb   : > { %v5909_v0 = vld [vmem:[%s8935_s1 + $0x78] sm:$0xff]  ;;  %p215_p3 = scmp.lt.s32.totalorder %s5051_s19, 1  ;;  %v5908_v2 = vld [vmem:[%s8935_s1 + $0x70] sm:$0xff]  ;;  %v5907_v4 = vld [vmem:[%s8935_s1 + $0x68] sm:$0xff]  ;;  %vm413_vm0 = vcmask 1046528   ;;  %vm833_vm1 = vcmask 1045504  }
   0xc   : > { %v5901_v1 = vld [vmem:[%s8935_s1 + $0x38] sm:$0xff]  ;;  %6082 = vmatpush.bf16.msra.mxu2 %v5909_v0  ;;  %v5900_v3 = vld [vmem:[%s8935_s1 + $0x30] sm:$0xff]  ;;  %607 = vmatpush.bf16.msra.mxu0 %v5909_v0  ;;  %v5899_v5 = vld [vmem:[%s8935_s1 + $0x28] sm:$0xff] }
   0xd   : > { %6090 = vmatpush.bf16.msra.mxu3 %v5901_v1  ;;  %744 = vmatpush.bf16.msra.mxu1 %v5901_v1  ;;  %s9229_s19 = smov (!%p215_p3, %s5051_s19), 1  ;;  %v5906_v6 = vld [vmem:[%s8935_s1 + $0x60] sm:$0xff]  ;;  %v5905_v8 = vld [vmem:[%s8935_s1 + $0x58] sm:$0xff]  ;;  %v5904_v14 = vld [vmem:[%s8935_s1 + $0x50] sm:$0xff] }
   0xe   : > { %s6098_s7 = smul.u32 216, %s9229_s19  ;;  %v5898_v7 = vld [vmem:[%s8935_s1 + $0x20] sm:$0xff]  ;;  %v5897_v9 = vld [vmem:[%s8935_s1 + $0x18] sm:$0xff]  ;;  %v5896_v15 = vld [vmem:[%s8935_s1 + $0x10] sm:$0xff]  ;;  %s5893_s22 = sshll.u32 %s9229_s19, 8 }
   0xf   : > { %v5903_v22 = vld [vmem:[%s8935_s1 + $0x48] sm:$0xff]  ;;  %v5902_v30 = vld [vmem:[%s8935_s1 + $0x40] sm:$0xff]  ;;  %v5917_v36 = vld [vmem:[%s8935_s1 + $0xb8] sm:$0xff]  ;;  %s8853_s24 = scalar_lea.vmem %s8939_s5, %s5893_s22 }
  0x10   : > { %6083 = vmatpush.bf16.msra.mxu2 %v5908_v2  ;;  %608 = vmatpush.bf16.msra.mxu0 %v5908_v2  ;;  %s6196_s14 = scalar_lea.vmem %s8934_s0, %s6098_s7  ;;  %v5895_v23 = vld [vmem:[%s8935_s1 + $0x8] sm:$0xff]  ;;  %v5894_v31 = vld [vmem:[%s8935_s1] sm:$0xff]  ;;  %v5925_v37 = vld [vmem:[%s8935_s1 + $0xf8] sm:$0xff] }
  0x11   : > { %6091 = vmatpush.bf16.msra.mxu3 %v5900_v3  ;;  %745 = vmatpush.bf16.msra.mxu1 %v5900_v3  ;;  %v6205_v10 = vld [vmem:[%s6196_s14 + $0x60] sm:$0xff]   ;;  %v6208_v11 = vld [vmem:[%s6196_s14 + $0x68] sm:$0x1]  ;;  %v5933_v40 = vld [vmem:[%s8935_s1 + $0x138] sm:$0xff] }
  0x12   : > { %v6211_v12 = vld [vmem:[%s6196_s14] sm:$0xff]   ;;  %v6214_v13 = vld [vmem:[%s6196_s14 + $0x8] sm:$0x1]  ;;  %v8951_v16 = vunpack.c.l.bf16 %v6205_v10  ;;  %v8950_v17 = vunpack.c.h.bf16 %v6205_v10  ;;  %v8949_v18 = vunpack.c.l.bf16 %v6208_v11  ;;  %v6274_v41 = vld [vmem:[%s6196_s14 + $0x6c] sm:$0xff]  }
  0x13   : > { %v8969_v19 = vunpack.c.l.bf16 %v6211_v12  ;;  %v8968_v20 = vunpack.c.h.bf16 %v6211_v12  ;;  %v8967_v21 = vunpack.c.l.bf16 %v6214_v13  ;;  %9025 = vst [vmem:[#allocation6_spill] sm:$0xff] %v6274_v41  ;;  %v6277_v42 = vld [vmem:[%s6196_s14 + $0x74] sm:$0x1]  ;;  %v6280_v43 = vld [vmem:[%s6196_s14 + $0xc] sm:$0xff]   ;;  %v8948_v47 = vunpack.c.l.bf16 %v6274_v41 }
  0x14   : > { %6084 = vmatpush.bf16.msra.mxu2 %v5907_v4  ;;  %609 = vmatpush.bf16.msra.mxu0 %v5907_v4  ;;  %v454_v24 = vrot.slane %v8951_v16, 1  ;;  %v455_v25 = vrot.slane %v8950_v17, 1  ;;  %v457_v26 = vrot.slane %v8949_v18, 1  ;;  %v5916_v44 = vld [vmem:[%s8935_s1 + $0xb0] sm:$0xff]  ;;  %v8947_v48 = vunpack.c.h.bf16 %v6274_v41  ;;  %v5915_v54 = vld [vmem:[%s8935_s1 + $0xa8] sm:$0xff] }
  0x15   : > { %6092 = vmatpush.bf16.msra.mxu3 %v5899_v5  ;;  %746 = vmatpush.bf16.msra.mxu1 %v5899_v5  ;;  %v414_v27 = vrot.slane %v8969_v19, 1  ;;  %v415_v28 = vrot.slane %v8968_v20, 1  ;;  %v417_v29 = vrot.slane %v8967_v21, 1  ;;  %v6286_v45 = vld [vmem:[%s6196_s14 + $0x14] sm:$0x1]  ;;  %v8946_v49 = vunpack.c.l.bf16 %v6277_v42  ;;  %v5923_v55 = vld [vmem:[%s8935_s1 + $0xe8] sm:$0xff] }
  0x16   : > { %v6253_v32 = vsel %vm413_vm0, %v454_v24, %v455_v25  ;;  %v6256_v33 = vsel %vm413_vm0, %v455_v25, %v457_v26  ;;  %v5924_v46 = vld [vmem:[%s8935_s1 + $0xf0] sm:$0xff]  ;;  %v8966_v50 = vunpack.c.l.bf16 %v6280_v43  ;;  %v8965_v51 = vunpack.c.h.bf16 %v6280_v43  ;;  %v5931_v62 = vld [vmem:[%s8935_s1 + $0x128] sm:$0xff]  ;;  %v6345_v5 = vld [vmem:[%s6196_s14 + $0x78] sm:$0xff]  }
  0x17   : > { %9022 = vst [vmem:[#allocation3_spill] sm:$0xff] %v6253_v32  ;;  %v416_v34 = vsel %vm413_vm0, %v414_v27, %v415_v28  ;;  %v418_v35 = vsel %vm413_vm0, %v415_v28, %v417_v29  ;;  %v6268_v38 = vpack.c.bf16 %v6256_v33, %v6253_v32  ;;  %v8964_v52 = vunpack.c.l.bf16 %v6286_v45  ;;  %v5932_v53 = vld [vmem:[%s8935_s1 + $0x130] sm:$0xff]  ;;  %v5930_v24 = vld [vmem:[%s8935_s1 + $0x120] sm:$0xff] }
  0x18   : > { %6085 = vmatpush.bf16.msra.mxu2 %v5906_v6  ;;  %610 = vmatpush.bf16.msra.mxu0 %v5906_v6  ;;  %9023 = vst [vmem:[#allocation4_spill] sm:$0xff] %v6256_v33  ;;  %v526_v39 = vpack.c.bf16 %v418_v35, %v416_v34  ;;  %v459_v56 = vrot.slane %v8948_v47, 1  ;;  %v460_v57 = vrot.slane %v8947_v48, 1  ;;  %v462_v58 = vrot.slane %v8946_v49, 1  ;;  %v6348_v6 = vld [vmem:[%s6196_s14 + $0x80] sm:$0x1] }
  0x19   : > { %6093 = vmatpush.bf16.msra.mxu3 %v5898_v7  ;;  %747 = vmatpush.bf16.msra.mxu1 %v5898_v7  ;;  %9024 = vst [vmem:[#allocation5_spill] sm:$0xff] %v6268_v38  ;;  %v419_v59 = vrot.slane %v8966_v50, 1  ;;  %v420_v60 = vrot.slane %v8965_v51, 1  ;;  %v422_v61 = vrot.slane %v8964_v52, 1  ;;  %v6351_v7 = vld [vmem:[%s6196_s14 + $0x18] sm:$0xff]   ;;  %v5928_v49 = vld [vmem:[%s8935_s1 + $0x110] sm:$0xff] }
  0x1a   : > { %v6325_v63 = vsel %vm413_vm0, %v459_v56, %v460_v57  ;;  %v6328_v0 = vsel %vm413_vm0, %v460_v57, %v462_v58  ;;  %v8963_v25 = vunpack.c.l.bf16 %v6351_v7  ;;  %v8962_v26 = vunpack.c.h.bf16 %v6351_v7  ;;  %v6417_v56 = vld [vmem:[%s6196_s14 + $0x2c] sm:$0x1]  ;;  %v5913_v57 = vld [vmem:[%s8935_s1 + $0x98] sm:$0xff] }
  0x1b   : > { %9026 = vst [vmem:[#allocation7_spill] sm:$0xff] %v6325_v63  ;;  %v6331_v1 = vsel %vm413_vm0, %v419_v59, %v420_v60  ;;  %v6334_v2 = vsel %vm413_vm0, %v420_v60, %v422_v61  ;;  %v6338_v3 = vpack.c.bf16 %v6328_v0, %v6325_v63  ;;  %v5921_v61 = vld [vmem:[%s8935_s1 + $0xd8] sm:$0xff] }
  0x1c   : > { %6086 = vmatpush.bf16.msra.mxu2 %v5905_v8  ;;  %611 = vmatpush.bf16.msra.mxu0 %v5905_v8  ;;  %9027 = vst [vmem:[#allocation8_spill] sm:$0xff] %v6328_v0  ;;  %v6342_v4 = vpack.c.bf16 %v6334_v2, %v6331_v1  ;;  %v6354_v8 = vld [vmem:[%s6196_s14 + $0x20] sm:$0x1]  ;;  %v425_v34 = vrot.slane %v8962_v26, 1  ;;  %v5927_v26 = vld [vmem:[%s8935_s1 + $0x108] sm:$0xff]  ;;  %v5957_v33 = vld [vmem:[%s8935_s1 + $0x1f8] sm:$0xff] }
  0x1d   : > { %6094 = vmatpush.bf16.msra.mxu3 %v5897_v9  ;;  %748 = vmatpush.bf16.msra.mxu1 %v5897_v9  ;;  %9028 = vst [vmem:[#allocation9_spill] sm:$0xff] %v6331_v1  ;;  %v5914_v9 = vld [vmem:[%s8935_s1 + $0xa0] sm:$0xff]  ;;  %v8961_v27 = vunpack.c.l.bf16 %v6354_v8 }
  0x1e   : > { %9029 = vst [vmem:[#allocation10_spill] sm:$0xff] %v6334_v2 }
  0x1f   : > { %9030 = vst [vmem:[#allocation11_spill] sm:$0xff] %v6338_v3  ;;  %v427_v35 = vrot.slane %v8961_v27, 1  ;;  %v5919_v27 = vld [vmem:[%s8935_s1 + $0xc8] sm:$0xff] }
  0x20   : > { %6087 = vmatpush.bf16.msra.mxu2 %v5904_v14  ;;  %612 = vmatpush.bf16.msra.mxu0 %v5904_v14  ;;  %v8945_v14 = vunpack.c.l.bf16 %v6345_v5 }
  0x21   : > { %6095 = vmatpush.bf16.msra.mxu3 %v5896_v15  ;;  %749 = vmatpush.bf16.msra.mxu1 %v5896_v15  ;;  %v8944_v15 = vunpack.c.h.bf16 %v6345_v5 }
  0x22   : > { %v464_v28 = vrot.slane %v8945_v14, 1  ;;  %v5920_v14 = vld [vmem:[%s8935_s1 + $0xd0] sm:$0xff] }
  0x23   : > { %v465_v29 = vrot.slane %v8944_v15, 1 }
  0x24   : > { %6088 = vmatpush.bf16.msra.mxu2 %v5903_v22  ;;  %613 = vmatpush.bf16.msra.mxu0 %v5903_v22  ;;  %v8943_v22 = vunpack.c.l.bf16 %v6348_v6 }
  0x25   : > { %6096 = vmatpush.bf16.msra.mxu3 %v5895_v23  ;;  %750 = vmatpush.bf16.msra.mxu1 %v5895_v23  ;;  %v5922_v23 = vld [vmem:[%s8935_s1 + $0xe0] sm:$0xff] }
  0x28   : > { %6089 = vmatpush.bf16.msra.mxu2 %v5902_v30  ;;  %614 = vmatpush.bf16.msra.mxu0 %v5902_v30  ;;  %v467_v30 = vrot.slane %v8943_v22, 1  ;;  %v6471_v22 = vld [vmem:[%s6196_s14 + $0x90] sm:$0xff]  }
  0x29   : > { %6097 = vmatpush.bf16.msra.mxu3 %v5894_v31  ;;  %751 = vmatpush.bf16.msra.mxu1 %v5894_v31  ;;  %v424_v31 = vrot.slane %v8963_v25, 1  ;;  %v5941_v25 = vld [vmem:[%s8935_s1 + $0x178] sm:$0xff] }
  0x2b   : > { %655 = vmatmul.bf16.vlgmr.msra.gmra.mxu2 %v6268_v38  ;;  %615 = vmatmul.bf16.vlgmr.msra.gmra.mxu0 %v526_v39  ;;  %v6394_v39 = vsel %vm413_vm0, %v424_v31, %v425_v34 }
  0x2c   : > { %1027 = vmatpush.bf16.msrb.mxu2 %v5917_v36  ;;  %792 = vmatmul.bf16.vlgmr.msra.gmra.mxu3 %v6205_v10  ;;  %v6388_v36 = vsel %vm413_vm0, %v464_v28, %v465_v29  ;;  %9033 = vst [vmem:[#allocation14_spill] sm:$0xff] %v6394_v39 }
  0x2d   : > { %1214 = vmatpush.bf16.msrb.mxu3 %v5925_v37  ;;  %752 = vmatmul.bf16.vlgmr.msra.gmra.mxu1 %v6211_v12  ;;  %9031 = vst [vmem:[#allocation12_spill] sm:$0xff] %v6388_v36  ;;  %v6391_v37 = vsel %vm413_vm0, %v465_v29, %v467_v30 }
  0x2e   : > { %1411 = vmatpush.bf16.msrb.mxu0 %v5933_v40  ;;  %9032 = vst [vmem:[#allocation13_spill] sm:$0xff] %v6391_v37  ;;  %v6397_v40 = vsel %vm413_vm0, %v425_v34, %v427_v35  ;;  %1605 = vmatpush.bf16.msrb.mxu1 %v5941_v25 }
  0x2f   : > { %9034 = vst [vmem:[#allocation15_spill] sm:$0xff] %v6397_v40 }
  0x30   : > { %1028 = vmatpush.bf16.msrb.mxu2 %v5916_v44  ;;  %v6401_v44 = vpack.c.bf16 %v6391_v37, %v6388_v36 }
  0x31   : > { %1215 = vmatpush.bf16.msrb.mxu3 %v5924_v46  ;;  %v6405_v46 = vpack.c.bf16 %v6397_v40, %v6394_v39 }
  0x32   : > { %1412 = vmatpush.bf16.msrb.mxu0 %v5932_v53  ;;  %v6408_v53 = vld [vmem:[%s6196_s14 + $0x84] sm:$0xff]  }
  0x33   : > { %v8942_v58 = vunpack.c.l.bf16 %v6408_v53  ;;  %v8941_v59 = vunpack.c.h.bf16 %v6408_v53 }
  0x34   : > { %1029 = vmatpush.bf16.msrb.mxu2 %v5915_v54  ;;  %v6411_v54 = vld [vmem:[%s6196_s14 + $0x8c] sm:$0x1] }
  0x35   : > { %1216 = vmatpush.bf16.msrb.mxu3 %v5923_v55  ;;  %v6414_v55 = vld [vmem:[%s6196_s14 + $0x24] sm:$0xff]   ;;  %v8940_v60 = vunpack.c.l.bf16 %v6411_v54  ;;  %v469_v28 = vrot.slane %v8942_v58, 1  ;;  %v470_v29 = vrot.slane %v8941_v59, 1 }
  0x36   : > { %1413 = vmatpush.bf16.msrb.mxu0 %v5931_v62  ;;  %v5929_v62 = vld [vmem:[%s8935_s1 + $0x118] sm:$0xff] }
  0x37   : > { %v472_v30 = vrot.slane %v8940_v60, 1 }
  0x38   : > { %1030 = vmatpush.bf16.msrb.mxu2 %v5914_v9  ;;  %v8960_v9 = vunpack.c.l.bf16 %v6414_v55 }
  0x39   : > { %1217 = vmatpush.bf16.msrb.mxu3 %v5922_v23  ;;  %v8953_v23 = vunpack.c.h.bf16 %v6414_v55 }
  0x3a   : > { %1414 = vmatpush.bf16.msrb.mxu0 %v5930_v24  ;;  %v8952_v24 = vunpack.c.l.bf16 %v6417_v56  ;;  %v429_v31 = vrot.slane %v8960_v9, 1 }
  0x3b   : > { %660 = vmatmul.bf16.gmra.mxu2 %v6338_v3  ;;  %620 = vmatmul.bf16.gmra.mxu0 %v6342_v4  ;;  %v430_v34 = vrot.slane %v8953_v23, 1 }
  0x3c   : > { %797 = vmatmul.bf16.gmra.mxu3 %v6274_v41  ;;  %1031 = vmatpush.bf16.msrb.mxu2 %v5913_v57  ;;  %v432_v35 = vrot.slane %v8952_v24, 1  ;;  %v6451_v57 = vsel %vm413_vm0, %v469_v28, %v470_v29  ;;  %v6474_v28 = vld [vmem:[%s6196_s14 + $0x98] sm:$0x1] }
  0x3d   : > { %757 = vmatmul.bf16.gmra.mxu1 %v6280_v43  ;;  %1218 = vmatpush.bf16.msrb.mxu3 %v5921_v61  ;;  %9035 = vst [vmem:[#allocation16_spill] sm:$0xff] %v6451_v57  ;;  %v6454_v61 = vsel %vm413_vm0, %v470_v29, %v472_v30  ;;  %v6477_v29 = vld [vmem:[%s6196_s14 + $0x30] sm:$0xff]   ;;  %v6480_v30 = vld [vmem:[%s6196_s14 + $0x38] sm:$0x1]  ;;  %v8956_v15 = vunpack.c.l.bf16 %v6474_v28 }
  0x3e   : > { %1415 = vmatpush.bf16.msrb.mxu0 %v5929_v62  ;;  %9036 = vst [vmem:[#allocation17_spill] sm:$0xff] %v6454_v61  ;;  %v6457_v62 = vsel %vm413_vm0, %v429_v31, %v430_v34  ;;  %v6460_v60 = vsel %vm413_vm0, %v430_v34, %v432_v35  ;;  %v6464_v59 = vpack.c.bf16 %v6454_v61, %v6451_v57  ;;  %v5912_v31 = vld [vmem:[%s8935_s1 + $0x90] sm:$0xff]  ;;  %v8954_v34 = vunpack.c.l.bf16 %v6471_v22 }
  0x3f   : > { %9037 = vst [vmem:[#allocation18_spill] sm:$0xff] %v6457_v62  ;;  %v6468_v58 = vpack.c.bf16 %v6460_v60, %v6457_v62  ;;  %v8955_v35 = vunpack.c.h.bf16 %v6471_v22  ;;  %v8957_v48 = vunpack.c.l.bf16 %v6477_v29  ;;  %v8958_v47 = vunpack.c.h.bf16 %v6477_v29 }
  0x40   : > { %9038 = vst [vmem:[#allocation19_spill] sm:$0xff] %v6460_v60  ;;  %v8959_v18 = vunpack.c.l.bf16 %v6480_v30  ;;  %1032 = vmatpush.bf16.msrb.mxu2 %v5912_v31  ;;  %v474_v17 = vrot.slane %v8954_v34, 1  ;;  %v477_v24 = vrot.slane %v8956_v15, 1 }
  0x41   : > { %1219 = vmatpush.bf16.msrb.mxu3 %v5920_v14  ;;  %v475_v16 = vrot.slane %v8955_v35, 1  ;;  %v434_v23 = vrot.slane %v8957_v48, 1  ;;  %v435_v31 = vrot.slane %v8958_v47, 1 }
  0x42   : > { %1416 = vmatpush.bf16.msrb.mxu0 %v5928_v49  ;;  %v437_v14 = vrot.slane %v8959_v18, 1  ;;  %v6534_v18 = vld [vmem:[%s6196_s14 + $0x9c] sm:$0xff]  }
  0x43   : > { %v6514_v49 = vsel %vm413_vm0, %v474_v17, %v475_v16  ;;  %v6517_v34 = vsel %vm413_vm0, %v475_v16, %v477_v24  ;;  %v6520_v35 = vsel %vm413_vm0, %v434_v23, %v435_v31  ;;  %v6537_v17 = vld [vmem:[%s6196_s14 + $0xa4] sm:$0x1]  ;;  %v6540_v16 = vld [vmem:[%s6196_s14 + $0x3c] sm:$0xff]   ;;  %v5911_v23 = vld [vmem:[%s8935_s1 + $0x88] sm:$0xff] }
  0x44   : > { %9039 = vst [vmem:[#allocation20_spill] sm:$0xff] %v6514_v49  ;;  %v6523_v15 = vsel %vm413_vm0, %v435_v31, %v437_v14  ;;  %v6527_v48 = vpack.c.bf16 %v6517_v34, %v6514_v49  ;;  %v6543_v24 = vld [vmem:[%s6196_s14 + $0x44] sm:$0x1]  ;;  %v8970_v31 = vunpack.c.l.bf16 %v6534_v18  ;;  %v8971_v14 = vunpack.c.h.bf16 %v6534_v18  ;;  %1033 = vmatpush.bf16.msrb.mxu2 %v5911_v23 }
  0x45   : > { %9040 = vst [vmem:[#allocation21_spill] sm:$0xff] %v6517_v34  ;;  %v6531_v47 = vpack.c.bf16 %v6523_v15, %v6520_v35  ;;  %v8972_v9 = vunpack.c.l.bf16 %v6537_v17  ;;  %v8973_v52 = vunpack.c.l.bf16 %v6540_v16  ;;  %v8974_v51 = vunpack.c.h.bf16 %v6540_v16  ;;  %1220 = vmatpush.bf16.msrb.mxu3 %v5919_v27  ;;  %v5918_v34 = vld [vmem:[%s8935_s1 + $0xc0] sm:$0xff] }
  0x46   : > { %9041 = vst [vmem:[#allocation22_spill] sm:$0xff] %v6520_v35  ;;  %1417 = vmatpush.bf16.msrb.mxu0 %v5927_v26  ;;  %v479_v21 = vrot.slane %v8970_v31, 1  ;;  %v480_v20 = vrot.slane %v8971_v14, 1  ;;  %v9044_v26 = vunpack.c.l.bf16 %v6543_v24 }
  0x47   : > { %9042 = vst [vmem:[#allocation23_spill] sm:$0xff] %v6523_v15  ;;  %v482_v19 = vrot.slane %v8972_v9, 1  ;;  %v439_v50 = vrot.slane %v8973_v52, 1  ;;  %v440_v27 = vrot.slane %v8974_v51, 1 }
  0x48   : > { %9043 = vst [vmem:[#allocation24_spill] sm:$0xff] %v6531_v47  ;;  %v442_v23 = vrot.slane %v9044_v26, 1  ;;  %v6580_v25 = vsel %vm413_vm0, %v479_v21, %v480_v20  ;;  %v6600_v26 = vld [vmem:[%s6196_s14 + $0xa8] sm:$0xff]   ;;  %v6603_v21 = vld [vmem:[%s6196_s14 + $0xb0] sm:$0x1] }
  0x49   : > { %9045 = vst [vmem:[#allocation25_spill] sm:$0xff] %v6580_v25  ;;  %v6583_v31 = vsel %vm413_vm0, %v480_v20, %v482_v19  ;;  %v6586_v14 = vsel %vm413_vm0, %v439_v50, %v440_v27  ;;  %v6606_v19 = vld [vmem:[%s6196_s14 + $0x48] sm:$0xff]   ;;  %v6609_v20 = vld [vmem:[%s6196_s14 + $0x50] sm:$0x1]  ;;  %1221 = vmatpush.bf16.msrb.mxu3 %v5918_v34  ;;  %v9051_v49 = vunpack.c.h.bf16 %v6600_v26 }
  0x4a   : > { %9046 = vst [vmem:[#allocation26_spill] sm:$0xff] %v6583_v31  ;;  %v6589_v9 = vsel %vm413_vm0, %v440_v27, %v442_v23  ;;  %v6593_v52 = vpack.c.bf16 %v6583_v31, %v6580_v25  ;;  %v5940_v50 = vld [vmem:[%s8935_s1 + $0x170] sm:$0xff]  ;;  %v5910_v27 = vld [vmem:[%s8935_s1 + $0x80] sm:$0xff]  ;;  %v5939_v23 = vld [vmem:[%s8935_s1 + $0x168] sm:$0xff]  ;;  %v9050_v31 = vunpack.c.l.bf16 %v6600_v26  ;;  %v9053_v57 = vunpack.c.l.bf16 %v6606_v19 }
  0x4b   : > { %665 = vmatmul.bf16.gmra.mxu2 %v6401_v44  ;;  %625 = vmatmul.bf16.gmra.mxu0 %v6405_v46  ;;  %9047 = vst [vmem:[#allocation27_spill] sm:$0xff] %v6586_v14  ;;  %v6597_v51 = vpack.c.bf16 %v6589_v9, %v6586_v14  ;;  %v5926_v25 = vld [vmem:[%s8935_s1 + $0x100] sm:$0xff]  ;;  %v485_v61 = vrot.slane %v9051_v49, 1  ;;  %v9054_v0 = vunpack.c.h.bf16 %v6606_v19  ;;  %v9055_v34 = vunpack.c.l.bf16 %v6609_v20 }
  0x4c   : > { %802 = vmatmul.bf16.gmra.mxu3 %v6345_v5  ;;  %9048 = vst [vmem:[#allocation28_spill] sm:$0xff] %v6589_v9  ;;  %1034 = vmatpush.bf16.msrb.mxu2 %v5910_v27  ;;  %v484_v37 = vrot.slane %v9050_v31, 1  ;;  %v9052_v27 = vunpack.c.l.bf16 %v6603_v21  ;;  %v444_v36 = vrot.slane %v9053_v57, 1  ;;  %v5938_v49 = vld [vmem:[%s8935_s1 + $0x160] sm:$0xff] }
  0x4d   : > { %762 = vmatmul.bf16.gmra.mxu1 %v6351_v7  ;;  %9049 = vst [vmem:[#allocation29_spill] sm:$0xff] %v6597_v51  ;;  %1418 = vmatpush.bf16.msrb.mxu0 %v5926_v25  ;;  %v445_v63 = vrot.slane %v9054_v0, 1  ;;  %v447_v25 = vrot.slane %v9055_v34, 1 }
  0x4e   : > { %1606 = vmatpush.bf16.msrb.mxu1 %v5940_v50  ;;  %v487_v50 = vrot.slane %v9052_v27, 1  ;;  %v6652_v31 = vsel %vm413_vm0, %v484_v37, %v485_v61  ;;  %1989 = vmatpush.bf16.msra.mxu3 %v5957_v33 }
  0x4f   : > { %9056 = vst [vmem:[#allocation30_spill] sm:$0xff] %v6652_v31  ;;  %v6658_v57 = vsel %vm413_vm0, %v444_v36, %v445_v63  ;;  %v6661_v0 = vsel %vm413_vm0, %v445_v63, %v447_v25  ;;  %v6678_v36 = vld [vmem:[%s6196_s14 + $0xbc] sm:$0x1]  ;;  %v6681_v63 = vld [vmem:[%s6196_s14 + $0x54] sm:$0xff]  }
  0x50   : > { %v6655_v27 = vsel %vm413_vm0, %v485_v61, %v487_v50  ;;  %9058 = vst [vmem:[#allocation32_spill] sm:$0xff] %v6658_v57  ;;  %v6672_v37 = vpack.c.bf16 %v6661_v0, %v6658_v57  ;;  %v6675_v61 = vld [vmem:[%s6196_s14 + $0xb4] sm:$0xff]   ;;  %v6684_v50 = vld [vmem:[%s6196_s14 + $0x5c] sm:$0x1]  ;;  %v9063_v15 = vunpack.c.l.bf16 %v6678_v36 }
  0x51   : > { %9057 = vst [vmem:[#allocation31_spill] sm:$0xff] %v6655_v27  ;;  %v6668_v34 = vpack.c.bf16 %v6655_v27, %v6652_v31  ;;  %v5936_v25 = vld [vmem:[%s8935_s1 + $0x150] sm:$0xff]  ;;  %v8995_v57 = vunpack.c.l.bf16 %v6684_v50  ;;  %v9061_v27 = vunpack.c.l.bf16 %v6675_v61  ;;  %v9062_v9 = vunpack.c.h.bf16 %v6675_v61 }
  0x52   : > { %1607 = vmatpush.bf16.msrb.mxu1 %v5939_v23  ;;  %9059 = vst [vmem:[#allocation33_spill] sm:$0xff] %v6661_v0  ;;  %v5937_v23 = vld [vmem:[%s8935_s1 + $0x158] sm:$0xff]  ;;  %v492_v32 = vrot.slane %v9063_v15, 1  ;;  %v9064_v0 = vunpack.c.l.bf16 %v6681_v63 }
  0x53   : > { %9060 = vst [vmem:[#allocation34_spill] sm:$0xff] %v6672_v37  ;;  %v489_v31 = vrot.slane %v9061_v27, 1  ;;  %v490_v14 = vrot.slane %v9062_v9, 1  ;;  %v452_v33 = vrot.slane %v8995_v57, 1  ;;  %v5934_v27 = vld [vmem:[%s8935_s1 + $0x140] sm:$0xff]  ;;  %v5965_v9 = vld [vmem:[%s8935_s1 + $0x238] sm:$0xff] }
  0x54   : > { %v449_v35 = vrot.slane %v9064_v0, 1  ;;  %2183 = vmatpush.bf16.msra.mxu0 %v5965_v9 }
  0x55   : > { %v6727_v15 = vsel %vm413_vm0, %v489_v31, %v490_v14  ;;  %v6730_v0 = vsel %vm413_vm0, %v490_v14, %v492_v32  ;;  %v9070_v32 = vunpack.c.l.bf16 %v6211_v12  ;;  %v9071_v14 = vunpack.c.h.bf16 %v6211_v12 }
  0x56   : > { %1608 = vmatpush.bf16.msrb.mxu1 %v5938_v49  ;;  %v5949_v49 = vld [vmem:[%s8935_s1 + $0x1b8] sm:$0xff]  ;;  %9066 = vst [vmem:[#allocation35_spill] sm:$0xff] %v6727_v15  ;;  %v6740_v57 = vpack.c.bf16 %v6730_v0, %v6727_v15 }
  0x57   : > { %1792 = vmatpush.bf16.msra.mxu2 %v5949_v49  ;;  %v9065_v49 = vunpack.c.h.bf16 %v6681_v63  ;;  %9067 = vst [vmem:[#allocation36_spill] sm:$0xff] %v6730_v0  ;;  %v835_v31 = vrot.slane %v9071_v14, 2  ;;  %v9074_v0 = vunpack.c.h.bf16 %v6280_v43 }
  0x59   : > { %v840_v15 = vrot.slane %v9074_v0, 2 }
  0x5a   : > { %1609 = vmatpush.bf16.msrb.mxu1 %v5937_v23  ;;  %v5935_v23 = vld [vmem:[%s8935_s1 + $0x148] sm:$0xff] }
  0x5b   : > { %670 = vmatmul.bf16.gmra.mxu2 %v6464_v59  ;;  %630 = vmatmul.bf16.gmra.mxu0 %v6468_v58 }
  0x5c   : > { %807 = vmatmul.bf16.gmra.mxu3 %v6408_v53 }
  0x5d   : > { %767 = vmatmul.bf16.gmra.mxu1 %v6414_v55 }
  0x5e   : > { %1610 = vmatpush.bf16.msrb.mxu1 %v5936_v25  ;;  %v450_v25 = vrot.slane %v9065_v49, 1 }
  0x60   : > { %v6733_v49 = vsel %vm413_vm0, %v449_v35, %v450_v25  ;;  %v834_v35 = vrot.slane %v9070_v32, 2 }
  0x61   : > { %9068 = vst [vmem:[#allocation37_spill] sm:$0xff] %v6733_v49 }
  0x62   : > { %1611 = vmatpush.bf16.msrb.mxu1 %v5935_v23  ;;  %v6736_v23 = vsel %vm413_vm0, %v450_v25, %v452_v33  ;;  %v9072_v25 = vunpack.c.l.bf16 %v6214_v13  ;;  %v836_v62 = vsel %vm833_vm1, %v834_v35, %v835_v31  ;;  %v9077_v35 = vunpack.c.h.bf16 %v6351_v7 }
  0x63   : > { %9069 = vst [vmem:[#allocation38_spill] sm:$0xff] %v6736_v23  ;;  %v6744_v60 = vpack.c.bf16 %v6736_v23, %v6733_v49  ;;  %v9075_v23 = vunpack.c.l.bf16 %v6286_v45  ;;  %v5948_v45 = vld [vmem:[%s8935_s1 + $0x1b0] sm:$0xff] }
  0x64   : > { %v837_v33 = vrot.slane %v9072_v25, 2  ;;  %1793 = vmatpush.bf16.msra.mxu2 %v5948_v45 }
  0x65   : > { %v842_v49 = vrot.slane %v9075_v23, 2 }
  0x66   : > { %1612 = vmatpush.bf16.msrb.mxu1 %v5934_v27  ;;  %v9073_v27 = vunpack.c.l.bf16 %v6280_v43  ;;  %v838_v32 = vsel %vm833_vm1, %v835_v31, %v837_v33  ;;  %v845_v31 = vrot.slane %v9077_v35, 2 }
  0x67   : > { %v843_v14 = vsel %vm833_vm1, %v840_v15, %v842_v49  ;;  %v946_v13 = vpack.c.bf16 %v838_v32, %v836_v62 }
  0x68   : > { %v839_v9 = vrot.slane %v9073_v27, 2 }
  0x6a   : > { %v841_v12 = vsel %vm833_vm1, %v839_v9, %v840_v15  ;;  %v5956_v15 = vld [vmem:[%s8935_s1 + $0x1f0] sm:$0xff] }
  0x6b   : > { %675 = vmatmul.bf16.gmra.mxu2 %v6527_v48  ;;  %635 = vmatmul.bf16.gmra.mxu0 %v6531_v47  ;;  %v947_v25 = vpack.c.bf16 %v843_v14, %v841_v12  ;;  %v5964_v9 = vld [vmem:[%s8935_s1 + $0x230] sm:$0xff] }
  0x6c   : > { %812 = vmatmul.bf16.gmra.mxu3 %v6471_v22  ;;  %2184 = vmatpush.bf16.msra.mxu0 %v5964_v9 }
  0x6d   : > { %772 = vmatmul.bf16.gmra.mxu1 %v6477_v29  ;;  %1990 = vmatpush.bf16.msra.mxu3 %v5956_v15 }
  0x7b   : > { %680 = vmatmul.bf16.gmra.mxu2 %v6593_v52  ;;  %640 = vmatmul.bf16.gmra.mxu0 %v6597_v51 }
  0x7c   : > { %817 = vmatmul.bf16.gmra.mxu3 %v6534_v18 }
  0x7d   : > { %777 = vmatmul.bf16.gmra.mxu1 %v6540_v16 }
  0x8b   : > { %685 = vmatmul.bf16.gmra.mxu2 %v6668_v34  ;;  %645 = vmatmul.bf16.gmra.mxu0 %v6672_v37 }
  0x8c   : > { %822 = vmatmul.bf16.gmra.mxu3 %v6600_v26 }
  0x8d   : > { %782 = vmatmul.bf16.gmra.mxu1 %v6606_v19 }
  0x9b   : > { %690 = vmatmul.bf16.gmra.mxu2 %v6740_v57  ;;  %650 = vmatmul.bf16.gmra.mxu0 %v6744_v60 }
  0x9c   : > { %827 = vmatmul.bf16.gmra.mxu3 %v6675_v61 }
  0x9d   : > { %787 = vmatmul.bf16.gmra.mxu1 %v6681_v63 }
  0xa8   : > { %v616_v40 = vpop.f32.mrf.mxu0 }
  0xaa   : > { %v753_v39 = vpop.f32.mrf.mxu1 }
  0xab   : > { %v6766_v2 = vadd.f32 %v753_v39, %v616_v40  ;;  %1035 = vmatmul.bf16.vlgmr.msrb.gmra.mxu2 %v946_v13  ;;  %1419 = vmatmul.bf16.vlgmr.msrb.gmra.mxu0 %v6342_v4  ;;  %v9078_v4 = vunpack.c.l.bf16 %v6354_v8 }
  0xac   : > { %1222 = vmatmul.bf16.vlgmr.msrb.gmra.mxu3 %v6280_v43  ;;  %v9076_v43 = vunpack.c.l.bf16 %v6351_v7 }
  0xad   : > { %1613 = vmatmul.bf16.vlgmr.msrb.gmra.mxu1 %v947_v25  ;;  %v847_v33 = vrot.slane %v9078_v4, 2 }
  0xae   : > { %v656_v62 = vpop.f32.mrf.mxu2  ;;  %v844_v23 = vrot.slane %v9076_v43, 2 }
  0xaf   : > { %v793_v0 = vpop.f32.mrf.mxu3  ;;  %v848_v12 = vsel %vm833_vm1, %v845_v31, %v847_v33  ;;  %v9081_v33 = vunpack.c.h.bf16 %v6414_v55 }
  0xb0   : > { %v6776_v39 = vadd.f32 %v793_v0, %v656_v62  ;;  %v618_v40 = vpop.f32.mrf.mxu0  ;;  %v846_v32 = vsel %vm833_vm1, %v844_v23, %v845_v31  ;;  %v9080_v31 = vunpack.c.l.bf16 %v6414_v55 }
  0xb1   : > { %v6793_v15 = vpack.c.bf16 %v848_v12, %v846_v32  ;;  %v850_v9 = vrot.slane %v9081_v33, 2 }
  0xb2   : > { %v755_v49 = vpop.f32.mrf.mxu1  ;;  %v849_v4 = vrot.slane %v9080_v31, 2 }
  0xb3   : > { %v6784_v27 = vadd.f32 %v755_v49, %v618_v40 }
  0xb4   : > { %v851_v12 = vsel %vm833_vm1, %v849_v4, %v850_v9 }
  0xb6   : > { %v658_v14 = vpop.f32.mrf.mxu2 }
  0xb7   : > { %v795_v13 = vpop.f32.mrf.mxu3 }
  0xb8   : > { %v6791_v45 = vadd.f32 %v795_v13, %v658_v14  ;;  %v621_v62 = vpop.f32.mrf.mxu0 }
  0xba   : > { %v758_v8 = vpop.f32.mrf.mxu1 }
  0xbb   : > { %v6795_v0 = vadd.f32 %v758_v8, %v621_v62  ;;  %1040 = vmatmul.bf16.gmra.mxu2 %v947_v25  ;;  %1424 = vmatmul.bf16.gmra.mxu0 %v6405_v46  ;;  %v9082_v25 = vunpack.c.l.bf16 %v6417_v56  ;;  %v5947_v56 = vld [vmem:[%s8935_s1 + $0x1a8] sm:$0xff] }
  0xbc   : > { %1227 = vmatmul.bf16.gmra.mxu3 %v6351_v7  ;;  %1794 = vmatpush.bf16.msra.mxu2 %v5947_v56  ;;  %v5963_v56 = vld [vmem:[%s8935_s1 + $0x228] sm:$0xff] }
  0xbd   : > { %1618 = vmatmul.bf16.gmra.mxu1 %v6793_v15  ;;  %v852_v32 = vrot.slane %v9082_v25, 2  ;;  %2185 = vmatpush.bf16.msra.mxu0 %v5963_v56 }
  0xbe   : > { %v661_v40 = vpop.f32.mrf.mxu2 }
  0xbf   : > { %v798_v49 = vpop.f32.mrf.mxu3  ;;  %v853_v14 = vsel %vm833_vm1, %v850_v9, %v852_v32  ;;  %v9086_v32 = vunpack.c.l.bf16 %v6477_v29 }
  0xc0   : > { %v6800_v43 = vadd.f32 %v798_v49, %v661_v40  ;;  %v623_v23 = vpop.f32.mrf.mxu0  ;;  %v6814_v40 = vpack.c.bf16 %v853_v14, %v851_v12  ;;  %v9087_v14 = vunpack.c.h.bf16 %v6477_v29 }
  0xc1   : > { %v854_v12 = vrot.slane %v9086_v32, 2 }
  0xc2   : > { %9079 = vst [vmem:[#allocation39_spill] sm:$0xff] %v6800_v43  ;;  %v760_v35 = vpop.f32.mrf.mxu1 }
  0xc3   : > { %v6808_v7 = vadd.f32 %v760_v35, %v623_v23  ;;  %9084 = vst [vmem:[#allocation41_spill] sm:$0xff] %v6814_v40  ;;  %v5955_v23 = vld [vmem:[%s8935_s1 + $0x1e8] sm:$0xff] }
  0xc4   : > { %1991 = vmatpush.bf16.msra.mxu3 %v5955_v23 }
  0xc6   : > { %v663_v13 = vpop.f32.mrf.mxu2 }
  0xc7   : > { %v800_v62 = vpop.f32.mrf.mxu3 }
  0xc8   : > { %v6812_v8 = vadd.f32 %v800_v62, %v663_v13  ;;  %v626_v49 = vpop.f32.mrf.mxu0  ;;  %v855_v13 = vrot.slane %v9087_v14, 2  ;;  %v9088_v62 = vunpack.c.l.bf16 %v6480_v30 }
  0xca   : > { %9083 = vst [vmem:[#allocation40_spill] sm:$0xff] %v6812_v8  ;;  %v763_v31 = vpop.f32.mrf.mxu1  ;;  %v856_v23 = vsel %vm833_vm1, %v854_v12, %v855_v13 }
  0xcb   : > { %v6816_v1 = vadd.f32 %v763_v31, %v626_v49  ;;  %1045 = vmatmul.bf16.gmra.mxu2 %v6793_v15  ;;  %1429 = vmatmul.bf16.gmra.mxu0 %v6468_v58  ;;  %v857_v49 = vrot.slane %v9088_v62, 2 }
  0xcc   : > { %1232 = vmatmul.bf16.gmra.mxu3 %v6414_v55 }
  0xcd   : > { %1623 = vmatmul.bf16.gmra.mxu1 %v6814_v40 }
  0xce   : > { %v666_v35 = vpop.f32.mrf.mxu2 }
  0xcf   : > { %v803_v4 = vpop.f32.mrf.mxu3 }
  0xd0   : > { %v6828_v33 = vadd.f32 %v803_v4, %v666_v35  ;;  %v628_v9 = vpop.f32.mrf.mxu0  ;;  %v858_v35 = vsel %vm833_vm1, %v855_v13, %v857_v49  ;;  %v9091_v49 = vunpack.c.l.bf16 %v6540_v16 }
  0xd1   : > { %v6845_v8 = vpack.c.bf16 %v858_v35, %v856_v23  ;;  %v9092_v23 = vunpack.c.h.bf16 %v6540_v16 }
  0xd2   : > { %9085 = vst [vmem:[#allocation42_spill] sm:$0xff] %v6828_v33  ;;  %v765_v25 = vpop.f32.mrf.mxu1  ;;  %v859_v56 = vrot.slane %v9091_v49, 2 }
  0xd3   : > { %v6836_v31 = vadd.f32 %v765_v25, %v628_v9  ;;  %v860_v35 = vrot.slane %v9092_v23, 2  ;;  %v9097_v23 = vunpack.c.l.bf16 %v6606_v19 }
  0xd6   : > { %v668_v4 = vpop.f32.mrf.mxu2 }
  0xd7   : > { %v805_v33 = vpop.f32.mrf.mxu3 }
  0xd8   : > { %v6843_v32 = vadd.f32 %v805_v33, %v668_v4  ;;  %v631_v14 = vpop.f32.mrf.mxu0  ;;  %v9093_v4 = vunpack.c.l.bf16 %v6543_v24  ;;  %v5946_v24 = vld [vmem:[%s8935_s1 + $0x1a0] sm:$0xff] }
  0xd9   : > { %1795 = vmatpush.bf16.msra.mxu2 %v5946_v24  ;;  %v5962_v24 = vld [vmem:[%s8935_s1 + $0x220] sm:$0xff] }
  0xda   : > { %9089 = vst [vmem:[#allocation43_spill] sm:$0xff] %v6843_v32  ;;  %v768_v30 = vpop.f32.mrf.mxu1  ;;  %2186 = vmatpush.bf16.msra.mxu0 %v5962_v24 }
  0xdb   : > { %v6847_v62 = vadd.f32 %v768_v30, %v631_v14  ;;  %1050 = vmatmul.bf16.gmra.mxu2 %v6814_v40  ;;  %1434 = vmatmul.bf16.gmra.mxu0 %v6531_v47  ;;  %v862_v14 = vrot.slane %v9093_v4, 2  ;;  %v861_v30 = vsel %vm833_vm1, %v859_v56, %v860_v35  ;;  %v9098_v4 = vunpack.c.h.bf16 %v6606_v19 }
  0xdc   : > { %1237 = vmatmul.bf16.gmra.mxu3 %v6477_v29 }
  0xdd   : > { %1628 = vmatmul.bf16.gmra.mxu1 %v6845_v8  ;;  %v863_v32 = vsel %vm833_vm1, %v860_v35, %v862_v14  ;;  %v864_v35 = vrot.slane %v9097_v23, 2  ;;  %v865_v14 = vrot.slane %v9098_v4, 2 }
  0xde   : > { %v671_v9 = vpop.f32.mrf.mxu2 }
  0xdf   : > { %v808_v25 = vpop.f32.mrf.mxu3 }
  0xe0   : > { %v6853_v12 = vadd.f32 %v808_v25, %v671_v9  ;;  %v633_v33 = vpop.f32.mrf.mxu0 }
  0xe2   : > { %9090 = vst [vmem:[#allocation44_spill] sm:$0xff] %v6853_v12  ;;  %v770_v13 = vpop.f32.mrf.mxu1  ;;  %v6867_v12 = vpack.c.bf16 %v863_v32, %v861_v30  ;;  %v9099_v30 = vunpack.c.l.bf16 %v6609_v20 }
  0xe3   : > { %v6861_v29 = vadd.f32 %v770_v13, %v633_v33 }
  0xe4   : > { %9095 = vst [vmem:[#allocation46_spill] sm:$0xff] %v6867_v12 }
  0xe6   : > { %v673_v47 = vpop.f32.mrf.mxu2 }
  0xe7   : > { %v810_v9 = vpop.f32.mrf.mxu3 }
  0xe8   : > { %v6865_v25 = vadd.f32 %v810_v9, %v673_v47  ;;  %v636_v43 = vpop.f32.mrf.mxu0  ;;  %v5954_v47 = vld [vmem:[%s8935_s1 + $0x1e0] sm:$0xff]  ;;  %v867_v9 = vrot.slane %v9099_v30, 2 }
  0xe9   : > { %1992 = vmatpush.bf16.msra.mxu3 %v5954_v47  ;;  %v866_v47 = vsel %vm833_vm1, %v864_v35, %v865_v14 }
  0xea   : > { %9094 = vst [vmem:[#allocation45_spill] sm:$0xff] %v6865_v25  ;;  %v773_v49 = vpop.f32.mrf.mxu1 }
  0xeb   : > { %v6869_v40 = vadd.f32 %v773_v49, %v636_v43  ;;  %1055 = vmatmul.bf16.gmra.mxu2 %v6845_v8  ;;  %1439 = vmatmul.bf16.gmra.mxu0 %v6597_v51 }
  0xec   : > { %1242 = vmatmul.bf16.gmra.mxu3 %v6540_v16 }
  0xed   : > { %1633 = vmatmul.bf16.gmra.mxu1 %v6867_v12 }
  0xee   : > { %v676_v32 = vpop.f32.mrf.mxu2 }
  0xef   : > { %v813_v43 = vpop.f32.mrf.mxu3 }
  0xf0   : > { %v6881_v33 = vadd.f32 %v813_v43, %v676_v32  ;;  %v638_v13 = vpop.f32.mrf.mxu0  ;;  %v868_v32 = vsel %vm833_vm1, %v865_v14, %v867_v9  ;;  %v9102_v9 = vunpack.c.l.bf16 %v6681_v63 }
  0xf1   : > { %v6898_v25 = vpack.c.bf16 %v868_v32, %v866_v47  ;;  %v9103_v47 = vunpack.c.h.bf16 %v6681_v63 }
  0xf2   : > { %9096 = vst [vmem:[#allocation47_spill] sm:$0xff] %v6881_v33  ;;  %v775_v56 = vpop.f32.mrf.mxu1  ;;  %v869_v24 = vrot.slane %v9102_v9, 2 }
  0xf3   : > { %v6889_v49 = vadd.f32 %v775_v56, %v638_v13  ;;  %v870_v32 = vrot.slane %v9103_v47, 2  ;;  %v9108_v47 = vunpack.c.l.bf16 %v6205_v10 }
  0xf6   : > { %v678_v43 = vpop.f32.mrf.mxu2 }
  0xf7   : > { %v815_v33 = vpop.f32.mrf.mxu3 }
  0xf8   : > { %v6896_v23 = vadd.f32 %v815_v33, %v678_v43  ;;  %v641_v4 = vpop.f32.mrf.mxu0  ;;  %v9104_v43 = vunpack.c.l.bf16 %v6684_v50  ;;  %v5945_v50 = vld [vmem:[%s8935_s1 + $0x198] sm:$0xff] }
  0xf9   : > { %1796 = vmatpush.bf16.msra.mxu2 %v5945_v50 }
  0xfa   : > { %9100 = vst [vmem:[#allocation48_spill] sm:$0xff] %v6896_v23  ;;  %v778_v20 = vpop.f32.mrf.mxu1 }
  0xfb   : > { %v6900_v30 = vadd.f32 %v778_v20, %v641_v4  ;;  %1060 = vmatmul.bf16.gmra.mxu2 %v6867_v12  ;;  %1444 = vmatmul.bf16.gmra.mxu0 %v6672_v37  ;;  %v872_v4 = vrot.slane %v9104_v43, 2  ;;  %v871_v20 = vsel %vm833_vm1, %v869_v24, %v870_v32  ;;  %v9109_v43 = vunpack.c.h.bf16 %v6205_v10 }
  0xfc   : > { %1247 = vmatmul.bf16.gmra.mxu3 %v6606_v19 }
  0xfd   : > { %1638 = vmatmul.bf16.gmra.mxu1 %v6898_v25  ;;  %v873_v23 = vsel %vm833_vm1, %v870_v32, %v872_v4  ;;  %v874_v32 = vrot.slane %v9108_v47, 2  ;;  %v875_v4 = vrot.slane %v9109_v43, 2 }
  0xfe   : > { %v681_v13 = vpop.f32.mrf.mxu2 }
  0xff   : > { %v818_v56 = vpop.f32.mrf.mxu3  ;;  %v876_v50 = vsel %vm833_vm1, %v874_v32, %v875_v4 }
 0x100   : > { %v6906_v35 = vadd.f32 %v818_v56, %v681_v13  ;;  %v643_v33 = vpop.f32.mrf.mxu0 }
 0x102   : > { %9101 = vst [vmem:[#allocation49_spill] sm:$0xff] %v6906_v35  ;;  %v780_v14 = vpop.f32.mrf.mxu1  ;;  %v6920_v35 = vpack.c.bf16 %v873_v23, %v871_v20  ;;  %v9110_v20 = vunpack.c.l.bf16 %v6208_v11 }
 0x103   : > { %v6914_v19 = vadd.f32 %v780_v14, %v643_v33 }
 0x104   : > { %9106 = vst [vmem:[#allocation51_spill] sm:$0xff] %v6920_v35 }
 0x106   : > { %v683_v37 = vpop.f32.mrf.mxu2 }
 0x107   : > { %v820_v13 = vpop.f32.mrf.mxu3 }
 0x108   : > { %v6918_v56 = vadd.f32 %v820_v13, %v683_v37  ;;  %v646_v12 = vpop.f32.mrf.mxu0  ;;  %v5953_v37 = vld [vmem:[%s8935_s1 + $0x1d8] sm:$0xff]  ;;  %v877_v13 = vrot.slane %v9110_v20, 2 }
 0x109   : > { %1993 = vmatpush.bf16.msra.mxu3 %v5953_v37  ;;  %v5961_v37 = vld [vmem:[%s8935_s1 + $0x218] sm:$0xff] }
 0x10a   : > { %9105 = vst [vmem:[#allocation50_spill] sm:$0xff] %v6918_v56  ;;  %v783_v9 = vpop.f32.mrf.mxu1  ;;  %v878_v56 = vsel %vm833_vm1, %v875_v4, %v877_v13  ;;  %2187 = vmatpush.bf16.msra.mxu0 %v5961_v37  ;;  %v9115_v37 = vunpack.c.h.bf16 %v6274_v41 }
 0x10b   : > { %v6922_v51 = vadd.f32 %v783_v9, %v646_v12  ;;  %1065 = vmatmul.bf16.gmra.mxu2 %v6898_v25  ;;  %1449 = vmatmul.bf16.gmra.mxu0 %v6744_v60  ;;  %v6951_v47 = vpack.c.bf16 %v878_v56, %v876_v50  ;;  %v9114_v56 = vunpack.c.l.bf16 %v6274_v41 }
 0x10c   : > { %1252 = vmatmul.bf16.gmra.mxu3 %v6681_v63 }
 0x10d   : > { %1643 = vmatmul.bf16.gmra.mxu1 %v6920_v35  ;;  %9112 = vst [vmem:[#allocation54_spill] sm:$0xff] %v6951_v47  ;;  %v879_v50 = vrot.slane %v9114_v56, 2 }
 0x10e   : > { %v686_v23 = vpop.f32.mrf.mxu2 }
 0x10f   : > { %v823_v12 = vpop.f32.mrf.mxu3 }
 0x110   : > { %v6934_v33 = vadd.f32 %v823_v12, %v686_v23  ;;  %v648_v14 = vpop.f32.mrf.mxu0 }
 0x112   : > { %9107 = vst [vmem:[#allocation52_spill] sm:$0xff] %v6934_v33  ;;  %v785_v24 = vpop.f32.mrf.mxu1 }
 0x113   : > { %v6942_v9 = vadd.f32 %v785_v24, %v648_v14 }
 0x116   : > { %v688_v23 = vpop.f32.mrf.mxu2 }
 0x117   : > { %v825_v12 = vpop.f32.mrf.mxu3 }
 0x118   : > { %v6949_v33 = vadd.f32 %v825_v12, %v688_v23  ;;  %v651_v43 = vpop.f32.mrf.mxu0  ;;  %v880_v23 = vrot.slane %v9115_v37, 2  ;;  %v9116_v12 = vunpack.c.l.bf16 %v6277_v42  ;;  %v5944_v42 = vld [vmem:[%s8935_s1 + $0x190] sm:$0xff] }
 0x119   : > { %1797 = vmatpush.bf16.msra.mxu2 %v5944_v42  ;;  %v9120_v42 = vunpack.c.l.bf16 %v6348_v6 }
 0x11a   : > { %9111 = vst [vmem:[#allocation53_spill] sm:$0xff] %v6949_v33  ;;  %v788_v11 = vpop.f32.mrf.mxu1 }
 0x11b   : > { %v6953_v20 = vadd.f32 %v788_v11, %v651_v43  ;;  %1070 = vmatmul.bf16.gmra.mxu2 %v6920_v35  ;;  %1454 = vmatmul.bf16.gmra.mxu0 %v6268_v38  ;;  %v882_v43 = vrot.slane %v9116_v12, 2  ;;  %v881_v11 = vsel %vm833_vm1, %v879_v50, %v880_v23  ;;  %v9118_v12 = vunpack.c.l.bf16 %v6345_v5 }
 0x11c   : > { %1257 = vmatmul.bf16.gmra.mxu3 %v6205_v10 }
 0x11d   : > { %1648 = vmatmul.bf16.gmra.mxu1 %v6951_v47  ;;  %v883_v33 = vsel %vm833_vm1, %v880_v23, %v882_v43  ;;  %v884_v43 = vrot.slane %v9118_v12, 2 }
 0x11e   : > { %v691_v14 = vpop.f32.mrf.mxu2 }
 0x11f   : > { %v828_v24 = vpop.f32.mrf.mxu3 }
 0x120   : > { %v6959_v32 = vadd.f32 %v828_v24, %v691_v14  ;;  %v653_v4 = vpop.f32.mrf.mxu0 }
 0x122   : > { %9113 = vst [vmem:[#allocation55_spill] sm:$0xff] %v6959_v32  ;;  %v790_v13 = vpop.f32.mrf.mxu1  ;;  %v6973_v32 = vpack.c.bf16 %v883_v33, %v881_v11  ;;  %v9119_v11 = vunpack.c.h.bf16 %v6345_v5 }
 0x123   : > { %v6967_v10 = vadd.f32 %v790_v13, %v653_v4 }
 0x126   : > { %v693_v38 = vpop.f32.mrf.mxu2 }
 0x127   : > { %v830_v14 = vpop.f32.mrf.mxu3 }
 0x128   : > { %v6971_v24 = vadd.f32 %v830_v14, %v693_v38  ;;  %v1420_v35 = vpop.f32.mrf.mxu0  ;;  %v5952_v38 = vld [vmem:[%s8935_s1 + $0x1d0] sm:$0xff]  ;;  %v885_v14 = vrot.slane %v9119_v11, 2 }
 0x129   : > { %1994 = vmatpush.bf16.msra.mxu3 %v5952_v38  ;;  %v5960_v38 = vld [vmem:[%s8935_s1 + $0x210] sm:$0xff] }
 0x12a   : > { %9117 = vst [vmem:[#allocation56_spill] sm:$0xff] %v6971_v24  ;;  %v1614_v56 = vpop.f32.mrf.mxu1  ;;  %v887_v24 = vrot.slane %v9120_v42, 2  ;;  %2188 = vmatpush.bf16.msra.mxu0 %v5960_v38  ;;  %v9122_v42 = vunpack.c.l.bf16 %v6408_v53  ;;  %v9123_v38 = vunpack.c.h.bf16 %v6408_v53 }
 0x12b   : > { %1075 = vmatmul.bf16.gmra.mxu2 %v6951_v47  ;;  %1459 = vmatmul.bf16.gmra.mxu0 %v6338_v3  ;;  %v886_v47 = vsel %vm833_vm1, %v884_v43, %v885_v14 }
 0x12c   : > { %1262 = vmatmul.bf16.gmra.mxu3 %v6274_v41 }
 0x12d   : > { %1653 = vmatmul.bf16.gmra.mxu1 %v6973_v32 }
 0x12e   : > { %v1036_v33 = vpop.f32.mrf.mxu2 }
 0x12f   : > { %v1223_v4 = vpop.f32.mrf.mxu3  ;;  %v1116_v13 = vadd.f32 %v1036_v33, %v6766_v2  ;;  %v888_v2 = vsel %vm833_vm1, %v885_v14, %v887_v24 }
 0x130   : > { %v1422_v37 = vpop.f32.mrf.mxu0  ;;  %v7000_v12 = vpack.c.bf16 %v888_v2, %v886_v47  ;;  %v889_v2 = vrot.slane %v9122_v42, 2 }
 0x131   : > { %v1303_v50 = vadd.f32 %v1223_v4, %v1116_v13 }
 0x132   : > { %v1616_v23 = vpop.f32.mrf.mxu1 }
 0x133   : > { %v1500_v3 = vadd.f32 %v1420_v35, %v1303_v50 }
 0x135   : > { %v6992_v41 = vadd.f32 %v1614_v56, %v1500_v3 }
 0x136   : > { %v1038_v33 = vpop.f32.mrf.mxu2 }
 0x137   : > { %v1225_v4 = vpop.f32.mrf.mxu3  ;;  %v1117_v13 = vadd.f32 %v1038_v33, %v6784_v27 }
 0x138   : > { %v1425_v11 = vpop.f32.mrf.mxu0 }
 0x139   : > { %v1304_v6 = vadd.f32 %v1225_v4, %v1117_v13 }
 0x13a   : > { %v1619_v35 = vpop.f32.mrf.mxu1 }
 0x13b   : > { %1080 = vmatmul.bf16.gmra.mxu2 %v6973_v32  ;;  %v1501_v3 = vadd.f32 %v1422_v37, %v1304_v6  ;;  %1464 = vmatmul.bf16.gmra.mxu0 %v6401_v44  ;;  %v9124_v37 = vunpack.c.l.bf16 %v6411_v54 }
 0x13c   : > { %1267 = vmatmul.bf16.gmra.mxu3 %v6345_v5  ;;  %v890_v5 = vrot.slane %v9123_v38, 2 }
 0x13d   : > { %1658 = vmatmul.bf16.gmra.mxu1 %v7000_v12  ;;  %v7006_v24 = vadd.f32 %v1616_v23, %v1501_v3  ;;  %v892_v33 = vrot.slane %v9124_v37, 2 }
 0x13e   : > { %v1041_v56 = vpop.f32.mrf.mxu2  ;;  %v891_v23 = vsel %vm833_vm1, %v889_v2, %v890_v5 }
 0x13f   : > { %9121 = vst [vmem:[#allocation57_spill] sm:$0xff] %v7006_v24  ;;  %v1228_v50 = vpop.f32.mrf.mxu3  ;;  %v1118_v27 = vadd.f32 %v1041_v56, %v6795_v0  ;;  %v893_v6 = vsel %vm833_vm1, %v890_v5, %v892_v33  ;;  %v9125_v33 = vunpack.c.l.bf16 %v6471_v22 }
 0x140   : > { %v1427_v43 = vpop.f32.mrf.mxu0 }
 0x141   : > { %v1305_v47 = vadd.f32 %v1228_v50, %v1118_v27  ;;  %v7020_v50 = vpack.c.bf16 %v893_v6, %v891_v23  ;;  %v9126_v23 = vunpack.c.h.bf16 %v6471_v22  ;;  %v9127_v6 = vunpack.c.l.bf16 %v6474_v28 }
 0x142   : > { %v1621_v14 = vpop.f32.mrf.mxu1 }
 0x143   : > { %v1502_v4 = vadd.f32 %v1425_v11, %v1305_v47  ;;  %v5943_v11 = vld [vmem:[%s8935_s1 + $0x188] sm:$0xff] }
 0x144   : > { %1798 = vmatpush.bf16.msra.mxu2 %v5943_v11 }
 0x145   : > { %v7015_v13 = vadd.f32 %v1619_v35, %v1502_v4  ;;  %v894_v4 = vrot.slane %v9125_v33, 2 }
 0x146   : > { %v1043_v0 = vpop.f32.mrf.mxu2 }
 0x147   : > { %v1230_v3 = vpop.f32.mrf.mxu3  ;;  %v1119_v56 = vadd.f32 %v1043_v0, %v6808_v7  ;;  %v5951_v7 = vld [vmem:[%s8935_s1 + $0x1c8] sm:$0xff]  ;;  %v897_v0 = vrot.slane %v9127_v6, 2 }
 0x148   : > { %v1430_v42 = vpop.f32.mrf.mxu0  ;;  %1995 = vmatpush.bf16.msra.mxu3 %v5951_v7 }
 0x149   : > { %v1306_v27 = vadd.f32 %v1230_v3, %v1119_v56 }
 0x14a   : > { %v1624_v24 = vpop.f32.mrf.mxu1 }
 0x14b   : > { %1085 = vmatmul.bf16.gmra.mxu2 %v7000_v12  ;;  %v1503_v54 = vadd.f32 %v1427_v43, %v1306_v27  ;;  %1469 = vmatmul.bf16.gmra.mxu0 %v6464_v59 }
 0x14c   : > { %1272 = vmatmul.bf16.gmra.mxu3 %v6408_v53 }
 0x14d   : > { %1663 = vmatmul.bf16.gmra.mxu1 %v7020_v50  ;;  %v7029_v35 = vadd.f32 %v1621_v14, %v1503_v54  ;;  %v895_v14 = vrot.slane %v9126_v23, 2  ;;  %v5959_v54 = vld [vmem:[%s8935_s1 + $0x208] sm:$0xff] }
 0x14e   : > { %v1046_v47 = vpop.f32.mrf.mxu2  ;;  %2189 = vmatpush.bf16.msra.mxu0 %v5959_v54 }
 0x14f   : > { %v1233_v2 = vpop.f32.mrf.mxu3  ;;  %v1120_v38 = vadd.f32 %v1046_v47, %v6816_v1  ;;  %v896_v27 = vsel %vm833_vm1, %v894_v4, %v895_v14  ;;  %v898_v1 = vsel %vm833_vm1, %v895_v14, %v897_v0  ;;  %v9128_v0 = vunpack.c.l.bf16 %v6534_v18 }
 0x150   : > { %v1432_v5 = vpop.f32.mrf.mxu0 }
 0x151   : > { %v1307_v43 = vadd.f32 %v1233_v2, %v1120_v38  ;;  %v7049_v2 = vpack.c.bf16 %v898_v1, %v896_v27  ;;  %v9129_v27 = vunpack.c.h.bf16 %v6534_v18 }
 0x152   : > { %v1626_v37 = vpop.f32.mrf.mxu1 }
 0x153   : > { %v1504_v3 = vadd.f32 %v1430_v42, %v1307_v43 }
 0x155   : > { %v7041_v56 = vadd.f32 %v1624_v24, %v1504_v3  ;;  %v899_v3 = vrot.slane %v9128_v0, 2 }
 0x156   : > { %v1048_v11 = vpop.f32.mrf.mxu2 }
 0x157   : > { %v1235_v7 = vpop.f32.mrf.mxu3  ;;  %v1121_v47 = vadd.f32 %v1048_v11, %v6836_v31 }
 0x158   : > { %v1435_v38 = vpop.f32.mrf.mxu0 }
 0x159   : > { %v1308_v28 = vadd.f32 %v1235_v7, %v1121_v47 }
 0x15a   : > { %v1629_v42 = vpop.f32.mrf.mxu1 }
 0x15b   : > { %1090 = vmatmul.bf16.gmra.mxu2 %v7020_v50  ;;  %v1505_v24 = vadd.f32 %v1432_v5, %v1308_v28  ;;  %1474 = vmatmul.bf16.gmra.mxu0 %v6527_v48  ;;  %v9130_v5 = vunpack.c.l.bf16 %v6537_v17 }
 0x15c   : > { %1277 = vmatmul.bf16.gmra.mxu3 %v6471_v22  ;;  %v900_v22 = vrot.slane %v9129_v27, 2 }
 0x15d   : > { %1668 = vmatmul.bf16.gmra.mxu1 %v7049_v2  ;;  %v7055_v43 = vadd.f32 %v1626_v37, %v1505_v24  ;;  %v902_v1 = vrot.slane %v9130_v5, 2  ;;  %v9131_v5 = vunpack.c.l.bf16 %v6600_v26 }
 0x15e   : > { %v1051_v33 = vpop.f32.mrf.mxu2  ;;  %v901_v37 = vsel %vm833_vm1, %v899_v3, %v900_v22 }
 0x15f   : > { %v1238_v4 = vpop.f32.mrf.mxu3  ;;  %v1122_v31 = vadd.f32 %v1051_v33, %v6847_v62  ;;  %v903_v7 = vsel %vm833_vm1, %v900_v22, %v902_v1  ;;  %v904_v1 = vrot.slane %v9131_v5, 2 }
 0x160   : > { %v1437_v14 = vpop.f32.mrf.mxu0  ;;  %v7069_v24 = vpack.c.bf16 %v903_v7, %v901_v37  ;;  %v9133_v37 = vunpack.c.l.bf16 %v6603_v21 }
 0x161   : > { %v1309_v23 = vadd.f32 %v1238_v4, %v1122_v31 }
 0x162   : > { %v1631_v6 = vpop.f32.mrf.mxu1  ;;  %v907_v7 = vrot.slane %v9133_v37, 2 }
 0x163   : > { %v1506_v54 = vadd.f32 %v1435_v38, %v1309_v23  ;;  %v5942_v38 = vld [vmem:[%s8935_s1 + $0x180] sm:$0xff] }
 0x164   : > { %1799 = vmatpush.bf16.msra.mxu2 %v5942_v38 }
 0x165   : > { %v7064_v11 = vadd.f32 %v1629_v42, %v1506_v54 }
 0x166   : > { %v1053_v62 = vpop.f32.mrf.mxu2 }
 0x167   : > { %v1240_v47 = vpop.f32.mrf.mxu3  ;;  %v1123_v28 = vadd.f32 %v1053_v62, %v6861_v29  ;;  %v5950_v29 = vld [vmem:[%s8935_s1 + $0x1c0] sm:$0xff] }
 0x168   : > { %v1440_v4 = vpop.f32.mrf.mxu0  ;;  %1996 = vmatpush.bf16.msra.mxu3 %v5950_v29 }
 0x169   : > { %v1310_v33 = vadd.f32 %v1240_v47, %v1123_v28 }
 0x16a   : > { %v1634_v31 = vpop.f32.mrf.mxu1 }
 0x16b   : > { %1095 = vmatmul.bf16.gmra.mxu2 %v7049_v2  ;;  %v1507_v17 = vadd.f32 %v1437_v14, %v1310_v33  ;;  %1479 = vmatmul.bf16.gmra.mxu0 %v6593_v52  ;;  %v5958_v33 = vld [vmem:[%s8935_s1 + $0x200] sm:$0xff] }
 0x16c   : > { %1282 = vmatmul.bf16.gmra.mxu3 %v6534_v18  ;;  %2190 = vmatpush.bf16.msra.mxu0 %v5958_v33 }
 0x16d   : > { %1673 = vmatmul.bf16.gmra.mxu1 %v7069_v24  ;;  %v7078_v42 = vadd.f32 %v1631_v6, %v1507_v17  ;;  %v9132_v6 = vunpack.c.h.bf16 %v6600_v26 }
 0x16e   : > { %v1056_v23 = vpop.f32.mrf.mxu2 }
 0x16f   : > { %v1243_v0 = vpop.f32.mrf.mxu3  ;;  %v1124_v3 = vadd.f32 %v1056_v23, %v6869_v40  ;;  %v905_v54 = vrot.slane %v9132_v6, 2 }
 0x170   : > { %v1442_v27 = vpop.f32.mrf.mxu0 }
 0x171   : > { %v1311_v14 = vadd.f32 %v1243_v0, %v1124_v3  ;;  %v906_v28 = vsel %vm833_vm1, %v904_v1, %v905_v54  ;;  %v908_v40 = vsel %vm833_vm1, %v905_v54, %v907_v7  ;;  %v9135_v54 = vunpack.c.l.bf16 %v6675_v61 }
 0x172   : > { %v7084_v22 = vpop.f32.mrf.mxu1  ;;  %v7100_v23 = vpack.c.bf16 %v908_v40, %v906_v28  ;;  %v9137_v7 = vunpack.c.l.bf16 %v6678_v36  ;;  %v275_v36 = vld [vmem:[%s6196_s14 + $0xc8] sm:$0x1] }
 0x173   : > { %v1508_v62 = vadd.f32 %v1440_v4, %v1311_v14  ;;  %v909_v37 = vrot.slane %v9135_v54, 2  ;;  %v7125_v54 = vld [vmem:[%s6196_s14 + $0xc0] sm:$0xff]  }
 0x175   : > { %v7092_v47 = vadd.f32 %v1634_v31, %v1508_v62  ;;  %v912_v62 = vrot.slane %v9137_v7, 2 }
 0x176   : > { %v1058_v17 = vpop.f32.mrf.mxu2 }
 0x177   : > { %v1245_v38 = vpop.f32.mrf.mxu3  ;;  %v1125_v29 = vadd.f32 %v1058_v17, %v6889_v49 }
 0x178   : > { %v1445_v0 = vpop.f32.mrf.mxu0 }
 0x179   : > { %v1312_v21 = vadd.f32 %v1245_v38, %v1125_v29 }
 0x17a   : > { %v1639_v4 = vpop.f32.mrf.mxu1 }
 0x17b   : > { %1100 = vmatmul.bf16.gmra.mxu2 %v7069_v24  ;;  %v7104_v31 = vadd.f32 %v1442_v27, %v1312_v21  ;;  %1484 = vmatmul.bf16.gmra.mxu0 %v6668_v34 }
 0x17c   : > { %1287 = vmatmul.bf16.gmra.mxu3 %v6600_v26  ;;  %v9136_v26 = vunpack.c.h.bf16 %v6675_v61 }
 0x17d   : > { %1678 = vmatmul.bf16.gmra.mxu1 %v7100_v23 }
 0x17e   : > { %v1061_v3 = vpop.f32.mrf.mxu2  ;;  %v910_v27 = vrot.slane %v9136_v26, 2 }
 0x17f   : > { %v1248_v14 = vpop.f32.mrf.mxu3  ;;  %v1126_v49 = vadd.f32 %v1061_v3, %v6900_v30 }
 0x180   : > { %v1447_v1 = vpop.f32.mrf.mxu0  ;;  %v911_v30 = vsel %vm833_vm1, %v909_v37, %v910_v27  ;;  %v913_v33 = vsel %vm833_vm1, %v910_v27, %v912_v62 }
 0x181   : > { %v1313_v5 = vadd.f32 %v1248_v14, %v1126_v49  ;;  %v7122_v21 = vpack.c.bf16 %v913_v33, %v911_v30 }
 0x182   : > { %v7109_v6 = vpop.f32.mrf.mxu1 }
 0x183   : > { %9134 = vst [vmem:[#allocation58_spill] sm:$0xff] %v7109_v6  ;;  %v1510_v28 = vadd.f32 %v1445_v0, %v1313_v5  ;;  %v329_v5 = vunpack.c.l.bf16 %v275_v36 }
 0x185   : > { %v7117_v40 = vadd.f32 %v1639_v4, %v1510_v28  ;;  %v6073_v4 = vunpack.c.h.bf16 %v7125_v54  ;;  %v1341_v28 = vrot.slane %v329_v5, 1 }
 0x186   : > { %v1063_v17 = vpop.f32.mrf.mxu2 }
 0x187   : > { %v1250_v38 = vpop.f32.mrf.mxu3  ;;  %v1127_v29 = vadd.f32 %v1063_v17, %v6914_v19  ;;  %v6072_v19 = vunpack.c.l.bf16 %v7125_v54  ;;  %v1339_v62 = vrot.slane %v6073_v4, 1 }
 0x188   : > { %v1450_v14 = vpop.f32.mrf.mxu0 }
 0x189   : > { %v1314_v3 = vadd.f32 %v1250_v38, %v1127_v29  ;;  %v1338_v7 = vrot.slane %v6072_v19, 1  ;;  %v1532_v17 = vrot.slane %v6072_v19, 2  ;;  %v1533_v38 = vrot.slane %v6073_v4, 2 }
 0x18a   : > { %v1644_v49 = vpop.f32.mrf.mxu1  ;;  %v1535_v29 = vrot.slane %v329_v5, 2  ;;  %v7145_v36 = vsel %vm413_vm0, %v1339_v62, %v1341_v28 }
 0x18b   : > { %1105 = vmatmul.bf16.gmra.mxu2 %v7100_v23  ;;  %v7130_v0 = vadd.f32 %v1447_v1, %v1314_v3  ;;  %1489 = vmatmul.bf16.gmra.mxu0 %v6740_v57  ;;  %v7140_v6 = vsel %vm413_vm0, %v1338_v7, %v1339_v62  ;;  %9141 = vst [vmem:[#allocation62_spill] sm:$0xff] %v7145_v36 }
 0x18c   : > { %1292 = vmatmul.bf16.gmra.mxu3 %v6675_v61  ;;  %9140 = vst [vmem:[#allocation61_spill] sm:$0xff] %v7140_v6  ;;  %v7152_v19 = vpack.c.bf16 %v7145_v36, %v7140_v6 }
 0x18d   : > { %9138 = vst [vmem:[#allocation59_spill] sm:$0xff] %v7130_v0  ;;  %1683 = vmatmul.bf16.gmra.mxu1 %v7122_v21 }
 0x18e   : > { %v1066_v37 = vpop.f32.mrf.mxu2 }
 0x18f   : > { %v1253_v26 = vpop.f32.mrf.mxu3  ;;  %v1128_v27 = vadd.f32 %v1066_v37, %v6922_v51  ;;  %v1534_v51 = vsel %vm833_vm1, %v1532_v17, %v1533_v38  ;;  %v1536_v37 = vsel %vm833_vm1, %v1533_v38, %v1535_v29 }
 0x190   : > { %v1452_v33 = vpop.f32.mrf.mxu0 }
 0x191   : > { %v1315_v30 = vadd.f32 %v1253_v26, %v1128_v27 }
 0x192   : > { %v7137_v1 = vpop.f32.mrf.mxu1 }
 0x193   : > { %9139 = vst [vmem:[#allocation60_spill] sm:$0xff] %v7137_v1  ;;  %v1512_v3 = vadd.f32 %v1450_v14, %v1315_v30  ;;  %v7154_v14 = vpack.c.bf16 %v1536_v37, %v1534_v51 }
 0x195   : > { %v7142_v0 = vadd.f32 %v1644_v49, %v1512_v3 }
 0x196   : > { %v1068_v26 = vpop.f32.mrf.mxu2 }
 0x197   : > { %v1255_v27 = vpop.f32.mrf.mxu3  ;;  %v1129_v1 = vadd.f32 %v1068_v26, %v6942_v9 }
 0x198   : > { %v1455_v49 = vpop.f32.mrf.mxu0 }
 0x199   : > { %v1316_v4 = vadd.f32 %v1255_v27, %v1129_v1 }
 0x19a   : > { %v1649_v5 = vpop.f32.mrf.mxu1 }
 0x19b   : > { %1110 = vmatmul.bf16.gmra.mxu2 %v7122_v21  ;;  %v7158_v7 = vadd.f32 %v1452_v33, %v1316_v4  ;;  %1494 = vmatmul.bf16.gmra.mxu0 %v7152_v19  ;;  %v6113_v4 = vld [vmem:[%s6196_s14 + $0x18] sm:$0xff]  }
 0x19c   : > { %1297 = vmatmul.bf16.gmra.mxu3 %v7125_v54 }
 0x19d   : > { %1688 = vmatmul.bf16.gmra.mxu1 %v7154_v14 }
 0x19e   : > { %v1071_v9 = vpop.f32.mrf.mxu2 }
 0x19f   : > { %v1258_v62 = vpop.f32.mrf.mxu3  ;;  %v1130_v28 = vadd.f32 %v1071_v9, %v6953_v20 }
 0x1a0   : > { %v1457_v17 = vpop.f32.mrf.mxu0 }
 0x1a1   : > { %v1317_v30 = vadd.f32 %v1258_v62, %v1130_v28 }
 0x1a2   : > { %v7163_v1 = vpop.f32.mrf.mxu1 }
 0x1a3   : > { %v1514_v38 = vadd.f32 %v1455_v49, %v1317_v30 }
 0x1a5   : > { %v7165_v29 = vadd.f32 %v1649_v5, %v1514_v38 }
 0x1a6   : > { %v1073_v3 = vpop.f32.mrf.mxu2 }
 0x1a7   : > { %v1260_v51 = vpop.f32.mrf.mxu3  ;;  %v1131_v33 = vadd.f32 %v1073_v3, %v6967_v10 }
 0x1a8   : > { %v1460_v26 = vpop.f32.mrf.mxu0 }
 0x1a9   : > { %v1318_v37 = vadd.f32 %v1260_v51, %v1131_v33 }
 0x1aa   : > { %v1654_v27 = vpop.f32.mrf.mxu1 }
 0x1ab   : > { %1800 = vmatmul.bf16.vlgmr.msra.gmra.mxu2 %v6113_v4  ;;  %v7170_v36 = vadd.f32 %v1457_v17, %v1318_v37  ;;  %2191 = vmatmul.bf16.vlgmr.msra.gmra.mxu0 %v6793_v15 }
 0x1ac   : > { %1997 = vmatmul.bf16.vlgmr.msra.gmra.mxu3 %v6405_v46 }
 0x1ae   : > { %v1076_v20 = vpop.f32.mrf.mxu2 }
 0x1af   : > { %v1263_v9 = vpop.f32.mrf.mxu3  ;;  %v1132_v49 = vadd.f32 %v1076_v20, %v6776_v39  ;;  %v9142_v39 = vld [vmem:[#allocation41_spill] sm:$0xff] }
 0x1b0   : > { %v1462_v62 = vpop.f32.mrf.mxu0 }
 0x1b1   : > { %v1319_v5 = vadd.f32 %v1263_v9, %v1132_v49 }
 0x1b2   : > { %v7174_v30 = vpop.f32.mrf.mxu1 }
 0x1b3   : > { %v1516_v28 = vadd.f32 %v1460_v26, %v1319_v5 }
 0x1b5   : > { %v7176_v10 = vadd.f32 %v1654_v27, %v1516_v28  ;;  %v9143_v27 = vld [vmem:[#allocation39_spill] sm:$0xff] }
 0x1b6   : > { %v1078_v38 = vpop.f32.mrf.mxu2 }
 0x1b7   : > { %v1265_v3 = vpop.f32.mrf.mxu3  ;;  %v1133_v51 = vadd.f32 %v1078_v38, %v6791_v45 }
 0x1b8   : > { %v1465_v17 = vpop.f32.mrf.mxu0 }
 0x1b9   : > { %v1320_v46 = vadd.f32 %v1265_v3, %v1133_v51  ;;  %v6114_v51 = vld [vmem:[%s6196_s14 + $0x30] sm:$0xff]  }
 0x1ba   : > { %v1659_v33 = vpop.f32.mrf.mxu1 }
 0x1bb   : > { %1805 = vmatmul.bf16.gmra.mxu2 %v6414_v55  ;;  %v7181_v15 = vadd.f32 %v1462_v62, %v1320_v46  ;;  %2196 = vmatmul.bf16.gmra.mxu0 %v9142_v39  ;;  %v9144_v55 = vld [vmem:[#allocation40_spill] sm:$0xff] }
 0x1bc   : > { %2002 = vmatmul.bf16.gmra.mxu3 %v6468_v58  ;;  %v9146_v46 = vld [vmem:[#allocation24_spill] sm:$0xff] }
 0x1be   : > { %v1081_v37 = vpop.f32.mrf.mxu2 }
 0x1bf   : > { %v1268_v26 = vpop.f32.mrf.mxu3  ;;  %v1134_v4 = vadd.f32 %v1081_v37, %v9143_v27 }
 0x1c0   : > { %v1467_v9 = vpop.f32.mrf.mxu0 }
 0x1c1   : > { %v1321_v20 = vadd.f32 %v1268_v26, %v1134_v4 }
 0x1c2   : > { %v7188_v58 = vpop.f32.mrf.mxu1 }
 0x1c3   : > { %v1518_v49 = vadd.f32 %v1465_v17, %v1321_v20  ;;  %9145 = vst [vmem:[#allocation41_spill] sm:$0xff] %v7188_v58  ;;  %v6115_v58 = vld [vmem:[%s6196_s14 + $0x48] sm:$0xff]  }
 0x1c5   : > { %v7185_v45 = vadd.f32 %v1659_v33, %v1518_v49  ;;  %v9147_v33 = vld [vmem:[#allocation42_spill] sm:$0xff] }
 0x1c6   : > { %v1083_v5 = vpop.f32.mrf.mxu2 }
 0x1c7   : > { %v1270_v28 = vpop.f32.mrf.mxu3  ;;  %v1135_v38 = vadd.f32 %v1083_v5, %v9144_v55 }
 0x1c8   : > { %v1470_v3 = vpop.f32.mrf.mxu0 }
 0x1c9   : > { %v1322_v62 = vadd.f32 %v1270_v28, %v1135_v38  ;;  %v9148_v38 = vld [vmem:[#allocation43_spill] sm:$0xff] }
 0x1ca   : > { %v1664_v20 = vpop.f32.mrf.mxu1 }
 0x1cb   : > { %1810 = vmatmul.bf16.gmra.mxu2 %v6114_v51  ;;  %v7192_v39 = vadd.f32 %v1467_v9, %v1322_v62  ;;  %2201 = vmatmul.bf16.gmra.mxu0 %v6845_v8  ;;  %v9149_v8 = vld [vmem:[#allocation29_spill] sm:$0xff]  ;;  %v9150_v62 = vld [vmem:[#allocation46_spill] sm:$0xff] }
 0x1cc   : > { %2007 = vmatmul.bf16.gmra.mxu3 %v9146_v46 }
 0x1ce   : > { %v1086_v37 = vpop.f32.mrf.mxu2 }
 0x1cf   : > { %v1273_v17 = vpop.f32.mrf.mxu3  ;;  %v1136_v26 = vadd.f32 %v1086_v37, %v9147_v33 }
 0x1d0   : > { %v1472_v4 = vpop.f32.mrf.mxu0 }
 0x1d1   : > { %v1323_v27 = vadd.f32 %v1273_v17, %v1136_v26 }
 0x1d3   : > { %v1520_v49 = vadd.f32 %v1470_v3, %v1323_v27  ;;  %v9151_v3 = vld [vmem:[#allocation44_spill] sm:$0xff] }
 0x1d5   : > { %v7196_v5 = vadd.f32 %v1664_v20, %v1520_v49 }
 0x1d6   : > { %v1088_v28 = vpop.f32.mrf.mxu2 }
 0x1d7   : > { %v1275_v55 = vpop.f32.mrf.mxu3  ;;  %v1137_v51 = vadd.f32 %v1088_v28, %v9148_v38 }
 0x1d8   : > { %v1475_v46 = vpop.f32.mrf.mxu0 }
 0x1d9   : > { %v1324_v6 = vadd.f32 %v1275_v55, %v1137_v51  ;;  %v9152_v55 = vld [vmem:[#allocation45_spill] sm:$0xff] }
 0x1db   : > { %1815 = vmatmul.bf16.gmra.mxu2 %v6540_v16  ;;  %v7201_v9 = vadd.f32 %v1472_v4, %v1324_v6  ;;  %2206 = vmatmul.bf16.gmra.mxu0 %v9150_v62  ;;  %v9153_v6 = vld [vmem:[#allocation34_spill] sm:$0xff] }
 0x1dc   : > { %2012 = vmatmul.bf16.gmra.mxu3 %v9149_v8 }
 0x1de   : > { %v1091_v37 = vpop.f32.mrf.mxu2 }
 0x1df   : > { %v1278_v17 = vpop.f32.mrf.mxu3  ;;  %v1138_v33 = vadd.f32 %v1091_v37, %v9151_v3  ;;  %v9154_v37 = vld [vmem:[#allocation47_spill] sm:$0xff] }
 0x1e0   : > { %v1477_v27 = vpop.f32.mrf.mxu0 }
 0x1e1   : > { %v1325_v26 = vadd.f32 %v1278_v17, %v1138_v33 }
 0x1e3   : > { %v7205_v20 = vadd.f32 %v1475_v46, %v1325_v26 }
 0x1e6   : > { %v1093_v49 = vpop.f32.mrf.mxu2 }
 0x1e7   : > { %v1280_v28 = vpop.f32.mrf.mxu3  ;;  %v1139_v38 = vadd.f32 %v1093_v49, %v9152_v55 }
 0x1e8   : > { %v1480_v16 = vpop.f32.mrf.mxu0 }
 0x1e9   : > { %v1326_v51 = vadd.f32 %v1280_v28, %v1139_v38  ;;  %v9156_v28 = vld [vmem:[#allocation48_spill] sm:$0xff] }
 0x1eb   : > { %1820 = vmatmul.bf16.gmra.mxu2 %v6115_v58  ;;  %v7210_v4 = vadd.f32 %v1477_v27, %v1326_v51  ;;  %2211 = vmatmul.bf16.gmra.mxu0 %v6898_v25  ;;  %v9158_v27 = vld [vmem:[#allocation51_spill] sm:$0xff] }
 0x1ec   : > { %2017 = vmatmul.bf16.gmra.mxu3 %v9153_v6 }
 0x1ee   : > { %v1096_v8 = vpop.f32.mrf.mxu2 }
 0x1ef   : > { %v1283_v62 = vpop.f32.mrf.mxu3  ;;  %v1140_v17 = vadd.f32 %v1096_v8, %v9154_v37  ;;  %v9159_v8 = vld [vmem:[#allocation49_spill] sm:$0xff] }
 0x1f0   : > { %v1482_v3 = vpop.f32.mrf.mxu0 }
 0x1f1   : > { %v1327_v46 = vadd.f32 %v1283_v62, %v1140_v17 }
 0x1f3   : > { %v7214_v33 = vadd.f32 %v1480_v16, %v1327_v46 }
 0x1f5   : > { %9155 = vst [vmem:[#allocation39_spill] sm:$0xff] %v7214_v33  ;;  %v6116_v33 = vld [vmem:[%s6196_s14 + $0x60] sm:$0xff]  }
 0x1f6   : > { %v1098_v26 = vpop.f32.mrf.mxu2 }
 0x1f7   : > { %v1285_v49 = vpop.f32.mrf.mxu3  ;;  %v1141_v55 = vadd.f32 %v1098_v26, %v9156_v28 }
 0x1f8   : > { %v1485_v58 = vpop.f32.mrf.mxu0 }
 0x1f9   : > { %v1328_v38 = vadd.f32 %v1285_v49, %v1141_v55  ;;  %v9161_v49 = vld [vmem:[#allocation50_spill] sm:$0xff] }
 0x1fb   : > { %1825 = vmatmul.bf16.gmra.mxu2 %v6681_v63  ;;  %v7219_v25 = vadd.f32 %v1482_v3, %v1328_v38  ;;  %2216 = vmatmul.bf16.gmra.mxu0 %v9158_v27  ;;  %v9164_v38 = vld [vmem:[#allocation54_spill] sm:$0xff] }
 0x1fc   : > { %2022 = vmatmul.bf16.gmra.mxu3 %v6744_v60  ;;  %v9162_v60 = vld [vmem:[#allocation5_spill] sm:$0xff] }
 0x1fd   : > { %9157 = vst [vmem:[#allocation40_spill] sm:$0xff] %v7219_v25  ;;  %v9168_v25 = vld [vmem:[#allocation6_spill] sm:$0xff] }
 0x1fe   : > { %v1101_v51 = vpop.f32.mrf.mxu2 }
 0x1ff   : > { %v1288_v6 = vpop.f32.mrf.mxu3  ;;  %v1142_v16 = vadd.f32 %v1101_v51, %v9159_v8 }
 0x200   : > { %v1487_v37 = vpop.f32.mrf.mxu0 }
 0x201   : > { %v1329_v62 = vadd.f32 %v1288_v6, %v1142_v16  ;;  %v9165_v6 = vld [vmem:[#allocation52_spill] sm:$0xff] }
 0x203   : > { %v7223_v17 = vadd.f32 %v1485_v58, %v1329_v62 }
 0x205   : > { %9160 = vst [vmem:[#allocation24_spill] sm:$0xff] %v7223_v17 }
 0x206   : > { %v1103_v46 = vpop.f32.mrf.mxu2 }
 0x207   : > { %v1290_v26 = vpop.f32.mrf.mxu3  ;;  %v1143_v28 = vadd.f32 %v1103_v46, %v9161_v49 }
 0x208   : > { %v1490_v63 = vpop.f32.mrf.mxu0 }
 0x209   : > { %v1330_v55 = vadd.f32 %v1290_v26, %v1143_v28  ;;  %v9167_v26 = vld [vmem:[#allocation53_spill] sm:$0xff] }
 0x20b   : > { %1830 = vmatmul.bf16.gmra.mxu2 %v6116_v33  ;;  %v7228_v3 = vadd.f32 %v1487_v37, %v1330_v55  ;;  %2221 = vmatmul.bf16.gmra.mxu0 %v9164_v38  ;;  %v9169_v37 = vld [vmem:[#allocation11_spill] sm:$0xff] }
 0x20c   : > { %2027 = vmatmul.bf16.gmra.mxu3 %v9162_v60 }
 0x20d   : > { %9163 = vst [vmem:[#allocation42_spill] sm:$0xff] %v7228_v3 }
 0x20e   : > { %v1106_v27 = vpop.f32.mrf.mxu2 }
 0x20f   : > { %v1293_v51 = vpop.f32.mrf.mxu3  ;;  %v1144_v8 = vadd.f32 %v1106_v27, %v9165_v6  ;;  %v9171_v27 = vld [vmem:[#allocation55_spill] sm:$0xff] }
 0x210   : > { %v1492_v16 = vpop.f32.mrf.mxu0 }
 0x211   : > { %v1331_v58 = vadd.f32 %v1293_v51, %v1144_v8 }
 0x213   : > { %v7232_v62 = vadd.f32 %v1490_v63, %v1331_v58 }
 0x215   : > { %9166 = vst [vmem:[#allocation43_spill] sm:$0xff] %v7232_v62  ;;  %v6117_v62 = vld [vmem:[%s6196_s14 + $0x78] sm:$0xff]  }
 0x216   : > { %v1108_v17 = vpop.f32.mrf.mxu2 }
 0x217   : > { %v1295_v46 = vpop.f32.mrf.mxu3  ;;  %v1145_v49 = vadd.f32 %v1108_v17, %v9167_v26 }
 0x218   : > { %v1495_v33 = vpop.f32.mrf.mxu0 }
 0x219   : > { %v1332_v28 = vadd.f32 %v1295_v46, %v1145_v49  ;;  %v9173_v46 = vld [vmem:[#allocation56_spill] sm:$0xff] }
 0x21b   : > { %1835 = vmatmul.bf16.gmra.mxu2 %v9168_v25  ;;  %v7237_v55 = vadd.f32 %v1492_v16, %v1332_v28  ;;  %2226 = vmatmul.bf16.gmra.mxu0 %v6973_v32 }
 0x21c   : > { %2032 = vmatmul.bf16.gmra.mxu3 %v9169_v37 }
 0x21d   : > { %9170 = vst [vmem:[#allocation29_spill] sm:$0xff] %v7237_v55 }
 0x21e   : > { %v1111_v60 = vpop.f32.mrf.mxu2 }
 0x21f   : > { %v1298_v38 = vpop.f32.mrf.mxu3  ;;  %v1146_v63 = vadd.f32 %v1111_v60, %v9171_v27 }
 0x220   : > { %v1497_v6 = vpop.f32.mrf.mxu0 }
 0x221   : > { %v1333_v51 = vadd.f32 %v1298_v38, %v1146_v63 }
 0x223   : > { %v7241_v8 = vadd.f32 %v1495_v33, %v1333_v51  ;;  %v9175_v51 = vld [vmem:[#allocation57_spill] sm:$0xff] }
 0x225   : > { %9172 = vst [vmem:[#allocation46_spill] sm:$0xff] %v7241_v8 }
 0x226   : > { %v1113_v17 = vpop.f32.mrf.mxu2 }
 0x227   : > { %v1300_v58 = vpop.f32.mrf.mxu3  ;;  %v1147_v26 = vadd.f32 %v1113_v17, %v9173_v46 }
 0x228   : > { %v2192_v25 = vpop.f32.mrf.mxu0 }
 0x229   : > { %v1334_v49 = vadd.f32 %v1300_v58, %v1147_v26 }
 0x22b   : > { %1840 = vmatmul.bf16.gmra.mxu2 %v6117_v62  ;;  %v7246_v16 = vadd.f32 %v1497_v6, %v1334_v49  ;;  %2231 = vmatmul.bf16.gmra.mxu0 %v7000_v12 }
 0x22c   : > { %2037 = vmatmul.bf16.gmra.mxu3 %v6401_v44 }
 0x22d   : > { %9174 = vst [vmem:[#allocation44_spill] sm:$0xff] %v7246_v16 }
 0x22e   : > { %v1801_v32 = vpop.f32.mrf.mxu2 }
 0x22f   : > { %v1998_v28 = vpop.f32.mrf.mxu3  ;;  %v1881_v37 = vadd.f32 %v1801_v32, %v6992_v41 }
 0x230   : > { %v2194_v60 = vpop.f32.mrf.mxu0 }
 0x231   : > { %v2078_v33 = vadd.f32 %v1998_v28, %v1881_v37 }
 0x233   : > { %v7250_v38 = vadd.f32 %v2192_v25, %v2078_v33 }
 0x236   : > { %v1803_v27 = vpop.f32.mrf.mxu2 }
 0x237   : > { %v2000_v63 = vpop.f32.mrf.mxu3  ;;  %v1882_v17 = vadd.f32 %v1803_v27, %v9175_v51 }
 0x238   : > { %v2197_v62 = vpop.f32.mrf.mxu0 }
 0x239   : > { %v2079_v58 = vadd.f32 %v2000_v63, %v1882_v17 }
 0x23b   : > { %v7253_v46 = vadd.f32 %v2194_v60, %v2079_v58  ;;  %1845 = vmatmul.bf16.gmra.mxu2 %v6408_v53  ;;  %2236 = vmatmul.bf16.gmra.mxu0 %v7020_v50  ;;  %v6118_v53 = vld [vmem:[%s6196_s14 + $0x90] sm:$0xff]  }
 0x23c   : > { %2042 = vmatmul.bf16.gmra.mxu3 %v6464_v59 }
 0x23e   : > { %v1806_v41 = vpop.f32.mrf.mxu2 }
 0x23f   : > { %v2003_v44 = vpop.f32.mrf.mxu3  ;;  %v1883_v12 = vadd.f32 %v1806_v41, %v7015_v13 }
 0x240   : > { %v2199_v26 = vpop.f32.mrf.mxu0 }
 0x241   : > { %v2080_v6 = vadd.f32 %v2003_v44, %v1883_v12 }
 0x243   : > { %v7259_v49 = vadd.f32 %v2197_v62, %v2080_v6 }
 0x246   : > { %v1808_v25 = vpop.f32.mrf.mxu2 }
 0x247   : > { %v2005_v32 = vpop.f32.mrf.mxu3  ;;  %v1884_v28 = vadd.f32 %v1808_v25, %v7029_v35  ;;  %v5981_v35 = vld [vmem:[%s8937_s3 + $0x78] sm:$0xff] }
 0x248   : > { %v2202_v33 = vpop.f32.mrf.mxu0  ;;  %2845 = vmatpush.bf16.msra.mxu1 %v5981_v35 }
 0x249   : > { %v2081_v37 = vadd.f32 %v2005_v32, %v1884_v28 }
 0x24b   : > { %v7262_v60 = vadd.f32 %v2199_v26, %v2081_v37  ;;  %1850 = vmatmul.bf16.gmra.mxu2 %v6118_v53  ;;  %2241 = vmatmul.bf16.gmra.mxu0 %v7049_v2 }
 0x24c   : > { %2047 = vmatmul.bf16.gmra.mxu3 %v6527_v48 }
 0x24e   : > { %v1811_v59 = vpop.f32.mrf.mxu2 }
 0x24f   : > { %v2008_v13 = vpop.f32.mrf.mxu3  ;;  %v1885_v50 = vadd.f32 %v1811_v59, %v7041_v56 }
 0x250   : > { %v2204_v63 = vpop.f32.mrf.mxu0 }
 0x251   : > { %v2082_v27 = vadd.f32 %v2008_v13, %v1885_v50 }
 0x253   : > { %v7271_v51 = vadd.f32 %v2202_v33, %v2082_v27 }
 0x256   : > { %v1813_v17 = vpop.f32.mrf.mxu2 }
 0x257   : > { %v2010_v58 = vpop.f32.mrf.mxu3  ;;  %v1886_v62 = vadd.f32 %v1813_v17, %v7055_v43 }
 0x258   : > { %v2207_v41 = vpop.f32.mrf.mxu0 }
 0x259   : > { %v2083_v48 = vadd.f32 %v2010_v58, %v1886_v62 }
 0x25b   : > { %v7274_v2 = vadd.f32 %v2204_v63, %v2083_v48  ;;  %1855 = vmatmul.bf16.gmra.mxu2 %v6534_v18  ;;  %2246 = vmatmul.bf16.gmra.mxu0 %v7069_v24  ;;  %v6119_v18 = vld [vmem:[%s6196_s14 + $0xa8] sm:$0xff]  }
 0x25c   : > { %2052 = vmatmul.bf16.gmra.mxu3 %v6593_v52 }
 0x25e   : > { %v1816_v56 = vpop.f32.mrf.mxu2 }
 0x25f   : > { %v2013_v44 = vpop.f32.mrf.mxu3  ;;  %v1887_v12 = vadd.f32 %v1816_v56, %v7064_v11 }
 0x260   : > { %v2209_v26 = vpop.f32.mrf.mxu0 }
 0x261   : > { %v2084_v6 = vadd.f32 %v2013_v44, %v1887_v12  ;;  %v276_v44 = vld [vmem:[%s6196_s14 + $0xcc] sm:$0xff]  }
 0x263   : > { %v7280_v25 = vadd.f32 %v2207_v41, %v2084_v6 }
 0x266   : > { %v1818_v43 = vpop.f32.mrf.mxu2 }
 0x267   : > { %v2015_v32 = vpop.f32.mrf.mxu3  ;;  %v1888_v28 = vadd.f32 %v1818_v43, %v7078_v42  ;;  %v5980_v42 = vld [vmem:[%s8937_s3 + $0x70] sm:$0xff] }
 0x268   : > { %v2212_v33 = vpop.f32.mrf.mxu0  ;;  %2846 = vmatpush.bf16.msra.mxu1 %v5980_v42 }
 0x269   : > { %v2085_v37 = vadd.f32 %v2015_v32, %v1888_v28 }
 0x26b   : > { %v7283_v53 = vadd.f32 %v2209_v26, %v2085_v37  ;;  %1860 = vmatmul.bf16.gmra.mxu2 %v6119_v18  ;;  %2251 = vmatmul.bf16.gmra.mxu0 %v7100_v23 }
 0x26c   : > { %2057 = vmatmul.bf16.gmra.mxu3 %v6668_v34 }
 0x26e   : > { %v1821_v52 = vpop.f32.mrf.mxu2 }
 0x26f   : > { %v2018_v11 = vpop.f32.mrf.mxu3  ;;  %v1889_v24 = vadd.f32 %v1821_v52, %v7092_v47 }
 0x270   : > { %v7289_v13 = vpop.f32.mrf.mxu0 }
 0x271   : > { %v2086_v59 = vadd.f32 %v2018_v11, %v1889_v24 }
 0x273   : > { %v7294_v50 = vadd.f32 %v2212_v33, %v2086_v59 }
 0x276   : > { %v7296_v27 = vpop.f32.mrf.mxu2 }
 0x277   : > { %v7298_v34 = vpop.f32.mrf.mxu3 }
 0x278   : > { %v2217_v23 = vpop.f32.mrf.mxu0 }
 0x27b   : > { %1865 = vmatmul.bf16.gmra.mxu2 %v6675_v61  ;;  %2256 = vmatmul.bf16.gmra.mxu0 %v7122_v21  ;;  %v278_v61 = vld [vmem:[%s6196_s14 + $0xd4] sm:$0x1] }
 0x27c   : > { %2062 = vmatmul.bf16.gmra.mxu3 %v6740_v57  ;;  %v330_v57 = vunpack.c.l.bf16 %v276_v44  ;;  %v332_v21 = vunpack.c.l.bf16 %v278_v61 }
 0x27e   : > { %v1826_v47 = vpop.f32.mrf.mxu2  ;;  %v1916_v43 = vrot.slane %v330_v57, 1  ;;  %v1919_v28 = vrot.slane %v332_v21, 1  ;;  %v2110_v18 = vrot.slane %v330_v57, 2 }
 0x27f   : > { %v2023_v63 = vpop.f32.mrf.mxu3  ;;  %v1891_v35 = vadd.f32 %v1826_v47, %v7117_v40  ;;  %v331_v40 = vunpack.c.h.bf16 %v276_v44 }
 0x280   : > { %v7304_v58 = vpop.f32.mrf.mxu0 }
 0x281   : > { %v2088_v17 = vadd.f32 %v2023_v63, %v1891_v35  ;;  %v1917_v32 = vrot.slane %v331_v40, 1  ;;  %v2111_v52 = vrot.slane %v331_v40, 2 }
 0x283   : > { %v7306_v62 = vadd.f32 %v2217_v23, %v2088_v17  ;;  %v1918_v11 = vsel %vm413_vm0, %v1916_v43, %v1917_v32  ;;  %v2112_v24 = vsel %vm833_vm1, %v2110_v18, %v2111_v52 }
 0x286   : > { %v7308_v48 = vpop.f32.mrf.mxu2 }
 0x287   : > { %v7310_v41 = vpop.f32.mrf.mxu3 }
 0x288   : > { %v2222_v56 = vpop.f32.mrf.mxu0 }
 0x28b   : > { %1870 = vmatmul.bf16.gmra.mxu2 %v7125_v54  ;;  %2261 = vmatmul.bf16.gmra.mxu0 %v7154_v14  ;;  %v2113_v54 = vrot.slane %v332_v21, 2 }
 0x28c   : > { %2067 = vmatmul.bf16.gmra.mxu3 %v7152_v19  ;;  %v5979_v19 = vld [vmem:[%s8937_s3 + $0x68] sm:$0xff] }
 0x28d   : > { %2847 = vmatpush.bf16.msra.mxu1 %v5979_v19  ;;  %v2114_v59 = vsel %vm833_vm1, %v2111_v52, %v2113_v54 }
 0x28e   : > { %v1831_v12 = vpop.f32.mrf.mxu2  ;;  %v2117_v63 = vpack.c.bf16 %v2114_v59, %v2112_v24 }
 0x28f   : > { %v2028_v6 = vpop.f32.mrf.mxu3  ;;  %v1893_v26 = vadd.f32 %v1831_v12, %v7142_v0  ;;  %v1920_v0 = vsel %vm413_vm0, %v1917_v32, %v1919_v28 }
 0x290   : > { %v7318_v33 = vpop.f32.mrf.mxu0  ;;  %v1923_v47 = vpack.c.bf16 %v1920_v0, %v1918_v11  ;;  %v7354_v11 = vpop.f32.mrf.mxu1 }
 0x291   : > { %v2090_v37 = vadd.f32 %v2028_v6, %v1893_v26 }
 0x293   : > { %v7323_v14 = vadd.f32 %v2222_v56, %v2090_v37 }
 0x296   : > { %v7329_v42 = vpop.f32.mrf.mxu2 }
 0x297   : > { %v7331_v23 = vpop.f32.mrf.mxu3 }
 0x298   : > { %v2227_v35 = vpop.f32.mrf.mxu0 }
 0x29b   : > { %1875 = vmatmul.bf16.gmra.mxu2 %v276_v44  ;;  %2266 = vmatmul.bf16.gmra.mxu0 %v2117_v63 }
 0x29c   : > { %2072 = vmatmul.bf16.gmra.mxu3 %v1923_v47 }
 0x29e   : > { %v1836_v17 = vpop.f32.mrf.mxu2 }
 0x29f   : > { %v2033_v56 = vpop.f32.mrf.mxu3  ;;  %v1895_v61 = vadd.f32 %v1836_v17, %v7165_v29  ;;  %v5978_v29 = vld [vmem:[%s8937_s3 + $0x60] sm:$0xff] }
 0x2a0   : > { %v7334_v40 = vpop.f32.mrf.mxu0  ;;  %2848 = vmatpush.bf16.msra.mxu1 %v5978_v29  ;;  %v5977_v29 = vld [vmem:[%s8937_s3 + $0x58] sm:$0xff] }
 0x2a1   : > { %v2092_v57 = vadd.f32 %v2033_v56, %v1895_v61  ;;  %v7365_v56 = vpop.f32.mrf.mxu1 }
 0x2a3   : > { %v7336_v21 = vadd.f32 %v2227_v35, %v2092_v57 }
 0x2a4   : > { %2849 = vmatpush.bf16.msra.mxu1 %v5977_v29 }
 0x2a6   : > { %v7338_v12 = vpop.f32.mrf.mxu2 }
 0x2a7   : > { %v7340_v6 = vpop.f32.mrf.mxu3 }
 0x2a8   : > { %v2232_v26 = vpop.f32.mrf.mxu0 }
 0x2ae   : > { %v1841_v43 = vpop.f32.mrf.mxu2 }
 0x2af   : > { %v2038_v32 = vpop.f32.mrf.mxu3  ;;  %v1897_v44 = vadd.f32 %v1841_v43, %v7176_v10 }
 0x2b0   : > { %v7343_v37 = vpop.f32.mrf.mxu0 }
 0x2b1   : > { %v2094_v28 = vadd.f32 %v2038_v32, %v1897_v44  ;;  %v7373_v32 = vpop.f32.mrf.mxu1 }
 0x2b3   : > { %v7348_v18 = vadd.f32 %v2232_v26, %v2094_v28 }
 0x2b6   : > { %v7350_v52 = vpop.f32.mrf.mxu2 }
 0x2b7   : > { %v7352_v54 = vpop.f32.mrf.mxu3 }
 0x2b8   : > { %v2237_v19 = vpop.f32.mrf.mxu0 }
 0x2b9   : > { %v7427_v8 = vpop.f32.mrf.mxu1 }
 0x2be   : > { %v1846_v0 = vpop.f32.mrf.mxu2 }
 0x2bf   : > { %v2043_v24 = vpop.f32.mrf.mxu3  ;;  %v1899_v10 = vadd.f32 %v1846_v0, %v7185_v45  ;;  %v7371_v45 = vld [vmem:[%s8936_s2] ss:$0 sm:$0xff] }
 0x2c0   : > { %v7357_v47 = vpop.f32.mrf.mxu0 }
 0x2c1   : > { %v2096_v59 = vadd.f32 %v2043_v24, %v1899_v10  ;;  %v7392_v24 = vadd.f32 %v7371_v45, %v7259_v49  ;;  %v1703_v10 = vadd.f32 %v7084_v22, %v7104_v31  ;;  %v7413_v22 = vadd.f32 %v7371_v45, %v7271_v51  ;;  %v9178_v31 = vld [vmem:[#allocation59_spill] sm:$0xff] }
 0x2c3   : > { %v7359_v63 = vadd.f32 %v2237_v19, %v2096_v59  ;;  %v7382_v19 = vadd.f32 %v7371_v45, %v7253_v46  ;;  %v7400_v46 = vadd.f32 %v7371_v45, %v7262_v60 }
 0x2c5   : > { %9176 = vst [vmem:[#allocation45_spill] sm:$0xff] %v7382_v19  ;;  %v2378_v59 = vmul.f32 %v7382_v19, %v7382_v19 }
 0x2c6   : > { %v7361_v35 = vpop.f32.mrf.mxu2 }
 0x2c7   : > { %v7363_v17 = vpop.f32.mrf.mxu3 }
 0x2c8   : > { %v2242_v61 = vpop.f32.mrf.mxu0 }
 0x2ce   : > { %v1851_v57 = vpop.f32.mrf.mxu2 }
 0x2cf   : > { %v2048_v26 = vpop.f32.mrf.mxu3  ;;  %v1901_v43 = vadd.f32 %v1851_v57, %v7196_v5  ;;  %v7388_v5 = vadd.f32 %v7371_v45, %v7250_v38  ;;  %v1890_v38 = vadd.f32 %v7296_v27, %v1703_v10  ;;  %v2380_v27 = vmul.f32 %v7400_v46, %v7400_v46 }
 0x2d0   : > { %v7375_v28 = vpop.f32.mrf.mxu0  ;;  %v7425_v10 = vadd.f32 %v7371_v45, %v7274_v2 }
 0x2d1   : > { %v2098_v44 = vadd.f32 %v2048_v26, %v1901_v43  ;;  %9177 = vst [vmem:[#allocation34_spill] sm:$0xff] %v7388_v5  ;;  %v2377_v49 = vmul.f32 %v7388_v5, %v7388_v5  ;;  %v2379_v26 = vmul.f32 %v7392_v24, %v7392_v24  ;;  %v9179_v43 = vld [vmem:[#allocation58_spill] sm:$0xff]  ;;  %v2340_v29 = vadd.f32 %v7382_v19, %v7388_v5 }
 0x2d2   : > { %v1705_v60 = vadd.f32 %v9179_v43, %v9178_v31  ;;  %v2087_v51 = vadd.f32 %v7298_v34, %v1890_v38  ;;  %v2381_v19 = vmul.f32 %v7413_v22, %v7413_v22  ;;  %v7438_v5 = vadd.f32 %v7371_v45, %v7280_v25 }
 0x2d3   : > { %v7384_v0 = vadd.f32 %v2242_v61, %v2098_v44  ;;  %v2409_v16 = vadd.f32 %v2378_v59, %v2377_v49  ;;  %v2341_v31 = vadd.f32 %v2340_v29, %v7392_v24  ;;  %v9180_v59 = vld [vmem:[#allocation60_spill] sm:$0xff]  ;;  %v2382_v34 = vmul.f32 %v7425_v10, %v7425_v10 }
 0x2d4   : > { %v1892_v55 = vadd.f32 %v7308_v48, %v1705_v60  ;;  %v1707_v49 = vadd.f32 %v9180_v59, %v7158_v7  ;;  %v2281_v7 = vadd.f32 %v7289_v13, %v2087_v51  ;;  %v7475_v59 = vpop.f32.mrf.mxu1 }
 0x2d5   : > { %v2410_v43 = vadd.f32 %v2409_v16, %v2379_v26  ;;  %v2342_v2 = vadd.f32 %v2341_v31, %v7400_v46  ;;  %v7449_v16 = vadd.f32 %v7371_v45, %v7283_v53  ;;  %v7459_v31 = vadd.f32 %v7371_v45, %v7294_v50 }
 0x2d6   : > { %v7402_v61 = vpop.f32.mrf.mxu2  ;;  %v2089_v26 = vadd.f32 %v7310_v41, %v1892_v55  ;;  %v1894_v25 = vadd.f32 %v7329_v42, %v1707_v49  ;;  %v1709_v53 = vadd.f32 %v7163_v1, %v7170_v36  ;;  %v7481_v49 = vadd.f32 %v7371_v45, %v7306_v62 }
 0x2d7   : > { %v7404_v57 = vpop.f32.mrf.mxu3  ;;  %v2411_v3 = vadd.f32 %v2410_v43, %v2380_v27  ;;  %v2343_v60 = vadd.f32 %v2342_v2, %v7413_v22  ;;  %v2383_v27 = vmul.f32 %v7438_v5, %v7438_v5  ;;  %v2384_v41 = vmul.f32 %v7449_v16, %v7449_v16 }
 0x2d8   : > { %v7417_v44 = vpop.f32.mrf.mxu0  ;;  %v2283_v42 = vadd.f32 %v7304_v58, %v2089_v26  ;;  %v1896_v51 = vadd.f32 %v7338_v12, %v1709_v53  ;;  %v2385_v1 = vmul.f32 %v7459_v31, %v7459_v31  ;;  %v1711_v2 = vadd.f32 %v7174_v30, %v7181_v15 }
 0x2d9   : > { %v2412_v29 = vadd.f32 %v2411_v3, %v2381_v19  ;;  %v2344_v13 = vadd.f32 %v2343_v60, %v7425_v10  ;;  %v7469_v3 = vadd.f32 %v7371_v45, %v2281_v7  ;;  %v2091_v19 = vadd.f32 %v7331_v23, %v1894_v25 }
 0x2da   : > { %v7491_v26 = vadd.f32 %v7371_v45, %v2283_v42  ;;  %v2093_v62 = vadd.f32 %v7340_v6, %v1896_v51  ;;  %v1898_v60 = vadd.f32 %v7350_v52, %v1711_v2 }
 0x2db   : > { %v2413_v55 = vadd.f32 %v2412_v29, %v2382_v34  ;;  %v2345_v50 = vadd.f32 %v2344_v13, %v7438_v5  ;;  %v2386_v12 = vmul.f32 %v7469_v3, %v7469_v3  ;;  %v2285_v25 = vadd.f32 %v7318_v33, %v2091_v19  ;;  %v9181_v13 = vld [vmem:[#allocation41_spill] sm:$0xff] }
 0x2dc   : > { %v2387_v29 = vmul.f32 %v7481_v49, %v7481_v49  ;;  %v2388_v52 = vmul.f32 %v7491_v26, %v7491_v26  ;;  %v2287_v42 = vadd.f32 %v7334_v40, %v2093_v62  ;;  %v2095_v19 = vadd.f32 %v7352_v54, %v1898_v60  ;;  %v1679_v54 = vpop.f32.mrf.mxu1 }
 0x2dd   : > { %v2414_v36 = vadd.f32 %v2413_v55, %v2383_v27  ;;  %v2346_v58 = vadd.f32 %v2345_v50, %v7449_v16  ;;  %v7501_v27 = vadd.f32 %v7371_v45, %v7323_v14  ;;  %v1713_v55 = vadd.f32 %v9181_v13, %v7192_v39 }
 0x2de   : > { %v7443_v48 = vpop.f32.mrf.mxu2  ;;  %v1716_v40 = vadd.f32 %v7365_v56, %v7205_v20  ;;  %v5976_v56 = vld [vmem:[%s8937_s3 + $0x50] sm:$0xff] }
 0x2df   : > { %v7445_v38 = vpop.f32.mrf.mxu3  ;;  %v2415_v7 = vadd.f32 %v2414_v36, %v2384_v41  ;;  %v2347_v30 = vadd.f32 %v2346_v58, %v7459_v31  ;;  %v7511_v41 = vadd.f32 %v7371_v45, %v2285_v25  ;;  %v1900_v14 = vadd.f32 %v7361_v35, %v1713_v55  ;;  %2850 = vmatpush.bf16.msra.mxu1 %v5976_v56 }
 0x2e0   : > { %v7461_v43 = vpop.f32.mrf.mxu0  ;;  %v2389_v39 = vmul.f32 %v7501_v27, %v7501_v27  ;;  %v1715_v36 = vadd.f32 %v7354_v11, %v7201_v9  ;;  %v7531_v25 = vadd.f32 %v7371_v45, %v2287_v42  ;;  %v2289_v9 = vadd.f32 %v7343_v37, %v2095_v19 }
 0x2e1   : > { %v2416_v15 = vadd.f32 %v2415_v7, %v2385_v1  ;;  %v2348_v33 = vadd.f32 %v2347_v30, %v7469_v3  ;;  %v7523_v1 = vadd.f32 %v7371_v45, %v7336_v21  ;;  %v2097_v21 = vadd.f32 %v7363_v17, %v1900_v14 }
 0x2e2   : > { %v1902_v11 = vadd.f32 %v7402_v61, %v1715_v36  ;;  %v1903_v37 = vadd.f32 %v7443_v48, %v1716_v40  ;;  %v1717_v17 = vadd.f32 %v7373_v32, %v7210_v4  ;;  %v2392_v13 = vmul.f32 %v7531_v25, %v7531_v25 }
 0x2e3   : > { %v2417_v6 = vadd.f32 %v2416_v15, %v2386_v12  ;;  %v2349_v50 = vadd.f32 %v2348_v33, %v7481_v49  ;;  %v2390_v12 = vmul.f32 %v7511_v41, %v7511_v41  ;;  %v2391_v30 = vmul.f32 %v7523_v1, %v7523_v1 }
 0x2e4   : > { %v7544_v15 = vadd.f32 %v7371_v45, %v7348_v18  ;;  %v7553_v55 = vadd.f32 %v7371_v45, %v2289_v9  ;;  %v2291_v33 = vadd.f32 %v7357_v47, %v2097_v21  ;;  %v2099_v18 = vadd.f32 %v7404_v57, %v1902_v11 }
 0x2e5   : > { %v2418_v51 = vadd.f32 %v2417_v6, %v2387_v29  ;;  %v2350_v35 = vadd.f32 %v2349_v50, %v7491_v26  ;;  %v9182_v6 = vld [vmem:[#allocation39_spill] sm:$0xff]  ;;  %v7564_v19 = vadd.f32 %v7371_v45, %v7359_v63  ;;  %v2100_v14 = vadd.f32 %v7445_v38, %v1903_v37 }
 0x2e6   : > { %v1858_v23 = vpop.f32.mrf.mxu2  ;;  %v1718_v48 = vadd.f32 %v7427_v8, %v9182_v6  ;;  %v2393_v42 = vmul.f32 %v7544_v15, %v7544_v15  ;;  %v7573_v40 = vadd.f32 %v7371_v45, %v2291_v33  ;;  %v2293_v63 = vadd.f32 %v7375_v28, %v2099_v18 }
 0x2e7   : > { %v7486_v34 = vpop.f32.mrf.mxu3  ;;  %v2419_v7 = vadd.f32 %v2418_v51, %v2388_v52  ;;  %v2351_v62 = vadd.f32 %v2350_v35, %v7501_v27  ;;  %v1904_v4 = vadd.f32 %v1858_v23, %v1717_v17  ;;  %v9183_v51 = vld [vmem:[#allocation40_spill] sm:$0xff]  ;;  %v2394_v23 = vmul.f32 %v7553_v55, %v7553_v55  ;;  %v1681_v35 = vpop.f32.mrf.mxu1 }
 0x2e8   : > { %v7503_v53 = vpop.f32.mrf.mxu0  ;;  %v1719_v57 = vadd.f32 %v7475_v59, %v9183_v51  ;;  %v7582_v21 = vadd.f32 %v7371_v45, %v7384_v0  ;;  %v2294_v11 = vadd.f32 %v7417_v44, %v2100_v14  ;;  %v2396_v56 = vmul.f32 %v7573_v40, %v7573_v40 }
 0x2e9   : > { %v2420_v60 = vadd.f32 %v2419_v7, %v2389_v39  ;;  %v2352_v61 = vadd.f32 %v2351_v62, %v7511_v41  ;;  %v2101_v7 = vadd.f32 %v7486_v34, %v1904_v4  ;;  %v7589_v34 = vadd.f32 %v7371_v45, %v2293_v63 }
 0x2ea   : > { %v2397_v44 = vmul.f32 %v7582_v21, %v7582_v21 }
 0x2eb   : > { %v2421_v29 = vadd.f32 %v2420_v60, %v2390_v12  ;;  %v2353_v52 = vadd.f32 %v2352_v61, %v7523_v1  ;;  %v2295_v61 = vadd.f32 %v7461_v43, %v2101_v7 }
 0x2ed   : > { %v2422_v32 = vadd.f32 %v2421_v29, %v2391_v30  ;;  %v2354_v8 = vadd.f32 %v2353_v52, %v7531_v25  ;;  %v9184_v30 = vld [vmem:[#allocation24_spill] sm:$0xff]  ;;  %v2398_v52 = vmul.f32 %v7589_v34, %v7589_v34  ;;  %v7605_v4 = vadd.f32 %v7371_v45, %v2295_v61 }
 0x2ee   : > { %v1861_v2 = vpop.f32.mrf.mxu2  ;;  %v1720_v37 = vadd.f32 %v1679_v54, %v9184_v30 }
 0x2ef   : > { %v2058_v58 = vpop.f32.mrf.mxu3  ;;  %v1905_v39 = vadd.f32 %v1861_v2, %v1718_v48  ;;  %v2423_v36 = vadd.f32 %v2422_v32, %v2392_v13  ;;  %v2355_v38 = vadd.f32 %v2354_v8, %v7544_v15  ;;  %v2395_v2 = vmul.f32 %v7564_v19, %v7564_v19  ;;  %v1684_v51 = vpop.f32.mrf.mxu1 }
 0x2f0   : > { %v2254_v20 = vpop.f32.mrf.mxu0 }
 0x2f1   : > { %v2424_v59 = vadd.f32 %v2423_v36, %v2393_v42  ;;  %v2356_v62 = vadd.f32 %v2355_v38, %v7553_v55  ;;  %v2102_v28 = vadd.f32 %v2058_v58, %v1905_v39  ;;  %v7597_v58 = vadd.f32 %v7371_v45, %v2294_v11  ;;  %v9185_v36 = vld [vmem:[#allocation42_spill] sm:$0xff] }
 0x2f3   : > { %v2425_v60 = vadd.f32 %v2424_v59, %v2394_v23  ;;  %v2357_v17 = vadd.f32 %v2356_v62, %v7564_v19  ;;  %v2296_v6 = vadd.f32 %v7503_v53, %v2102_v28  ;;  %v1721_v23 = vadd.f32 %v1681_v35, %v9185_v36 }
 0x2f5   : > { %v2426_v29 = vadd.f32 %v2425_v60, %v2395_v2  ;;  %v2358_v18 = vadd.f32 %v2357_v17, %v7573_v40 }
 0x2f6   : > { %v1863_v50 = vpop.f32.mrf.mxu2 }
 0x2f7   : > { %v2060_v47 = vpop.f32.mrf.mxu3  ;;  %v1906_v12 = vadd.f32 %v1863_v50, %v1719_v57  ;;  %v2427_v54 = vadd.f32 %v2426_v29, %v2396_v56  ;;  %v2359_v43 = vadd.f32 %v2358_v18, %v7582_v21  ;;  %v7611_v57 = vadd.f32 %v7371_v45, %v2296_v6  ;;  %v9186_v29 = vld [vmem:[#allocation43_spill] sm:$0xff] }
 0x2f8   : > { %v2257_v9 = vpop.f32.mrf.mxu0 }
 0x2f9   : > { %v2103_v0 = vadd.f32 %v2060_v47, %v1906_v12  ;;  %v2428_v50 = vadd.f32 %v2427_v54, %v2397_v44  ;;  %v2399_v47 = vmul.f32 %v7597_v58, %v7597_v58  ;;  %v2360_v53 = vadd.f32 %v2359_v43, %v7589_v34 }
 0x2fa   : > { %v2401_v11 = vmul.f32 %v7611_v57, %v7611_v57  ;;  %v1722_v44 = vadd.f32 %v1684_v51, %v9186_v29  ;;  %v9187_v51 = vld [vmem:[#allocation29_spill] sm:$0xff] }
 0x2fb   : > { %v2297_v32 = vadd.f32 %v2254_v20, %v2103_v0  ;;  %v2429_v39 = vadd.f32 %v2428_v50, %v2398_v52  ;;  %v2361_v63 = vadd.f32 %v2360_v53, %v7597_v58  ;;  %v2400_v20 = vmul.f32 %v7605_v4, %v7605_v4 }
 0x2fd   : > { %v7618_v38 = vadd.f32 %v7371_v45, %v2297_v32  ;;  %v2430_v7 = vadd.f32 %v2429_v39, %v2399_v47  ;;  %v2362_v2 = vadd.f32 %v2361_v63, %v7605_v4 }
 0x2fe   : > { %v1866_v13 = vpop.f32.mrf.mxu2 }
 0x2ff   : > { %v2063_v33 = vpop.f32.mrf.mxu3  ;;  %v1907_v48 = vadd.f32 %v1866_v13, %v1720_v37  ;;  %v2431_v62 = vadd.f32 %v2430_v7, %v2400_v20  ;;  %v2363_v28 = vadd.f32 %v2362_v2, %v7611_v57  ;;  %v2402_v60 = vmul.f32 %v7618_v38, %v7618_v38  ;;  %v1686_v13 = vpop.f32.mrf.mxu1 }
 0x300   : > { %v2259_v14 = vpop.f32.mrf.mxu0  ;;  %v1723_v53 = vadd.f32 %v1686_v13, %v9187_v51 }
 0x301   : > { %v2104_v42 = vadd.f32 %v2063_v33, %v1907_v48  ;;  %v2432_v30 = vadd.f32 %v2431_v62, %v2401_v11  ;;  %v2364_v37 = vadd.f32 %v2363_v28, %v7618_v38 }
 0x303   : > { %v2298_v8 = vadd.f32 %v2257_v9, %v2104_v42  ;;  %v2433_v33 = vadd.f32 %v2432_v30, %v2402_v60 }
 0x305   : > { %v7624_v9 = vadd.f32 %v7371_v45, %v2298_v8 }
 0x306   : > { %v1868_v12 = vpop.f32.mrf.mxu2 }
 0x307   : > { %v2065_v59 = vpop.f32.mrf.mxu3  ;;  %v1908_v35 = vadd.f32 %v1868_v12, %v1721_v23  ;;  %v2403_v17 = vmul.f32 %v7624_v9, %v7624_v9  ;;  %v2365_v18 = vadd.f32 %v2364_v37, %v7624_v9  ;;  %v1689_v12 = vpop.f32.mrf.mxu1 }
 0x308   : > { %v2262_v0 = vpop.f32.mrf.mxu0 }
 0x309   : > { %v2105_v56 = vadd.f32 %v2065_v59, %v1908_v35  ;;  %v2434_v52 = vadd.f32 %v2433_v33, %v2403_v17  ;;  %v9188_v35 = vld [vmem:[#allocation46_spill] sm:$0xff]  ;;  %v9189_v33 = vld [vmem:[#allocation44_spill] sm:$0xff] }
 0x30a   : > { %v1724_v62 = vadd.f32 %v1689_v12, %v9188_v35 }
 0x30b   : > { %v2299_v61 = vadd.f32 %v2259_v14, %v2105_v56 }
 0x30d   : > { %v7635_v6 = vadd.f32 %v7371_v45, %v2299_v61 }
 0x30e   : > { %v1871_v48 = vpop.f32.mrf.mxu2 }
 0x30f   : > { %v2068_v54 = vpop.f32.mrf.mxu3  ;;  %v2366_v43 = vadd.f32 %v2365_v18, %v7635_v6  ;;  %v2404_v32 = vmul.f32 %v7635_v6, %v7635_v6  ;;  %v1909_v42 = vadd.f32 %v1871_v48, %v1722_v44  ;;  %v1691_v44 = vpop.f32.mrf.mxu1 }
 0x310   : > { %v2264_v39 = vpop.f32.mrf.mxu0  ;;  %v1725_v18 = vadd.f32 %v1691_v44, %v9189_v33 }
 0x311   : > { %v2435_v14 = vadd.f32 %v2434_v52, %v2404_v32  ;;  %v2106_v50 = vadd.f32 %v2068_v54, %v1909_v42 }
 0x313   : > { %v2300_v47 = vadd.f32 %v2262_v0, %v2106_v50 }
 0x315   : > { %v7642_v8 = vadd.f32 %v7371_v45, %v2300_v47 }
 0x316   : > { %v1873_v36 = vpop.f32.mrf.mxu2 }
 0x317   : > { %v2070_v23 = vpop.f32.mrf.mxu3  ;;  %v2367_v63 = vadd.f32 %v2366_v43, %v7642_v8  ;;  %v2405_v20 = vmul.f32 %v7642_v8, %v7642_v8  ;;  %v1910_v7 = vadd.f32 %v1873_v36, %v1723_v53 }
 0x318   : > { %v2267_v61 = vpop.f32.mrf.mxu0 }
 0x319   : > { %v2436_v59 = vadd.f32 %v2435_v14, %v2405_v20  ;;  %v2107_v2 = vadd.f32 %v2070_v23, %v1910_v7 }
 0x31b   : > { %v2301_v11 = vadd.f32 %v2264_v39, %v2107_v2 }
 0x31d   : > { %v7649_v28 = vadd.f32 %v7371_v45, %v2301_v11 }
 0x31e   : > { %v1876_v60 = vpop.f32.mrf.mxu2 }
 0x31f   : > { %v2073_v56 = vpop.f32.mrf.mxu3  ;;  %v2368_v30 = vadd.f32 %v2367_v63, %v7649_v28  ;;  %v2406_v37 = vmul.f32 %v7649_v28, %v7649_v28  ;;  %v1911_v17 = vadd.f32 %v1876_v60, %v1724_v62 }
 0x320   : > { %v2269_v47 = vpop.f32.mrf.mxu0 }
 0x321   : > { %v2437_v0 = vadd.f32 %v2436_v59, %v2406_v37  ;;  %v2108_v29 = vadd.f32 %v2073_v56, %v1911_v17 }
 0x323   : > { %v2302_v13 = vadd.f32 %v2267_v61, %v2108_v29 }
 0x325   : > { %v7656_v48 = vadd.f32 %v7371_v45, %v2302_v13 }
 0x326   : > { %v1878_v54 = vpop.f32.mrf.mxu2 }
 0x327   : > { %v2369_v52 = vadd.f32 %v2368_v30, %v7656_v48  ;;  %v2407_v43 = vmul.f32 %v7656_v48, %v7656_v48  ;;  %v1912_v32 = vadd.f32 %v1878_v54, %v1725_v18  ;;  %v2075_v42 = vpop.f32.mrf.mxu3 }
 0x329   : > { %v2438_v14 = vadd.f32 %v2437_v0, %v2407_v43  ;;  %v2109_v50 = vadd.f32 %v2075_v42, %v1912_v32 }
 0x32b   : > { %v2303_v51 = vadd.f32 %v2269_v47, %v2109_v50  ;;  %v9191_v47 = vld [vmem:[#allocation45_spill] sm:$0xff] }
 0x32d   : > { %v7662_v53 = vadd.f32 %v7371_v45, %v2303_v51 }
 0x32f   : > { %v2370_v39 = vadd.f32 %v2369_v52, %v7662_v53  ;;  %v2408_v36 = vmul.f32 %v7662_v53, %v7662_v53 }
 0x331   : > { %v2371_v23 = vrot.slane %v2370_v39, 4  ;;  %v2439_v63 = vadd.f32 %v2438_v14, %v2408_v36  ;;  %v9190_v14 = vld [vmem:[#allocation34_spill] sm:$0xff] }
 0x333   : > { %v2372_v20 = vadd.f32 %v2371_v23, %v2370_v39  ;;  %v2440_v7 = vrot.slane %v2439_v63, 4 }
 0x335   : > { %v2373_v12 = vrot.slane %v2372_v20, 2  ;;  %v2441_v59 = vadd.f32 %v2440_v7, %v2439_v63 }
 0x337   : > { %v2374_v2 = vadd.f32 %v2373_v12, %v2372_v20  ;;  %v2442_v11 = vrot.slane %v2441_v59, 2 }
 0x339   : > { %v2375_v35 = vrot.slane %v2374_v2, 1  ;;  %v2443_v62 = vadd.f32 %v2442_v11, %v2441_v59 }
 0x33b   : > { %v2376_v60 = vadd.f32 %v2375_v35, %v2374_v2  ;;  %v2444_v56 = vrot.slane %v2443_v62, 1 }
 0x33d   : > { %v2445_v30 = vadd.f32 %v2444_v56, %v2443_v62  ;;  %v7667_v45 = vmul.f32 0.00390625, %v2376_v60 }
 0x33f   : > { %v2447_v37 = vmul.f32 0.00390625, %v2445_v30  ;;  %v2448_v17 = vmul.f32 %v7667_v45, %v7667_v45  ;;  %v2482_v61 = vsub.f32 %v7662_v53, %v7667_v45  ;;  %v2477_v13 = vsub.f32 %v7624_v9, %v7667_v45 }
 0x340   : > { %v2478_v33 = vsub.f32 %v7635_v6, %v7667_v45  ;;  %v2479_v18 = vsub.f32 %v7642_v8, %v7667_v45  ;;  %v2480_v54 = vsub.f32 %v7649_v28, %v7667_v45  ;;  %v2481_v52 = vsub.f32 %v7656_v48, %v7667_v45  ;;  %v5974_v28 = vld [vmem:[%s8937_s3 + $0x40] sm:$0xff] }
 0x341   : > { %v2449_v0 = vsub.f32 %v2447_v37, %v2448_v17  ;;  %v2451_v50 = vsub.f32 %v9190_v14, %v7667_v45  ;;  %v2452_v51 = vsub.f32 %v9191_v47, %v7667_v45  ;;  %v2453_v53 = vsub.f32 %v7392_v24, %v7667_v45  ;;  %v5970_v48 = vld [vmem:[%s8937_s3 + $0x20] sm:$0xff] }
 0x342   : > { %v2454_v39 = vsub.f32 %v7400_v46, %v7667_v45  ;;  %v2455_v36 = vsub.f32 %v7413_v22, %v7667_v45  ;;  %v2456_v63 = vsub.f32 %v7425_v10, %v7667_v45  ;;  %v2457_v20 = vsub.f32 %v7438_v5, %v7667_v45 }
 0x343   : > { %v2450_v29 = vmax.f32 %v2449_v0, 0.0  ;;  %v2458_v7 = vsub.f32 %v7449_v16, %v7667_v45  ;;  %v2459_v12 = vsub.f32 %v7459_v31, %v7667_v45  ;;  %v2460_v24 = vsub.f32 %v7469_v3, %v7667_v45 }
 0x344   : > { %v2461_v46 = vsub.f32 %v7481_v49, %v7667_v45  ;;  %v2462_v22 = vsub.f32 %v7491_v26, %v7667_v45  ;;  %v2463_v5 = vsub.f32 %v7501_v27, %v7667_v45  ;;  %v2464_v10 = vsub.f32 %v7511_v41, %v7667_v45 }
 0x345   : > { %v2483_v44 = vadd.f32 1e-05, %v2450_v29  ;;  %v2465_v16 = vsub.f32 %v7523_v1, %v7667_v45  ;;  %v2466_v31 = vsub.f32 %v7531_v25, %v7667_v45  ;;  %v2467_v3 = vsub.f32 %v7544_v15, %v7667_v45  ;;  %v5973_v1 = vld [vmem:[%s8937_s3 + $0x38] sm:$0xff] }
 0x346   : > { %v2468_v49 = vsub.f32 %v7553_v55, %v7667_v45  ;;  %v2469_v27 = vsub.f32 %v7564_v19, %v7667_v45  ;;  %v2470_v41 = vsub.f32 %v7573_v40, %v7667_v45  ;;  %v5989_v25 = vld [vmem:[%s8937_s3 + $0xb8] sm:$0xff]  ;;  %v2471_v55 = vsub.f32 %v7582_v21, %v7667_v45  ;;  %2982 = vmatpush.bf16.msrb.mxu2 %v5973_v1 }
 0x347   : > { %6109 = vrsqrt.f32 %v2483_v44  ;;  %vm2490_vm3 = vweird.f32 %v2483_v44  ;;  %v5997_v15 = vld [vmem:[%s8937_s3 + $0xf8] sm:$0xff]  ;;  %v2472_v19 = vsub.f32 %v7589_v34, %v7667_v45  ;;  %v2473_v40 = vsub.f32 %v7597_v58, %v7667_v45  ;;  %3184 = vmatpush.bf16.msrb.mxu3 %v5989_v25 }
 0x348   : > { %v2474_v2 = vsub.f32 %v7605_v4, %v7667_v45  ;;  %v2475_v35 = vsub.f32 %v7611_v57, %v7667_v45  ;;  %v2476_v62 = vsub.f32 %v7618_v38, %v7667_v45  ;;  %3418 = vmatpush.bf16.msrb.mxu0 %v5997_v15  ;;  %v5972_v57 = vld [vmem:[%s8937_s3 + $0x30] sm:$0xff]  ;;  %v5969_v15 = vld [vmem:[%s8937_s3 + $0x18] sm:$0xff] }
 0x349   : > { %v5988_v38 = vld [vmem:[%s8937_s3 + $0xb0] sm:$0xff] }
 0x34a   : > { %2983 = vmatpush.bf16.msrb.mxu2 %v5972_v57  ;;  %v5992_v57 = vld [vmem:[%s8937_s3 + $0xd0] sm:$0xff] }
 0x34b   : > { %3185 = vmatpush.bf16.msrb.mxu3 %v5988_v38 }
 0x34d   : > { %v6110_v43 = vpop.eup %6109 }
 0x34e   : > { %v2485_v32 = vmul.f32 %v6110_v43, %v2483_v44  ;;  %vm2491_vm2 = vweird.f32 %v6110_v43  ;;  %v5996_v44 = vld [vmem:[%s8937_s3 + $0xf0] sm:$0xff] }
 0x34f   : > { %vm2492_vm4 = vmor %vm2490_vm3, %vm2491_vm2  ;;  %3419 = vmatpush.bf16.msrb.mxu0 %v5996_v44 }
 0x350   : > { %v2486_v42 = vmul.f32 %v6110_v43, %v2485_v32 }
 0x352   : > { %v2487_v23 = vmul.f32 0.5, %v2486_v42 }
 0x354   : > { %v2488_v59 = vsub.f32 1.5, %v2487_v23 }
 0x356   : > { %v2489_v26 = vmul.f32 %v6110_v43, %v2488_v59 }
 0x358   : > { %v2493_v11 = vsel %vm2492_vm4, %v6110_v43, %v2489_v26 }
 0x359   : > { %v2525_v60 = vmul.f32 %v2493_v11, %v2482_v61  ;;  %v7744_v21 = vmul.f32 %v2493_v11, %v2451_v50  ;;  %v7746_v56 = vmul.f32 %v2493_v11, %v2452_v51  ;;  %v2496_v34 = vmul.f32 %v2493_v11, %v2453_v53 }
 0x35a   : > { %v2497_v58 = vmul.f32 %v2493_v11, %v2454_v39  ;;  %v7748_v30 = vmul.f32 %v2493_v11, %v2455_v36  ;;  %v7750_v4 = vmul.f32 %v2493_v11, %v2456_v63  ;;  %v7752_v37 = vmul.f32 %v2493_v11, %v2457_v20  ;;  %v5975_v20 = vld [vmem:[%s8937_s3 + $0x48] sm:$0xff] }
 0x35b   : > { %v2557_v17 = vmax.f32 %v2525_v60, 0.0  ;;  %v7760_v61 = vmul.f32 %v2493_v11, %v2458_v7  ;;  %v7762_v0 = vmul.f32 %v2493_v11, %v2459_v12  ;;  %v7764_v29 = vmul.f32 %v2493_v11, %v2460_v24  ;;  %v5971_v7 = vld [vmem:[%s8937_s3 + $0x28] sm:$0xff]  ;;  %2851 = vmatpush.bf16.msra.mxu1 %v5975_v20 }
 0x35c   : > { %v7769_v43 = vmul.f32 %v2493_v11, %v2461_v46  ;;  %v7771_v32 = vmul.f32 %v2493_v11, %v2462_v22  ;;  %v7773_v42 = vmul.f32 %v2493_v11, %v2463_v5  ;;  %v7775_v14 = vmul.f32 %v2493_v11, %v2464_v10  ;;  %v5987_v12 = vld [vmem:[%s8937_s3 + $0xa8] sm:$0xff]  ;;  %2984 = vmatpush.bf16.msrb.mxu2 %v5971_v7 }
 0x35d   : > { %2590 = vst [vmem:[#allocation2 + $0x189] sm:$0xff] %v2557_v17  ;;  %v7777_v50 = vmul.f32 %v2493_v11, %v2465_v16  ;;  %v7779_v47 = vmul.f32 %v2493_v11, %v2466_v31  ;;  %v7781_v51 = vmul.f32 %v2493_v11, %v2467_v3  ;;  %v7783_v53 = vmul.f32 %v2493_v11, %v2468_v49  ;;  %v5995_v5 = vld [vmem:[%s8937_s3 + $0xe8] sm:$0xff] }
 0x35e   : > { %v7785_v39 = vmul.f32 %v2493_v11, %v2469_v27  ;;  %v7787_v36 = vmul.f32 %v2493_v11, %v2470_v41  ;;  %v7789_v23 = vmul.f32 %v2493_v11, %v2471_v55  ;;  %v7791_v63 = vmul.f32 %v2493_v11, %v2472_v19  ;;  %3186 = vmatpush.bf16.msrb.mxu3 %v5987_v12  ;;  %v5985_v55 = vld [vmem:[%s8937_s3 + $0x98] sm:$0xff] }
 0x35f   : > { %v7802_v24 = vmul.f32 %v2493_v11, %v2473_v40  ;;  %v7804_v46 = vmul.f32 %v2493_v11, %v2474_v2  ;;  %v7806_v22 = vmul.f32 %v2493_v11, %v2475_v35  ;;  %v7808_v59 = vmul.f32 %v2493_v11, %v2476_v62  ;;  %3420 = vmatpush.bf16.msrb.mxu0 %v5995_v5  ;;  %v5993_v2 = vld [vmem:[%s8937_s3 + $0xd8] sm:$0xff]  ;;  %v5968_v35 = vld [vmem:[%s8937_s3 + $0x10] sm:$0xff] }
 0x360   : > { %v7816_v10 = vmul.f32 %v2493_v11, %v2477_v13  ;;  %v7821_v16 = vmul.f32 %v2493_v11, %v2478_v33  ;;  %v7826_v31 = vmul.f32 %v2493_v11, %v2479_v18  ;;  %v7831_v3 = vmul.f32 %v2493_v11, %v2480_v54  ;;  %v5986_v18 = vld [vmem:[%s8937_s3 + $0xa0] sm:$0xff]  ;;  %2852 = vmatpush.bf16.msra.mxu1 %v5974_v28 }
 0x361   : > { %v7836_v9 = vmul.f32 %v2493_v11, %v2481_v52  ;;  %v2526_v6 = vmax.f32 %v7744_v21, 0.0  ;;  %v2527_v13 = vmax.f32 %v7746_v56, 0.0  ;;  %v7840_v33 = vmax.f32 %v2496_v34, 0.0  ;;  %v5994_v52 = vld [vmem:[%s8937_s3 + $0xe0] sm:$0xff]  ;;  %2985 = vmatpush.bf16.msrb.mxu2 %v5970_v48  ;;  %v5984_v34 = vld [vmem:[%s8937_s3 + $0x90] sm:$0xff] }
 0x362   : > { %v7842_v8 = vmax.f32 %v2497_v58, 0.0  ;;  %v2530_v45 = vmax.f32 %v7748_v30, 0.0  ;;  %v2531_v54 = vmax.f32 %v7750_v4, 0.0  ;;  %v2532_v49 = vmax.f32 %v7752_v37, 0.0  ;;  %3187 = vmatpush.bf16.msrb.mxu3 %v5986_v18  ;;  %v6005_v58 = vld [vmem:[%s8937_s3 + $0x138] sm:$0xff] }
 0x363   : > { %2559 = vst [vmem:[#allocation2 + $0x19] sm:$0xff] %v2526_v6  ;;  %v2533_v26 = vmax.f32 %v7760_v61, 0.0  ;;  %v2534_v27 = vmax.f32 %v7762_v0, 0.0  ;;  %v2535_v41 = vmax.f32 %v7764_v29, 0.0  ;;  %v2536_v1 = vmax.f32 %v7769_v43, 0.0  ;;  %3421 = vmatpush.bf16.msrb.mxu0 %v5994_v52  ;;  %v5967_v0 = vld [vmem:[%s8937_s3 + $0x8] sm:$0xff] }
 0x364   : > { %2560 = vst [vmem:[#allocation2 + $0x21] sm:$0xff] %v2527_v13  ;;  %v2537_v25 = vmax.f32 %v7771_v32, 0.0  ;;  %v2538_v19 = vmax.f32 %v7773_v42, 0.0  ;;  %v2539_v40 = vmax.f32 %v7775_v14, 0.0  ;;  %v2540_v11 = vmax.f32 %v7777_v50, 0.0  ;;  %3652 = vmatpush.bf16.msrb.mxu1 %v6005_v58  ;;  %v5983_v43 = vld [vmem:[%s8937_s3 + $0x88] sm:$0xff] }
 0x365   : > { %2561 = vst [vmem:[#allocation2 + $0x31] sm:$0xff] %v7840_v33  ;;  %2986 = vmatpush.bf16.msrb.mxu2 %v5969_v15  ;;  %v7883_v62 = vpack.c.bf16 %v7842_v8, %v7840_v33  ;;  %v7885_v60 = vpack.c.bf16 %v2527_v13, %v2526_v6  ;;  %v7887_v21 = vpack.c.bf16 %v2531_v54, %v2530_v45  ;;  %v2541_v56 = vmax.f32 %v7779_v47, 0.0  ;;  %v5991_v42 = vld [vmem:[%s8937_s3 + $0xc8] sm:$0xff] }
 0x366   : > { %2562 = vst [vmem:[#allocation2 + $0x39] sm:$0xff] %v7842_v8  ;;  %3188 = vmatpush.bf16.msrb.mxu3 %v5985_v55  ;;  %v7896_v30 = vpack.c.bf16 %v2533_v26, %v2532_v49  ;;  %v7898_v4 = vpack.c.bf16 %v2535_v41, %v2534_v27  ;;  %v7900_v37 = vpack.c.bf16 %v2537_v25, %v2536_v1  ;;  %v2542_v38 = vmax.f32 %v7781_v51, 0.0  ;;  %v5966_v51 = vld [vmem:[%s8937_s3] sm:$0xff] }
 0x367   : > { %2563 = vst [vmem:[#allocation2 + $0x49] sm:$0xff] %v2530_v45  ;;  %3422 = vmatpush.bf16.msrb.mxu0 %v5993_v2  ;;  %2853 = vmatmul.bf16.vlgmr.msra.gmra.mxu1 %v7883_v62  ;;  %v2543_v17 = vmax.f32 %v7783_v53, 0.0  ;;  %v7908_v61 = vpack.c.bf16 %v2539_v40, %v2538_v19  ;;  %v2544_v29 = vmax.f32 %v7785_v39, 0.0  ;;  %v2545_v44 = vmax.f32 %v7787_v36, 0.0  ;;  %v5982_v36 = vld [vmem:[%s8937_s3 + $0x80] sm:$0xff] }
 0x368   : > { %2564 = vst [vmem:[#allocation2 + $0x51] sm:$0xff] %v2531_v54  ;;  %v7918_v32 = vpack.c.bf16 %v2541_v56, %v2540_v11  ;;  %v2546_v14 = vmax.f32 %v7789_v23, 0.0  ;;  %v2547_v50 = vmax.f32 %v7791_v63, 0.0  ;;  %v2548_v53 = vmax.f32 %v7802_v24, 0.0  ;;  %v5990_v63 = vld [vmem:[%s8937_s3 + $0xc0] sm:$0xff] }
 0x369   : > { %2565 = vst [vmem:[#allocation2 + $0x61] sm:$0xff] %v2532_v49  ;;  %2987 = vmatpush.bf16.msrb.mxu2 %v5968_v35  ;;  %v7925_v47 = vpack.c.bf16 %v2543_v17, %v2542_v38  ;;  %v2549_v39 = vmax.f32 %v7804_v46, 0.0  ;;  %v7935_v23 = vpack.c.bf16 %v2545_v44, %v2544_v29  ;;  %v2550_v20 = vmax.f32 %v7806_v22, 0.0 }
 0x36a   : > { %2566 = vst [vmem:[#allocation2 + $0x69] sm:$0xff] %v2533_v26  ;;  %3189 = vmatpush.bf16.msrb.mxu3 %v5984_v34  ;;  %v2551_v7 = vmax.f32 %v7808_v59, 0.0  ;;  %v7942_v12 = vpack.c.bf16 %v2547_v50, %v2546_v14  ;;  %v2552_v24 = vmax.f32 %v7816_v10, 0.0  ;;  %v2553_v46 = vmax.f32 %v7821_v16, 0.0  ;;  %v2597_v13 = vld [vmem:[#allocation2 + $0x1a] sm:$0x1] }
 0x36b   : > { %2567 = vst [vmem:[#allocation2 + $0x79] sm:$0xff] %v2534_v27  ;;  %3423 = vmatpush.bf16.msrb.mxu0 %v5992_v57  ;;  %v7946_v5 = vpack.c.bf16 %v2549_v39, %v2548_v53  ;;  %v2554_v59 = vmax.f32 %v7826_v31, 0.0  ;;  %v2555_v10 = vmax.f32 %v7831_v3, 0.0  ;;  %v2556_v16 = vmax.f32 %v7836_v9, 0.0  ;;  %v2633_v31 = vld [vmem:[#allocation2 + $0x27] sm:$0x1] }
 0x36c   : > { %2568 = vst [vmem:[#allocation2 + $0x81] sm:$0xff] %v2535_v41  ;;  %v7948_v6 = vpack.c.bf16 %v2551_v7, %v2550_v20  ;;  %v7950_v22 = vpack.c.bf16 %v2553_v46, %v2552_v24  ;;  %v2598_v28 = vld [vmem:[#allocation2 + $0x32] sm:$0x1]  ;;  %v3306_v49 = vld [vmem:[#allocation2 + $0x20] sm:$0xff] }
 0x36d   : > { %2569 = vst [vmem:[#allocation2 + $0x91] sm:$0xff] %v2536_v1  ;;  %2988 = vmatpush.bf16.msrb.mxu2 %v5967_v0  ;;  %v6004_v3 = vld [vmem:[%s8937_s3 + $0x130] sm:$0xff]  ;;  %v2634_v9 = vld [vmem:[#allocation2 + $0x3f] sm:$0x1] }
 0x36e   : > { %2570 = vst [vmem:[#allocation2 + $0x99] sm:$0xff] %v2537_v25  ;;  %3190 = vmatpush.bf16.msrb.mxu3 %v5983_v43  ;;  %3653 = vmatpush.bf16.msrb.mxu1 %v6004_v3  ;;  %v2599_v45 = vld [vmem:[#allocation2 + $0x4a] sm:$0x1]  ;;  %v2648_v3 = vld [vmem:[#allocation2 + $0x18f] sm:$0x1] }
 0x36f   : > { %2571 = vst [vmem:[#allocation2 + $0xa9] sm:$0xff] %v2538_v19  ;;  %3424 = vmatpush.bf16.msrb.mxu0 %v5991_v42  ;;  %v3308_v42 = vld [vmem:[#allocation2 + $0x38] sm:$0xff] }
 0x370   : > { %2572 = vst [vmem:[#allocation2 + $0xb1] sm:$0xff] %v2539_v40  ;;  %v2600_v18 = vld [vmem:[#allocation2 + $0x62] sm:$0x1] }
 0x371   : > { %2573 = vst [vmem:[#allocation2 + $0xc1] sm:$0xff] %v2540_v11  ;;  %2989 = vmatpush.bf16.msrb.mxu2 %v5966_v51  ;;  %v2636_v54 = vld [vmem:[#allocation2 + $0x6f] sm:$0x1] }
 0x372   : > { %2574 = vst [vmem:[#allocation2 + $0xc9] sm:$0xff] %v2541_v56  ;;  %3191 = vmatpush.bf16.msrb.mxu3 %v5982_v36  ;;  %v2601_v26 = vld [vmem:[#allocation2 + $0x7a] sm:$0x1] }
 0x373   : > { %2575 = vst [vmem:[#allocation2 + $0xd9] sm:$0xff] %v2542_v38  ;;  %3425 = vmatpush.bf16.msrb.mxu0 %v5990_v63  ;;  %v2637_v41 = vld [vmem:[#allocation2 + $0x87] sm:$0x1] }
 0x374   : > { %2576 = vst [vmem:[#allocation2 + $0xe1] sm:$0xff] %v2543_v17  ;;  %v2602_v1 = vld [vmem:[#allocation2 + $0x92] sm:$0x1] }
 0x375   : > { %2577 = vst [vmem:[#allocation2 + $0xf1] sm:$0xff] %v2544_v29  ;;  %v2638_v25 = vld [vmem:[#allocation2 + $0x9f] sm:$0x1] }
 0x376   : > { %2578 = vst [vmem:[#allocation2 + $0xf9] sm:$0xff] %v2545_v44  ;;  %v2603_v19 = vld [vmem:[#allocation2 + $0xaa] sm:$0x1] }
 0x377   : > { %2579 = vst [vmem:[#allocation2 + $0x109] sm:$0xff] %v2546_v14  ;;  %2858 = vmatmul.bf16.gmra.mxu1 %v7885_v60  ;;  %v2639_v35 = vld [vmem:[#allocation2 + $0xb7] sm:$0x1] }
 0x378   : > { %2580 = vst [vmem:[#allocation2 + $0x111] sm:$0xff] %v2547_v50  ;;  %v2604_v60 = vld [vmem:[#allocation2 + $0xc2] sm:$0x1] }
 0x379   : > { %2581 = vst [vmem:[#allocation2 + $0x121] sm:$0xff] %v2548_v53  ;;  %v2640_v56 = vld [vmem:[#allocation2 + $0xcf] sm:$0x1] }
 0x37a   : > { %2582 = vst [vmem:[#allocation2 + $0x129] sm:$0xff] %v2549_v39  ;;  %v2605_v34 = vld [vmem:[#allocation2 + $0xda] sm:$0x1] }
 0x37b   : > { %2583 = vst [vmem:[#allocation2 + $0x139] sm:$0xff] %v2550_v20  ;;  %v2641_v58 = vld [vmem:[#allocation2 + $0xe7] sm:$0x1]  ;;  %v3073_v20 = vld [vmem:[#allocation2 + $0x1a] sm:$0xff] }
 0x37c   : > { %2584 = vst [vmem:[#allocation2 + $0x141] sm:$0xff] %v2551_v7  ;;  %v2606_v57 = vld [vmem:[#allocation2 + $0xf2] sm:$0x1] }
 0x37d   : > { %2585 = vst [vmem:[#allocation2 + $0x151] sm:$0xff] %v2552_v24  ;;  %v2642_v38 = vld [vmem:[#allocation2 + $0xff] sm:$0x1] }
 0x37e   : > { %2586 = vst [vmem:[#allocation2 + $0x159] sm:$0xff] %v2553_v46  ;;  %v2607_v17 = vld [vmem:[#allocation2 + $0x10a] sm:$0x1] }
 0x37f   : > { %2587 = vst [vmem:[#allocation2 + $0x169] sm:$0xff] %v2554_v59  ;;  %v2643_v0 = vld [vmem:[#allocation2 + $0x117] sm:$0x1]  ;;  %v6003_v46 = vld [vmem:[%s8937_s3 + $0x128] sm:$0xff] }
 0x380   : > { %2588 = vst [vmem:[#allocation2 + $0x171] sm:$0xff] %v2555_v10  ;;  %v2608_v44 = vld [vmem:[#allocation2 + $0x122] sm:$0x1]  ;;  %3654 = vmatpush.bf16.msrb.mxu1 %v6003_v46 }
 0x381   : > { %2589 = vst [vmem:[#allocation2 + $0x181] sm:$0xff] %v2556_v16  ;;  %v2644_v43 = vld [vmem:[#allocation2 + $0x12f] sm:$0x1] }
 0x382   : > { %2591 = vst [vmem:[#allocation2 + $0x1] sm:$0xff] %v7840_v33  ;;  %v2609_v14 = vld [vmem:[#allocation2 + $0x13a] sm:$0x1] }
 0x383   : > { %2592 = vst [vmem:[#allocation2 + $0x9] sm:$0xff] %v7842_v8  ;;  %v2635_v8 = vld [vmem:[#allocation2 + $0x57] sm:$0x1]  ;;  %v2645_v51 = vld [vmem:[#allocation2 + $0x147] sm:$0x1] }
 0x384   : > { %2594 = vst [vmem:[#allocation2 + $0x199] sm:$0xff] %v2554_v59  ;;  %v2610_v53 = vld [vmem:[#allocation2 + $0x152] sm:$0x1] }
 0x385   : > { %2595 = vst [vmem:[#allocation2 + $0x1a1] sm:$0xff] %v2555_v10  ;;  %v2646_v36 = vld [vmem:[#allocation2 + $0x15f] sm:$0x1]  ;;  %v3310_v10 = vld [vmem:[#allocation2 + $0x50] sm:$0xff] }
 0x386   : > { %2615 = vst [vmem:[#allocation2 + $0x18] sm:$0x1] %v2597_v13  ;;  %v2611_v63 = vld [vmem:[#allocation2 + $0x16a] sm:$0x1] }
 0x387   : > { %2651 = vst [vmem:[#allocation2 + $0x29] sm:$0x1] %v2633_v31  ;;  %2863 = vmatmul.bf16.gmra.mxu1 %v7883_v62  ;;  %v3075_v31 = vld [vmem:[#allocation2 + $0x32] sm:$0xff] }
 0x388   : > { %2616 = vst [vmem:[#allocation2 + $0x30] sm:$0x1] %v2598_v28  ;;  %v2612_v24 = vld [vmem:[#allocation2 + $0x182] sm:$0x1] }
 0x389   : > { %v2596_v48 = vld [vmem:[#allocation2 + $0x2] sm:$0x1]  ;;  %2652 = vst [vmem:[#allocation2 + $0x41] sm:$0x1] %v2634_v9 }
 0x38a   : > { %2614 = vst [vmem:[#allocation2] sm:$0x1] %v2596_v48  ;;  %v2632_v33 = vld [vmem:[#allocation2 + $0xf] sm:$0x1]  ;;  %v3071_v2 = vld [vmem:[#allocation2 + $0x2] sm:$0xff] }
 0x38b   : > { %2650 = vst [vmem:[#allocation2 + $0x11] sm:$0x1] %v2632_v33  ;;  %v2669_v55 = vld [vmem:[#allocation2 + $0x8] sm:$0xff]  ;;  %v2613_v9 = vld [vmem:[#allocation2 + $0x19a] sm:$0x1] }
 0x38c   : > { %2617 = vst [vmem:[#allocation2 + $0x48] sm:$0x1] %v2599_v45  ;;  %v2649_v48 = vld [vmem:[#allocation2 + $0x1a7] sm:$0x1]  ;;  %v3312_v33 = vld [vmem:[#allocation2 + $0x68] sm:$0xff] }
 0x38d   : > { %v3305_v52 = vld [vmem:[#allocation2 + $0x18] sm:$0xff]  ;;  %2653 = vst [vmem:[#allocation2 + $0x59] sm:$0x1] %v2635_v8 }
 0x38e   : > { %v3337_v27 = vpack.c.bf16 %v3306_v49, %v3305_v52  ;;  %2618 = vst [vmem:[#allocation2 + $0x60] sm:$0x1] %v2600_v18  ;;  %v3074_v39 = vld [vmem:[#allocation2 + $0x22] sm:$0xff]  ;;  %v3077_v18 = vld [vmem:[#allocation2 + $0x4a] sm:$0xff] }
 0x38f   : > { %2654 = vst [vmem:[#allocation2 + $0x71] sm:$0x1] %v2636_v54  ;;  %v3307_v29 = vld [vmem:[#allocation2 + $0x30] sm:$0xff]  ;;  %v3104_v7 = vpack.c.bf16 %v3074_v39, %v3073_v20  ;;  %v6002_v52 = vld [vmem:[%s8937_s3 + $0x120] sm:$0xff] }
 0x390   : > { %3426 = vmatmul.bf16.vlgmr.msrb.gmra.mxu0 %v3337_v27  ;;  %2619 = vst [vmem:[#allocation2 + $0x78] sm:$0x1] %v2601_v26  ;;  %v3338_v50 = vpack.c.bf16 %v3308_v42, %v3307_v29  ;;  %v3076_v13 = vld [vmem:[#allocation2 + $0x3a] sm:$0xff]  ;;  %3655 = vmatpush.bf16.msrb.mxu1 %v6002_v52 }
 0x391   : > { %v2668_v15 = vld [vmem:[#allocation2] sm:$0xff]  ;;  %2655 = vst [vmem:[#allocation2 + $0x89] sm:$0x1] %v2637_v41  ;;  %v3105_v28 = vpack.c.bf16 %v3076_v13, %v3075_v31  ;;  %v3324_v31 = vld [vmem:[#allocation2 + $0xf8] sm:$0xff] }
 0x392   : > { %v2700_v40 = vpack.c.bf16 %v2669_v55, %v2668_v15  ;;  %v3072_v11 = vld [vmem:[#allocation2 + $0xa] sm:$0xff]  ;;  %2620 = vst [vmem:[#allocation2 + $0x90] sm:$0x1] %v2602_v1  ;;  %v3314_v26 = vld [vmem:[#allocation2 + $0x80] sm:$0xff]  ;;  %v3316_v15 = vld [vmem:[#allocation2 + $0x98] sm:$0xff] }
 0x393   : > { %v3103_v62 = vpack.c.bf16 %v3072_v11, %v3071_v2  ;;  %2656 = vst [vmem:[#allocation2 + $0xa1] sm:$0x1] %v2638_v25  ;;  %v3309_v59 = vld [vmem:[#allocation2 + $0x48] sm:$0xff] }
 0x394   : > { %2990 = vmatmul.bf16.vlgmr.msrb.gmra.mxu2 %v2700_v40  ;;  %2621 = vst [vmem:[#allocation2 + $0xa8] sm:$0x1] %v2603_v19  ;;  %v3339_v16 = vpack.c.bf16 %v3310_v10, %v3309_v59  ;;  %v3081_v40 = vld [vmem:[#allocation2 + $0x7a] sm:$0xff] }
 0x395   : > { %3192 = vmatmul.bf16.vlgmr.msrb.gmra.mxu3 %v3103_v62  ;;  %2657 = vst [vmem:[#allocation2 + $0xb9] sm:$0x1] %v2639_v35  ;;  %v3311_v45 = vld [vmem:[#allocation2 + $0x60] sm:$0xff]  ;;  %v3318_v62 = vld [vmem:[#allocation2 + $0xb0] sm:$0xff] }
 0x396   : > { %2622 = vst [vmem:[#allocation2 + $0xc0] sm:$0x1] %v2604_v60  ;;  %v3340_v8 = vpack.c.bf16 %v3312_v33, %v3311_v45  ;;  %v3080_v41 = vld [vmem:[#allocation2 + $0x6a] sm:$0xff] }
 0x397   : > { %2658 = vst [vmem:[#allocation2 + $0xd1] sm:$0x1] %v2640_v56  ;;  %2868 = vmatmul.bf16.gmra.mxu1 %v7887_v21  ;;  %v2647_v21 = vld [vmem:[#allocation2 + $0x177] sm:$0x1]  ;;  %v3313_v49 = vld [vmem:[#allocation2 + $0x78] sm:$0xff] }
 0x398   : > { %2623 = vst [vmem:[#allocation2 + $0xd8] sm:$0x1] %v2605_v34  ;;  %v3082_v19 = vld [vmem:[#allocation2 + $0x82] sm:$0xff]  ;;  %v3083_v34 = vld [vmem:[#allocation2 + $0x92] sm:$0xff] }
 0x399   : > { %2659 = vst [vmem:[#allocation2 + $0xe9] sm:$0x1] %v2641_v58  ;;  %v3315_v25 = vld [vmem:[#allocation2 + $0x90] sm:$0xff]  ;;  %v3108_v2 = vpack.c.bf16 %v3082_v19, %v3081_v40 }
 0x39a   : > { %2624 = vst [vmem:[#allocation2 + $0xf0] sm:$0x1] %v2606_v57  ;;  %v3342_v55 = vpack.c.bf16 %v3316_v15, %v3315_v25 }
 0x39b   : > { %2660 = vst [vmem:[#allocation2 + $0x101] sm:$0x1] %v2642_v38  ;;  %v3317_v35 = vld [vmem:[#allocation2 + $0xa8] sm:$0xff] }
 0x39c   : > { %2625 = vst [vmem:[#allocation2 + $0x108] sm:$0x1] %v2607_v17  ;;  %v3343_v60 = vpack.c.bf16 %v3318_v62, %v3317_v35  ;;  %v3320_v17 = vld [vmem:[#allocation2 + $0xc8] sm:$0xff]  ;;  %v3086_v29 = vld [vmem:[#allocation2 + $0xb2] sm:$0xff] }
 0x39d   : > { %2661 = vst [vmem:[#allocation2 + $0x119] sm:$0x1] %v2643_v0  ;;  %v3319_v38 = vld [vmem:[#allocation2 + $0xc0] sm:$0xff]  ;;  %v3091_v62 = vld [vmem:[#allocation2 + $0xf2] sm:$0xff] }
 0x39e   : > { %2626 = vst [vmem:[#allocation2 + $0x120] sm:$0x1] %v2608_v44  ;;  %v3344_v0 = vpack.c.bf16 %v3320_v17, %v3319_v38  ;;  %v3085_v44 = vld [vmem:[#allocation2 + $0xaa] sm:$0xff] }
 0x39f   : > { %2662 = vst [vmem:[#allocation2 + $0x131] sm:$0x1] %v2644_v43  ;;  %v3088_v39 = vld [vmem:[#allocation2 + $0xca] sm:$0xff] }
 0x3a0   : > { %3431 = vmatmul.bf16.gmra.mxu0 %v3338_v50  ;;  %2627 = vst [vmem:[#allocation2 + $0x138] sm:$0x1] %v2609_v14  ;;  %v6000_v14 = vld [vmem:[%s8937_s3 + $0x110] sm:$0xff]  ;;  %v3090_v45 = vld [vmem:[#allocation2 + $0xe2] sm:$0xff] }
 0x3a1   : > { %2663 = vst [vmem:[#allocation2 + $0x149] sm:$0x1] %v2645_v51  ;;  %v3322_v51 = vld [vmem:[#allocation2 + $0xe0] sm:$0xff] }
 0x3a2   : > { %2628 = vst [vmem:[#allocation2 + $0x150] sm:$0x1] %v2610_v53 }
 0x3a3   : > { %2664 = vst [vmem:[#allocation2 + $0x161] sm:$0x1] %v2646_v36  ;;  %v3087_v36 = vld [vmem:[#allocation2 + $0xc2] sm:$0xff] }
 0x3a4   : > { %2995 = vmatmul.bf16.gmra.mxu2 %v3337_v27  ;;  %2629 = vst [vmem:[#allocation2 + $0x168] sm:$0x1] %v2611_v63  ;;  %v3341_v27 = vpack.c.bf16 %v3314_v26, %v3313_v49  ;;  %v3111_v20 = vpack.c.bf16 %v3088_v39, %v3087_v36 }
 0x3a5   : > { %3197 = vmatmul.bf16.gmra.mxu3 %v3104_v7  ;;  %2665 = vst [vmem:[#allocation2 + $0x179] sm:$0x1] %v2647_v21 }
 0x3a6   : > { %2630 = vst [vmem:[#allocation2 + $0x180] sm:$0x1] %v2612_v24 }
 0x3a7   : > { %2873 = vmatmul.bf16.gmra.mxu1 %v7896_v30  ;;  %2666 = vst [vmem:[#allocation2 + $0x191] sm:$0x1] %v2648_v3  ;;  %v3078_v30 = vld [vmem:[#allocation2 + $0x52] sm:$0xff] }
 0x3a8   : > { %2631 = vst [vmem:[#allocation2 + $0x198] sm:$0x1] %v2613_v9  ;;  %v3106_v54 = vpack.c.bf16 %v3078_v30, %v3077_v18 }
 0x3a9   : > { %2667 = vst [vmem:[#allocation2 + $0x1a9] sm:$0x1] %v2649_v48 }
 0x3b0   : > { %3436 = vmatmul.bf16.gmra.mxu0 %v3339_v16 }
 0x3b4   : > { %3000 = vmatmul.bf16.gmra.mxu2 %v3338_v50  ;;  %v3321_v50 = vld [vmem:[#allocation2 + $0xd8] sm:$0xff] }
 0x3b5   : > { %3202 = vmatmul.bf16.gmra.mxu3 %v3105_v28  ;;  %v3345_v53 = vpack.c.bf16 %v3322_v51, %v3321_v50  ;;  %v3094_v51 = vld [vmem:[#allocation2 + $0x112] sm:$0xff] }
 0x3b7   : > { %2878 = vmatmul.bf16.gmra.mxu1 %v7898_v4  ;;  %v3079_v4 = vld [vmem:[#allocation2 + $0x62] sm:$0xff] }
 0x3b8   : > { %v3107_v1 = vpack.c.bf16 %v3080_v41, %v3079_v4  ;;  %v5999_v4 = vld [vmem:[%s8937_s3 + $0x108] sm:$0xff] }
 0x3c0   : > { %3441 = vmatmul.bf16.gmra.mxu0 %v3340_v8 }
 0x3c4   : > { %3005 = vmatmul.bf16.gmra.mxu2 %v3339_v16 }
 0x3c5   : > { %3207 = vmatmul.bf16.gmra.mxu3 %v3106_v54 }
 0x3c7   : > { %2883 = vmatmul.bf16.gmra.mxu1 %v7900_v37  ;;  %v6001_v37 = vld [vmem:[%s8937_s3 + $0x118] sm:$0xff] }
 0x3c8   : > { %3656 = vmatpush.bf16.msrb.mxu1 %v6001_v37 }
 0x3cc   : > { %3657 = vmatpush.bf16.msrb.mxu1 %v6000_v14 }
 0x3d0   : > { %3446 = vmatmul.bf16.gmra.mxu0 %v3341_v27  ;;  %3658 = vmatpush.bf16.msrb.mxu1 %v5999_v4 }
 0x3d4   : > { %3010 = vmatmul.bf16.gmra.mxu2 %v3340_v8  ;;  %v3089_v8 = vld [vmem:[#allocation2 + $0xda] sm:$0xff] }
 0x3d5   : > { %3212 = vmatmul.bf16.gmra.mxu3 %v3107_v1  ;;  %v3112_v18 = vpack.c.bf16 %v3090_v45, %v3089_v8  ;;  %v3325_v1 = vld [vmem:[#allocation2 + $0x108] sm:$0xff] }
 0x3d6   : > { %v3096_v45 = vld [vmem:[#allocation2 + $0x12a] sm:$0xff]  ;;  %v3095_v8 = vld [vmem:[#allocation2 + $0x122] sm:$0xff] }
 0x3d7   : > { %2888 = vmatmul.bf16.gmra.mxu1 %v7908_v61  ;;  %v3084_v61 = vld [vmem:[#allocation2 + $0x9a] sm:$0xff] }
 0x3d8   : > { %v3109_v58 = vpack.c.bf16 %v3084_v61, %v3083_v34 }
 0x3e0   : > { %3451 = vmatmul.bf16.gmra.mxu0 %v3342_v55 }
 0x3e4   : > { %3015 = vmatmul.bf16.gmra.mxu2 %v3341_v27  ;;  %v2854_v11 = vpop.f32.mrf.mxu1 }
 0x3e5   : > { %3217 = vmatmul.bf16.gmra.mxu3 %v3108_v2 }
 0x3e7   : > { %2893 = vmatmul.bf16.gmra.mxu1 %v7918_v32  ;;  %v3110_v32 = vpack.c.bf16 %v3086_v29, %v3085_v44 }
 0x3ec   : > { %v2856_v56 = vpop.f32.mrf.mxu1 }
 0x3f0   : > { %3456 = vmatmul.bf16.gmra.mxu0 %v3343_v60 }
 0x3f4   : > { %3020 = vmatmul.bf16.gmra.mxu2 %v3342_v55  ;;  %v2859_v57 = vpop.f32.mrf.mxu1  ;;  %v3326_v55 = vld [vmem:[#allocation2 + $0x110] sm:$0xff] }
 0x3f5   : > { %3222 = vmatmul.bf16.gmra.mxu3 %v3109_v58  ;;  %v3347_v19 = vpack.c.bf16 %v3326_v55, %v3325_v1 }
 0x3f7   : > { %2898 = vmatmul.bf16.gmra.mxu1 %v7925_v47 }
 0x3fc   : > { %v2861_v43 = vpop.f32.mrf.mxu1 }
 0x400   : > { %3461 = vmatmul.bf16.gmra.mxu0 %v3344_v0 }
 0x404   : > { %3025 = vmatmul.bf16.gmra.mxu2 %v3343_v60  ;;  %v7978_v42 = vpop.f32.mrf.mxu1 }
 0x405   : > { %3227 = vmatmul.bf16.gmra.mxu3 %v3110_v32 }
 0x407   : > { %2903 = vmatmul.bf16.gmra.mxu1 %v7935_v23  ;;  %v3323_v23 = vld [vmem:[#allocation2 + $0xf0] sm:$0xff] }
 0x408   : > { %v3346_v28 = vpack.c.bf16 %v3324_v31, %v3323_v23  ;;  %v3329_v23 = vld [vmem:[#allocation2 + $0x138] sm:$0xff]  ;;  %v3330_v31 = vld [vmem:[#allocation2 + $0x140] sm:$0xff] }
 0x40c   : > { %v7984_v63 = vpop.f32.mrf.mxu1 }
 0x40d   : > { %v3427_v47 = vpop.f32.mrf.mxu0 }
 0x410   : > { %3466 = vmatmul.bf16.gmra.mxu0 %v3345_v53 }
 0x414   : > { %3030 = vmatmul.bf16.gmra.mxu2 %v3344_v0  ;;  %v7986_v10 = vpop.f32.mrf.mxu1  ;;  %v3327_v0 = vld [vmem:[#allocation2 + $0x120] sm:$0xff] }
 0x415   : > { %3232 = vmatmul.bf16.gmra.mxu3 %v3111_v20  ;;  %v3429_v21 = vpop.f32.mrf.mxu0 }
 0x417   : > { %v2991_v7 = vpop.f32.mrf.mxu2  ;;  %2908 = vmatmul.bf16.gmra.mxu1 %v7942_v12 }
 0x418   : > { %v2992_v24 = vadd.f32 %v2991_v7, %v2854_v11  ;;  %v3193_v46 = vpop.f32.mrf.mxu3  ;;  %v3092_v11 = vld [vmem:[#allocation2 + $0xfa] sm:$0xff] }
 0x419   : > { %v3113_v61 = vpack.c.bf16 %v3092_v11, %v3091_v62  ;;  %v6020_v11 = vld [vmem:[%s8937_s3 + $0x1b0] sm:$0xff] }
 0x41a   : > { %v3273_v59 = vadd.f32 %v3193_v46, %v2992_v24  ;;  %v3331_v62 = vld [vmem:[#allocation2 + $0x150] sm:$0xff] }
 0x41c   : > { %v7989_v16 = vadd.f32 %v3427_v47, %v3273_v59  ;;  %v7991_v30 = vpop.f32.mrf.mxu1 }
 0x41d   : > { %v3432_v13 = vpop.f32.mrf.mxu0 }
 0x41f   : > { %v2993_v3 = vpop.f32.mrf.mxu2 }
 0x420   : > { %v2994_v9 = vadd.f32 %v2993_v3, %v2856_v56  ;;  %v3195_v48 = vpop.f32.mrf.mxu3  ;;  %3471 = vmatmul.bf16.gmra.mxu0 %v3346_v28 }
 0x422   : > { %v3274_v33 = vadd.f32 %v3195_v48, %v2994_v9 }
 0x424   : > { %3035 = vmatmul.bf16.gmra.mxu2 %v3345_v53  ;;  %v7993_v54 = vadd.f32 %v3429_v21, %v3274_v33  ;;  %v7995_v41 = vpop.f32.mrf.mxu1 }
 0x425   : > { %3237 = vmatmul.bf16.gmra.mxu3 %v3112_v18  ;;  %v3434_v12 = vpop.f32.mrf.mxu0 }
 0x427   : > { %v2996_v52 = vpop.f32.mrf.mxu2  ;;  %2913 = vmatmul.bf16.gmra.mxu1 %v7946_v5 }
 0x428   : > { %v2997_v49 = vadd.f32 %v2996_v52, %v2859_v57  ;;  %v3198_v26 = vpop.f32.mrf.mxu3  ;;  %v6013_v52 = vld [vmem:[%s8937_s3 + $0x178] sm:$0xff] }
 0x429   : > { %3886 = vmatpush.bf16.msra.mxu2 %v6013_v52  ;;  %v6007_v52 = vld [vmem:[%s8937_s3 + $0x148] sm:$0xff] }
 0x42a   : > { %v3275_v27 = vadd.f32 %v3198_v26, %v2997_v49  ;;  %v6021_v49 = vld [vmem:[%s8937_s3 + $0x1b8] sm:$0xff]  ;;  %v2762_v26 = vld [vmem:[#allocation2 + $0x169] sm:$0xff] }
 0x42b   : > { %4121 = vmatpush.bf16.msra.mxu3 %v6021_v49 }
 0x42c   : > { %v8001_v25 = vadd.f32 %v3432_v13, %v3275_v27  ;;  %v8003_v60 = vpop.f32.mrf.mxu1  ;;  %v2763_v27 = vld [vmem:[#allocation2 + $0x171] sm:$0xff] }
 0x42d   : > { %v3437_v15 = vpop.f32.mrf.mxu0 }
 0x42f   : > { %v2998_v40 = vpop.f32.mrf.mxu2  ;;  %4122 = vmatpush.bf16.msra.mxu3 %v6020_v11  ;;  %v6006_v11 = vld [vmem:[%s8937_s3 + $0x140] sm:$0xff] }
 0x430   : > { %v2999_v2 = vadd.f32 %v2998_v40, %v2861_v43  ;;  %v3200_v37 = vpop.f32.mrf.mxu3  ;;  %3476 = vmatmul.bf16.gmra.mxu0 %v3347_v19  ;;  %v3328_v43 = vld [vmem:[#allocation2 + $0x128] sm:$0xff] }
 0x431   : > { %v3348_v32 = vpack.c.bf16 %v3328_v43, %v3327_v0  ;;  %v3098_v43 = vld [vmem:[#allocation2 + $0x142] sm:$0xff] }
 0x432   : > { %v3276_v35 = vadd.f32 %v3200_v37, %v2999_v2  ;;  %v6012_v37 = vld [vmem:[%s8937_s3 + $0x170] sm:$0xff] }
 0x433   : > { %3887 = vmatpush.bf16.msra.mxu2 %v6012_v37 }
 0x434   : > { %3040 = vmatmul.bf16.gmra.mxu2 %v3346_v28  ;;  %v8005_v56 = vadd.f32 %v3434_v12, %v3276_v35  ;;  %v8008_v17 = vpop.f32.mrf.mxu1  ;;  %v3349_v28 = vpack.c.bf16 %v3330_v31, %v3329_v23  ;;  %v3115_v12 = vpack.c.bf16 %v3096_v45, %v3095_v8  ;;  %v6028_v35 = vld [vmem:[%s8937_s3 + $0x1f0] sm:$0xff]  ;;  %v6037_v8 = vld [vmem:[%s8937_s3 + $0x238] sm:$0xff] }
 0x435   : > { %3242 = vmatmul.bf16.gmra.mxu3 %v3113_v61  ;;  %v3439_v5 = vpop.f32.mrf.mxu0  ;;  %v6016_v45 = vld [vmem:[%s8937_s3 + $0x190] sm:$0xff] }
 0x437   : > { %v3001_v34 = vpop.f32.mrf.mxu2  ;;  %2918 = vmatmul.bf16.gmra.mxu1 %v7948_v6 }
 0x438   : > { %v3002_v58 = vadd.f32 %v3001_v34, %v7978_v42  ;;  %v3203_v57 = vpop.f32.mrf.mxu3  ;;  %v3093_v42 = vld [vmem:[#allocation2 + $0x10a] sm:$0xff] }
 0x439   : > { %v3114_v36 = vpack.c.bf16 %v3094_v51, %v3093_v42  ;;  %v6019_v34 = vld [vmem:[%s8937_s3 + $0x1a8] sm:$0xff]  ;;  %v6010_v51 = vld [vmem:[%s8937_s3 + $0x160] sm:$0xff] }
 0x43a   : > { %v3277_v38 = vadd.f32 %v3203_v57, %v3002_v58  ;;  %v6027_v58 = vld [vmem:[%s8937_s3 + $0x1e8] sm:$0xff]  ;;  %4123 = vmatpush.bf16.msra.mxu3 %v6019_v34  ;;  %v4242_v34 = vld [vmem:[#allocation2 + $0x31] sm:$0xff] }
 0x43c   : > { %v8011_v29 = vadd.f32 %v3437_v15, %v3277_v38  ;;  %v8014_v39 = vpop.f32.mrf.mxu1 }
 0x43d   : > { %v3442_v44 = vpop.f32.mrf.mxu0 }
 0x43f   : > { %v3003_v14 = vpop.f32.mrf.mxu2 }
 0x440   : > { %v3004_v50 = vadd.f32 %v3003_v14, %v7984_v63  ;;  %v3205_v47 = vpop.f32.mrf.mxu3  ;;  %3481 = vmatmul.bf16.gmra.mxu0 %v3348_v32  ;;  %v5998_v63 = vld [vmem:[%s8937_s3 + $0x100] sm:$0xff] }
 0x441   : > { %3659 = vmatpush.bf16.msrb.mxu1 %v5998_v63 }
 0x442   : > { %v3278_v53 = vadd.f32 %v3205_v47, %v3004_v50 }
 0x444   : > { %3045 = vmatmul.bf16.gmra.mxu2 %v3347_v19  ;;  %v8016_v20 = vadd.f32 %v3439_v5, %v3278_v53  ;;  %v8019_v59 = vpop.f32.mrf.mxu1  ;;  %v2779_v19 = vpack.c.bf16 %v2763_v27, %v2762_v26  ;;  %v3332_v5 = vld [vmem:[#allocation2 + $0x158] sm:$0xff]  ;;  %v6026_v53 = vld [vmem:[%s8937_s3 + $0x1e0] sm:$0xff]  ;;  %v6023_v26 = vld [vmem:[%s8937_s3 + $0x1c8] sm:$0xff] }
 0x445   : > { %3247 = vmatmul.bf16.gmra.mxu3 %v3114_v36  ;;  %v3444_v6 = vpop.f32.mrf.mxu0  ;;  %v8064_v57 = vpack.c.bf16 %v3332_v5, %v3331_v62  ;;  %4589 = vmatpush.bf16.msra.mxu1 %v6037_v8  ;;  %v6036_v8 = vld [vmem:[%s8937_s3 + $0x230] sm:$0xff] }
 0x447   : > { %v3006_v21 = vpop.f32.mrf.mxu2  ;;  %2923 = vmatmul.bf16.gmra.mxu1 %v7950_v22 }
 0x448   : > { %v3007_v7 = vadd.f32 %v3006_v21, %v7986_v10  ;;  %v3208_v24 = vpop.f32.mrf.mxu3  ;;  %v3539_v21 = vld [vmem:[#allocation2 + $0x19] sm:$0xff] }
 0x449   : > { %4590 = vmatpush.bf16.msra.mxu1 %v6036_v8 }
 0x44a   : > { %v3279_v46 = vadd.f32 %v3208_v24, %v3007_v7  ;;  %v6017_v7 = vld [vmem:[%s8937_s3 + $0x198] sm:$0xff] }
 0x44b   : > { %v6025_v24 = vld [vmem:[%s8937_s3 + $0x1d8] sm:$0xff] }
 0x44c   : > { %v8025_v3 = vadd.f32 %v3442_v44, %v3279_v46  ;;  %v8028_v18 = vpop.f32.mrf.mxu1  ;;  %v3540_v46 = vld [vmem:[#allocation2 + $0x21] sm:$0xff] }
 0x44d   : > { %v3447_v13 = vpop.f32.mrf.mxu0  ;;  %v3571_v31 = vpack.c.bf16 %v3540_v46, %v3539_v21 }
 0x44f   : > { %v3008_v9 = vpop.f32.mrf.mxu2 }
 0x450   : > { %v3009_v10 = vadd.f32 %v3008_v9, %v7991_v30  ;;  %v3210_v48 = vpop.f32.mrf.mxu3  ;;  %3486 = vmatmul.bf16.gmra.mxu0 %v3349_v28  ;;  %v6029_v30 = vld [vmem:[%s8937_s3 + $0x1f8] sm:$0xff] }
 0x451   : > { %4355 = vmatpush.bf16.msra.mxu0 %v6029_v30  ;;  %v6015_v30 = vld [vmem:[%s8937_s3 + $0x188] sm:$0xff] }
 0x452   : > { %v3280_v33 = vadd.f32 %v3210_v48, %v3009_v10  ;;  %v6008_v48 = vld [vmem:[%s8937_s3 + $0x150] sm:$0xff] }
 0x454   : > { %3050 = vmatmul.bf16.gmra.mxu2 %v3348_v32  ;;  %v8039_v4 = vadd.f32 %v3444_v6, %v3280_v33  ;;  %v8042_v2 = vpop.f32.mrf.mxu1  ;;  %v3097_v32 = vld [vmem:[#allocation2 + $0x13a] sm:$0xff]  ;;  %v3333_v33 = vld [vmem:[#allocation2 + $0x168] sm:$0xff] }
 0x455   : > { %3252 = vmatmul.bf16.gmra.mxu3 %v3115_v12  ;;  %v3449_v22 = vpop.f32.mrf.mxu0  ;;  %4356 = vmatpush.bf16.msra.mxu0 %v6028_v35  ;;  %v3116_v42 = vpack.c.bf16 %v3098_v43, %v3097_v32  ;;  %v6009_v6 = vld [vmem:[%s8937_s3 + $0x158] sm:$0xff]  ;;  %v6014_v35 = vld [vmem:[%s8937_s3 + $0x180] sm:$0xff] }
 0x457   : > { %v3011_v1 = vpop.f32.mrf.mxu2  ;;  %2928 = vmatmul.bf16.gmra.mxu1 %v2779_v19  ;;  %v3099_v19 = vld [vmem:[#allocation2 + $0x152] sm:$0xff] }
 0x458   : > { %v3012_v15 = vadd.f32 %v3011_v1, %v7995_v41  ;;  %v3213_v55 = vpop.f32.mrf.mxu3  ;;  %v6011_v41 = vld [vmem:[%s8937_s3 + $0x168] sm:$0xff] }
 0x459   : > { %3888 = vmatpush.bf16.msra.mxu2 %v6011_v41  ;;  %4357 = vmatpush.bf16.msra.mxu0 %v6027_v58  ;;  %v4243_v58 = vld [vmem:[#allocation2 + $0x39] sm:$0xff] }
 0x45a   : > { %v3281_v40 = vadd.f32 %v3213_v55, %v3012_v15  ;;  %v3100_v55 = vld [vmem:[#allocation2 + $0x15a] sm:$0xff]  ;;  %v4274_v43 = vpack.c.bf16 %v4243_v58, %v4242_v34 }
 0x45b   : > { %v3117_v62 = vpack.c.bf16 %v3100_v55, %v3099_v19  ;;  %v4009_v55 = vld [vmem:[#allocation2 + $0x38] sm:$0xff] }
 0x45c   : > { %v8068_v14 = vadd.f32 %v3447_v13, %v3281_v40  ;;  %v8070_v47 = vpop.f32.mrf.mxu1 }
 0x45d   : > { %v8056_v61 = vpop.f32.mrf.mxu0  ;;  %3889 = vmatpush.bf16.msra.mxu2 %v6010_v51  ;;  %4358 = vmatpush.bf16.msra.mxu0 %v6026_v53  ;;  %v3335_v51 = vld [vmem:[#allocation2 + $0x180] sm:$0xff] }
 0x45f   : > { %v3013_v38 = vpop.f32.mrf.mxu2 }
 0x460   : > { %v3014_v0 = vadd.f32 %v3013_v38, %v8003_v60  ;;  %v3215_v44 = vpop.f32.mrf.mxu3  ;;  %3491 = vmatmul.bf16.gmra.mxu0 %v8064_v57  ;;  %v6018_v60 = vld [vmem:[%s8937_s3 + $0x1a0] sm:$0xff] }
 0x461   : > { %4124 = vmatpush.bf16.msra.mxu3 %v6018_v60  ;;  %3890 = vmatpush.bf16.msra.mxu2 %v6009_v6  ;;  %v3336_v60 = vld [vmem:[#allocation2 + $0x188] sm:$0xff] }
 0x462   : > { %v3282_v50 = vadd.f32 %v3215_v44, %v3014_v0  ;;  %4359 = vmatpush.bf16.msra.mxu0 %v6025_v24  ;;  %v3352_v53 = vpack.c.bf16 %v3336_v60, %v3335_v51  ;;  %v3101_v24 = vld [vmem:[#allocation2 + $0x16a] sm:$0xff] }
 0x464   : > { %3055 = vmatmul.bf16.gmra.mxu2 %v3349_v28  ;;  %v8093_v28 = vadd.f32 %v3449_v22, %v3282_v50  ;;  %v8095_v10 = vpop.f32.mrf.mxu1  ;;  %v3334_v22 = vld [vmem:[#allocation2 + $0x170] sm:$0xff] }
 0x465   : > { %3257 = vmatmul.bf16.gmra.mxu3 %v3116_v42  ;;  %v8081_v36 = vpop.f32.mrf.mxu0  ;;  %3891 = vmatpush.bf16.msra.mxu2 %v6008_v48  ;;  %v3351_v49 = vpack.c.bf16 %v3334_v22, %v3333_v33 }
 0x466   : > { %4125 = vmatpush.bf16.msra.mxu3 %v6017_v7  ;;  %v3102_v7 = vld [vmem:[#allocation2 + $0x172] sm:$0xff] }
 0x467   : > { %v3016_v63 = vpop.f32.mrf.mxu2  ;;  %3660 = vmatmul.bf16.vlgmr.msrb.gmra.mxu1 %v3571_v31  ;;  %v4245_v31 = vld [vmem:[#allocation2 + $0x51] sm:$0xff] }
 0x468   : > { %v3017_v23 = vadd.f32 %v3016_v63, %v8008_v17  ;;  %v3218_v13 = vpop.f32.mrf.mxu3  ;;  %v6024_v17 = vld [vmem:[%s8937_s3 + $0x1d0] sm:$0xff]  ;;  %v3118_v63 = vpack.c.bf16 %v3102_v7, %v3101_v24 }
 0x469   : > { %4360 = vmatpush.bf16.msra.mxu0 %v6024_v17  ;;  %3892 = vmatpush.bf16.msra.mxu2 %v6007_v52 }
 0x46a   : > { %v3283_v9 = vadd.f32 %v3218_v13, %v3017_v23  ;;  %4126 = vmatpush.bf16.msra.mxu3 %v6016_v45 }
 0x46c   : > { %v8119_v37 = vpop.f32.mrf.mxu1  ;;  %v8131_v41 = vadd.f32 %v8056_v61, %v3283_v9 }
 0x46d   : > { %v3457_v12 = vpop.f32.mrf.mxu0  ;;  %4361 = vmatpush.bf16.msra.mxu0 %v6023_v26  ;;  %3893 = vmatpush.bf16.msra.mxu2 %v6006_v11 }
 0x46e   : > { %4127 = vmatpush.bf16.msra.mxu3 %v6015_v30 }
 0x46f   : > { %v3018_v27 = vpop.f32.mrf.mxu2 }
 0x470   : > { %v3019_v1 = vadd.f32 %v3018_v27, %v8014_v39  ;;  %v3220_v15 = vpop.f32.mrf.mxu3  ;;  %3496 = vmatmul.bf16.gmra.mxu0 %v3351_v49  ;;  %v6022_v39 = vld [vmem:[%s8937_s3 + $0x1c0] sm:$0xff] }
 0x471   : > { %4362 = vmatpush.bf16.msra.mxu0 %v6022_v39  ;;  %v3773_v27 = vld [vmem:[#allocation2 + $0x1a] sm:$0xff]  ;;  %v4247_v39 = vld [vmem:[#allocation2 + $0x69] sm:$0xff] }
 0x472   : > { %v3284_v40 = vadd.f32 %v3220_v15, %v3019_v1  ;;  %4128 = vmatpush.bf16.msra.mxu3 %v6014_v35  ;;  %v4246_v35 = vld [vmem:[#allocation2 + $0x61] sm:$0xff] }
 0x473   : > { %v4276_v58 = vpack.c.bf16 %v4247_v39, %v4246_v35  ;;  %v4250_v39 = vld [vmem:[#allocation2 + $0x91] sm:$0xff] }
 0x474   : > { %3060 = vmatmul.bf16.gmra.mxu2 %v8064_v57  ;;  %v8135_v50 = vpop.f32.mrf.mxu1  ;;  %v8138_v61 = vadd.f32 %v8081_v36, %v3284_v40  ;;  %v4244_v36 = vld [vmem:[#allocation2 + $0x49] sm:$0xff] }
 0x475   : > { %3262 = vmatmul.bf16.gmra.mxu3 %v3117_v62  ;;  %v3459_v5 = vpop.f32.mrf.mxu0 }
 0x477   : > { %v3021_v38 = vpop.f32.mrf.mxu2  ;;  %3665 = vmatmul.bf16.gmra.mxu1 %v4274_v43 }
 0x478   : > { %v3022_v0 = vadd.f32 %v3021_v38, %v8019_v59  ;;  %v3223_v44 = vpop.f32.mrf.mxu3 }
 0x47a   : > { %v3285_v32 = vadd.f32 %v3223_v44, %v3022_v0 }
 0x47c   : > { %v8141_v46 = vpop.f32.mrf.mxu1  ;;  %v8143_v13 = vadd.f32 %v3457_v12, %v3285_v32  ;;  %v3776_v32 = vld [vmem:[#allocation2 + $0x3a] sm:$0xff] }
 0x47d   : > { %v3462_v57 = vpop.f32.mrf.mxu0 }
 0x47f   : > { %v3023_v42 = vpop.f32.mrf.mxu2 }
 0x480   : > { %v3024_v6 = vadd.f32 %v3023_v42, %v8028_v18  ;;  %v3225_v21 = vpop.f32.mrf.mxu3  ;;  %3501 = vmatmul.bf16.gmra.mxu0 %v3352_v53  ;;  %v4275_v18 = vpack.c.bf16 %v4245_v31, %v4244_v36  ;;  %v4010_v42 = vld [vmem:[#allocation2 + $0x48] sm:$0xff] }
 0x482   : > { %v3286_v59 = vadd.f32 %v3225_v21, %v3024_v6 }
 0x484   : > { %3065 = vmatmul.bf16.gmra.mxu2 %v3351_v49  ;;  %v8146_v33 = vpop.f32.mrf.mxu1  ;;  %v8151_v52 = vadd.f32 %v3459_v5, %v3286_v59  ;;  %v3774_v49 = vld [vmem:[#allocation2 + $0x22] sm:$0xff] }
 0x485   : > { %3267 = vmatmul.bf16.gmra.mxu3 %v3118_v63  ;;  %v3464_v23 = vpop.f32.mrf.mxu0  ;;  %v3805_v15 = vpack.c.bf16 %v3774_v49, %v3773_v27  ;;  %v4248_v63 = vld [vmem:[#allocation2 + $0x79] sm:$0xff] }
 0x486   : > { %v3778_v49 = vld [vmem:[#allocation2 + $0x52] sm:$0xff] }
 0x487   : > { %v3026_v9 = vpop.f32.mrf.mxu2  ;;  %3670 = vmatmul.bf16.gmra.mxu1 %v4275_v18 }
 0x488   : > { %v3027_v48 = vadd.f32 %v3026_v9, %v8042_v2  ;;  %v3228_v45 = vpop.f32.mrf.mxu3  ;;  %v4008_v2 = vld [vmem:[#allocation2 + $0x30] sm:$0xff] }
 0x489   : > { %v4040_v40 = vpack.c.bf16 %v4009_v55, %v4008_v2  ;;  %v3777_v2 = vld [vmem:[#allocation2 + $0x4a] sm:$0xff] }
 0x48a   : > { %v3287_v17 = vadd.f32 %v3228_v45, %v3027_v48 }
 0x48c   : > { %v8154_v19 = vpop.f32.mrf.mxu1  ;;  %v8156_v5 = vadd.f32 %v3462_v57, %v3287_v17  ;;  %v3775_v57 = vld [vmem:[#allocation2 + $0x32] sm:$0xff]  ;;  %v6035_v17 = vld [vmem:[%s8937_s3 + $0x228] sm:$0xff] }
 0x48d   : > { %v3467_v22 = vpop.f32.mrf.mxu0  ;;  %v8164_v21 = vpack.c.bf16 %v3776_v32, %v3775_v57  ;;  %4591 = vmatpush.bf16.msra.mxu1 %v6035_v17 }
 0x48f   : > { %v3028_v12 = vpop.f32.mrf.mxu2 }
 0x490   : > { %v3029_v30 = vadd.f32 %v3028_v12, %v8070_v47  ;;  %v3230_v26 = vpop.f32.mrf.mxu3  ;;  %4363 = vmatmul.bf16.vlgmr.msra.gmra.mxu0 %v4274_v43 }
 0x492   : > { %v3288_v1 = vadd.f32 %v3230_v26, %v3029_v30 }
 0x494   : > { %3894 = vmatmul.bf16.vlgmr.msra.gmra.mxu2 %v3805_v15  ;;  %v8159_v0 = vpop.f32.mrf.mxu1  ;;  %v8161_v51 = vadd.f32 %v3464_v23, %v3288_v1  ;;  %v4249_v23 = vld [vmem:[#allocation2 + $0x81] sm:$0xff]  ;;  %v8180_v1 = vpack.c.bf16 %v3778_v49, %v3777_v2 }
 0x495   : > { %4129 = vmatmul.bf16.vlgmr.msra.gmra.mxu3 %v4040_v40  ;;  %v3469_v11 = vpop.f32.mrf.mxu0  ;;  %v4277_v9 = vpack.c.bf16 %v4249_v23, %v4248_v63  ;;  %v4013_v15 = vld [vmem:[#allocation2 + $0x68] sm:$0xff] }
 0x497   : > { %v3031_v62 = vpop.f32.mrf.mxu2  ;;  %3675 = vmatmul.bf16.gmra.mxu1 %v4276_v58 }
 0x498   : > { %v3032_v47 = vadd.f32 %v3031_v62, %v8095_v10  ;;  %v3233_v34 = vpop.f32.mrf.mxu3  ;;  %v4011_v10 = vld [vmem:[#allocation2 + $0x50] sm:$0xff]  ;;  %v4251_v62 = vld [vmem:[#allocation2 + $0x99] sm:$0xff] }
 0x499   : > { %v4041_v59 = vpack.c.bf16 %v4011_v10, %v4010_v42  ;;  %v3779_v10 = vld [vmem:[#allocation2 + $0x62] sm:$0xff] }
 0x49a   : > { %v3289_v38 = vadd.f32 %v3233_v34, %v3032_v47 }
 0x49c   : > { %v8166_v7 = vpop.f32.mrf.mxu1  ;;  %v8170_v48 = vadd.f32 %v3467_v22, %v3289_v38 }
 0x49d   : > { %v3472_v44 = vpop.f32.mrf.mxu0 }
 0x49f   : > { %v3033_v43 = vpop.f32.mrf.mxu2 }
 0x4a0   : > { %v3034_v60 = vadd.f32 %v3033_v43, %v8119_v37  ;;  %v3235_v53 = vpop.f32.mrf.mxu3  ;;  %4368 = vmatmul.bf16.gmra.mxu0 %v4275_v18 }
 0x4a2   : > { %v3290_v6 = vadd.f32 %v3235_v53, %v3034_v60  ;;  %v3780_v53 = vld [vmem:[#allocation2 + $0x6a] sm:$0xff] }
 0x4a3   : > { %v8193_v63 = vpack.c.bf16 %v3780_v53, %v3779_v10  ;;  %v4254_v53 = vld [vmem:[#allocation2 + $0xc1] sm:$0xff] }
 0x4a4   : > { %3899 = vmatmul.bf16.gmra.mxu2 %v8164_v21  ;;  %v8172_v18 = vpop.f32.mrf.mxu1  ;;  %v8178_v22 = vadd.f32 %v3469_v11, %v3290_v6  ;;  %v4014_v6 = vld [vmem:[#allocation2 + $0x78] sm:$0xff] }
 0x4a5   : > { %4134 = vmatmul.bf16.gmra.mxu3 %v4041_v59  ;;  %v3474_v24 = vpop.f32.mrf.mxu0 }
 0x4a7   : > { %v3036_v36 = vpop.f32.mrf.mxu2  ;;  %3680 = vmatmul.bf16.gmra.mxu1 %v4277_v9 }
 0x4a8   : > { %v3037_v37 = vadd.f32 %v3036_v36, %v8135_v50  ;;  %v3238_v31 = vpop.f32.mrf.mxu3  ;;  %v4012_v50 = vld [vmem:[#allocation2 + $0x60] sm:$0xff] }
 0x4a9   : > { %v4042_v40 = vpack.c.bf16 %v4013_v15, %v4012_v50 }
 0x4aa   : > { %v3291_v45 = vadd.f32 %v3238_v31, %v3037_v37  ;;  %v4252_v31 = vld [vmem:[#allocation2 + $0xa9] sm:$0xff] }
 0x4ac   : > { %v8182_v55 = vpop.f32.mrf.mxu1  ;;  %v8186_v11 = vadd.f32 %v3472_v44, %v3291_v45  ;;  %v4015_v44 = vld [vmem:[#allocation2 + $0x80] sm:$0xff]  ;;  %v4253_v45 = vld [vmem:[#allocation2 + $0xb1] sm:$0xff] }
 0x4ad   : > { %v3477_v8 = vpop.f32.mrf.mxu0  ;;  %v4043_v36 = vpack.c.bf16 %v4015_v44, %v4014_v6 }
 0x4af   : > { %v3038_v12 = vpop.f32.mrf.mxu2 }
 0x4b0   : > { %v3039_v30 = vadd.f32 %v3038_v12, %v8141_v46  ;;  %v3240_v26 = vpop.f32.mrf.mxu3  ;;  %4373 = vmatmul.bf16.gmra.mxu0 %v4276_v58  ;;  %v4278_v58 = vpack.c.bf16 %v4251_v62, %v4250_v39  ;;  %v4279_v12 = vpack.c.bf16 %v4253_v45, %v4252_v31  ;;  %v3781_v39 = vld [vmem:[#allocation2 + $0x7a] sm:$0xff] }
 0x4b1   : > { %v3784_v31 = vld [vmem:[#allocation2 + $0x9a] sm:$0xff] }
 0x4b2   : > { %v3292_v27 = vadd.f32 %v3240_v26, %v3039_v30  ;;  %v6034_v26 = vld [vmem:[%s8937_s3 + $0x220] sm:$0xff] }
 0x4b3   : > { %4592 = vmatpush.bf16.msra.mxu1 %v6034_v26 }
 0x4b4   : > { %3904 = vmatmul.bf16.gmra.mxu2 %v8180_v1  ;;  %v8188_v43 = vpop.f32.mrf.mxu1  ;;  %v8191_v59 = vadd.f32 %v3474_v24, %v3292_v27  ;;  %v3782_v27 = vld [vmem:[#allocation2 + $0x82] sm:$0xff] }
 0x4b5   : > { %4139 = vmatmul.bf16.gmra.mxu3 %v4042_v40  ;;  %v3479_v35 = vpop.f32.mrf.mxu0 }
 0x4b7   : > { %v3041_v46 = vpop.f32.mrf.mxu2  ;;  %3685 = vmatmul.bf16.gmra.mxu1 %v4278_v58 }
 0x4b8   : > { %v3042_v47 = vadd.f32 %v3041_v46, %v8146_v33  ;;  %v3243_v34 = vpop.f32.mrf.mxu3  ;;  %v8209_v46 = vpack.c.bf16 %v3782_v27, %v3781_v39 }
 0x4ba   : > { %v3293_v38 = vadd.f32 %v3243_v34, %v3042_v47  ;;  %v4017_v47 = vld [vmem:[#allocation2 + $0x98] sm:$0xff] }
 0x4bc   : > { %v8195_v23 = vpop.f32.mrf.mxu1  ;;  %v8199_v24 = vadd.f32 %v3477_v8, %v3293_v38 }
 0x4bd   : > { %v3482_v32 = vpop.f32.mrf.mxu0 }
 0x4bf   : > { %v3043_v60 = vpop.f32.mrf.mxu2 }
 0x4c0   : > { %v3044_v42 = vadd.f32 %v3043_v60, %v8154_v19  ;;  %v3245_v57 = vpop.f32.mrf.mxu3  ;;  %4378 = vmatmul.bf16.gmra.mxu0 %v4277_v9 }
 0x4c2   : > { %v3294_v33 = vadd.f32 %v3245_v57, %v3044_v42  ;;  %v4255_v42 = vld [vmem:[#allocation2 + $0xc9] sm:$0xff] }
 0x4c3   : > { %v4280_v6 = vpack.c.bf16 %v4255_v42, %v4254_v53  ;;  %v6033_v53 = vld [vmem:[%s8937_s3 + $0x218] sm:$0xff] }
 0x4c4   : > { %3909 = vmatmul.bf16.gmra.mxu2 %v8193_v63  ;;  %v8201_v30 = vpop.f32.mrf.mxu1  ;;  %v8207_v8 = vadd.f32 %v3479_v35, %v3294_v33  ;;  %4593 = vmatpush.bf16.msra.mxu1 %v6033_v53 }
 0x4c5   : > { %4144 = vmatmul.bf16.gmra.mxu3 %v4043_v36  ;;  %v3484_v37 = vpop.f32.mrf.mxu0 }
 0x4c7   : > { %v3046_v19 = vpop.f32.mrf.mxu2  ;;  %3690 = vmatmul.bf16.gmra.mxu1 %v4279_v12 }
 0x4c8   : > { %v3047_v17 = vadd.f32 %v3046_v19, %v8159_v0  ;;  %v3248_v9 = vpop.f32.mrf.mxu3  ;;  %v4016_v0 = vld [vmem:[#allocation2 + $0x90] sm:$0xff] }
 0x4c9   : > { %v4044_v38 = vpack.c.bf16 %v4017_v47, %v4016_v0  ;;  %v4257_v0 = vld [vmem:[#allocation2 + $0xe1] sm:$0xff] }
 0x4ca   : > { %v3295_v49 = vadd.f32 %v3248_v9, %v3047_v17  ;;  %v4018_v17 = vld [vmem:[#allocation2 + $0xa8] sm:$0xff]  ;;  %v3783_v9 = vld [vmem:[#allocation2 + $0x92] sm:$0xff] }
 0x4cc   : > { %v8211_v34 = vpop.f32.mrf.mxu1  ;;  %v8215_v35 = vadd.f32 %v3482_v32, %v3295_v49  ;;  %v4019_v32 = vld [vmem:[#allocation2 + $0xb0] sm:$0xff] }
 0x4cd   : > { %v3487_v50 = vpop.f32.mrf.mxu0  ;;  %v4045_v27 = vpack.c.bf16 %v4019_v32, %v4018_v17  ;;  %v4021_v17 = vld [vmem:[#allocation2 + $0xc8] sm:$0xff] }
 0x4cf   : > { %v3048_v2 = vpop.f32.mrf.mxu2 }
 0x4d0   : > { %v3049_v15 = vadd.f32 %v3048_v2, %v8166_v7  ;;  %v3250_v40 = vpop.f32.mrf.mxu3  ;;  %4383 = vmatmul.bf16.gmra.mxu0 %v4278_v58  ;;  %v8222_v2 = vpack.c.bf16 %v3784_v31, %v3783_v9  ;;  %v4020_v31 = vld [vmem:[#allocation2 + $0xc0] sm:$0xff] }
 0x4d2   : > { %v3296_v62 = vadd.f32 %v3250_v40, %v3049_v15  ;;  %v4256_v40 = vld [vmem:[#allocation2 + $0xd9] sm:$0xff] }
 0x4d3   : > { %v4281_v47 = vpack.c.bf16 %v4257_v0, %v4256_v40  ;;  %v4259_v40 = vld [vmem:[#allocation2 + $0xf9] sm:$0xff] }
 0x4d4   : > { %3914 = vmatmul.bf16.gmra.mxu2 %v8209_v46  ;;  %v8217_v33 = vpop.f32.mrf.mxu1  ;;  %v8220_v26 = vadd.f32 %v3484_v37, %v3296_v62 }
 0x4d5   : > { %4149 = vmatmul.bf16.gmra.mxu3 %v4044_v38  ;;  %v3489_v60 = vpop.f32.mrf.mxu0 }
 0x4d7   : > { %v3051_v7 = vpop.f32.mrf.mxu2  ;;  %3695 = vmatmul.bf16.gmra.mxu1 %v4280_v6 }
 0x4d8   : > { %v3052_v57 = vadd.f32 %v3051_v7, %v8172_v18  ;;  %v3253_v58 = vpop.f32.mrf.mxu3 }
 0x4da   : > { %v3297_v10 = vadd.f32 %v3253_v58, %v3052_v57  ;;  %v3786_v58 = vld [vmem:[#allocation2 + $0xb2] sm:$0xff] }
 0x4dc   : > { %v8224_v49 = vpop.f32.mrf.mxu1  ;;  %v8228_v37 = vadd.f32 %v3487_v50, %v3297_v10  ;;  %v3785_v50 = vld [vmem:[#allocation2 + $0xaa] sm:$0xff] }
 0x4dd   : > { %v3492_v44 = vpop.f32.mrf.mxu0 }
 0x4df   : > { %v3053_v36 = vpop.f32.mrf.mxu2 }
 0x4e0   : > { %v3054_v45 = vadd.f32 %v3053_v36, %v8182_v55  ;;  %v3255_v19 = vpop.f32.mrf.mxu3  ;;  %4388 = vmatmul.bf16.gmra.mxu0 %v4279_v12 }
 0x4e2   : > { %v3298_v18 = vadd.f32 %v3255_v19, %v3054_v45  ;;  %v8239_v19 = vpack.c.bf16 %v3786_v58, %v3785_v50 }
 0x4e4   : > { %3919 = vmatmul.bf16.gmra.mxu2 %v8222_v2  ;;  %v3661_v38 = vpop.f32.mrf.mxu1  ;;  %v8237_v10 = vadd.f32 %v3489_v60, %v3298_v18 }
 0x4e5   : > { %4154 = vmatmul.bf16.gmra.mxu3 %v4045_v27  ;;  %v3494_v15 = vpop.f32.mrf.mxu0  ;;  %v8234_v42 = vadd.f32 %v3661_v38, %v7989_v16  ;;  %v4046_v16 = vpack.c.bf16 %v4021_v17, %v4020_v31  ;;  %v3787_v31 = vld [vmem:[#allocation2 + $0xc2] sm:$0xff] }
 0x4e7   : > { %v3056_v55 = vpop.f32.mrf.mxu2  ;;  %3700 = vmatmul.bf16.gmra.mxu1 %v4281_v47 }
 0x4e8   : > { %v3057_v39 = vadd.f32 %v3056_v55, %v8188_v43  ;;  %v3258_v12 = vpop.f32.mrf.mxu3 }
 0x4ea   : > { %v3299_v62 = vadd.f32 %v3258_v12, %v3057_v39 }
 0x4ec   : > { %v3663_v9 = vpop.f32.mrf.mxu1  ;;  %v8246_v55 = vadd.f32 %v3492_v44, %v3299_v62  ;;  %v4023_v62 = vld [vmem:[#allocation2 + $0xe0] sm:$0xff] }
 0x4ed   : > { %v3497_v7 = vpop.f32.mrf.mxu0  ;;  %v8242_v32 = vadd.f32 %v3663_v9, %v7993_v54 }
 0x4ef   : > { %v3058_v57 = vpop.f32.mrf.mxu2 }
 0x4f0   : > { %v3059_v43 = vadd.f32 %v3058_v57, %v8195_v23  ;;  %v3260_v36 = vpop.f32.mrf.mxu3  ;;  %4393 = vmatmul.bf16.gmra.mxu0 %v4280_v6  ;;  %v4258_v23 = vld [vmem:[#allocation2 + $0xf1] sm:$0xff] }
 0x4f1   : > { %v4282_v18 = vpack.c.bf16 %v4259_v40, %v4258_v23  ;;  %v3788_v57 = vld [vmem:[#allocation2 + $0xca] sm:$0xff] }
 0x4f2   : > { %v3300_v45 = vadd.f32 %v3260_v36, %v3059_v43  ;;  %v4022_v36 = vld [vmem:[#allocation2 + $0xd8] sm:$0xff]  ;;  %v8254_v44 = vpack.c.bf16 %v3788_v57, %v3787_v31 }
 0x4f3   : > { %v4047_v9 = vpack.c.bf16 %v4023_v62, %v4022_v36  ;;  %v4261_v23 = vld [vmem:[#allocation2 + $0x111] sm:$0xff] }
 0x4f4   : > { %3924 = vmatmul.bf16.gmra.mxu2 %v8239_v19  ;;  %v3666_v12 = vpop.f32.mrf.mxu1  ;;  %v4024_v36 = vld [vmem:[#allocation2 + $0xf0] sm:$0xff] }
 0x4f5   : > { %4159 = vmatmul.bf16.gmra.mxu3 %v4046_v16  ;;  %v3499_v27 = vpop.f32.mrf.mxu0  ;;  %v8249_v38 = vadd.f32 %v3666_v12, %v8001_v25 }
 0x4f7   : > { %v3061_v0 = vpop.f32.mrf.mxu2  ;;  %3705 = vmatmul.bf16.gmra.mxu1 %v4282_v18 }
 0x4f8   : > { %v3062_v6 = vadd.f32 %v3061_v0, %v8201_v30  ;;  %v3263_v60 = vpop.f32.mrf.mxu3  ;;  %v8252_v30 = vadd.f32 %v3494_v15, %v3300_v45 }
 0x4fa   : > { %v3301_v39 = vadd.f32 %v3263_v60, %v3062_v6 }
 0x4fc   : > { %v3668_v17 = vpop.f32.mrf.mxu1  ;;  %v8261_v0 = vadd.f32 %v3497_v7, %v3301_v39  ;;  %v3789_v7 = vld [vmem:[#allocation2 + $0xda] sm:$0xff] }
 0x4fd   : > { %v3502_v54 = vpop.f32.mrf.mxu0  ;;  %v8257_v25 = vadd.f32 %v3668_v17, %v8005_v56  ;;  %v6032_v56 = vld [vmem:[%s8937_s3 + $0x210] sm:$0xff]  ;;  %v4025_v17 = vld [vmem:[#allocation2 + $0xf8] sm:$0xff] }
 0x4fe   : > { %4594 = vmatpush.bf16.msra.mxu1 %v6032_v56 }
 0x4ff   : > { %v3063_v53 = vpop.f32.mrf.mxu2 }
 0x500   : > { %v3064_v58 = vadd.f32 %v3063_v53, %v8211_v34  ;;  %v3265_v43 = vpop.f32.mrf.mxu3  ;;  %4398 = vmatmul.bf16.gmra.mxu0 %v4281_v47  ;;  %v4260_v34 = vld [vmem:[#allocation2 + $0x109] sm:$0xff] }
 0x501   : > { %v4283_v45 = vpack.c.bf16 %v4261_v23, %v4260_v34 }
 0x502   : > { %v3302_v50 = vadd.f32 %v3265_v43, %v3064_v58  ;;  %v3790_v58 = vld [vmem:[#allocation2 + $0xe2] sm:$0xff] }
 0x503   : > { %v8272_v62 = vpack.c.bf16 %v3790_v58, %v3789_v7  ;;  %v4026_v7 = vld [vmem:[#allocation2 + $0x108] sm:$0xff] }
 0x504   : > { %3929 = vmatmul.bf16.gmra.mxu2 %v8254_v44  ;;  %v3671_v60 = vpop.f32.mrf.mxu1  ;;  %v8270_v39 = vadd.f32 %v3499_v27, %v3302_v50 }
 0x505   : > { %4164 = vmatmul.bf16.gmra.mxu3 %v4047_v9  ;;  %v3504_v16 = vpop.f32.mrf.mxu0  ;;  %v8267_v12 = vadd.f32 %v3671_v60, %v8011_v29  ;;  %v4048_v29 = vpack.c.bf16 %v4025_v17, %v4024_v36  ;;  %v3791_v17 = vld [vmem:[#allocation2 + $0xf2] sm:$0xff] }
 0x507   : > { %v3066_v40 = vpop.f32.mrf.mxu2  ;;  %3710 = vmatmul.bf16.gmra.mxu1 %v4283_v45 }
 0x508   : > { %v3067_v47 = vadd.f32 %v3066_v40, %v8217_v33  ;;  %v3268_v15 = vpop.f32.mrf.mxu3  ;;  %v4263_v40 = vld [vmem:[#allocation2 + $0x129] sm:$0xff] }
 0x50a   : > { %v3303_v6 = vadd.f32 %v3268_v15, %v3067_v47 }
 0x50c   : > { %v3673_v9 = vpop.f32.mrf.mxu1  ;;  %v8279_v15 = vadd.f32 %v3502_v54, %v3303_v6  ;;  %v4027_v6 = vld [vmem:[#allocation2 + $0x110] sm:$0xff] }
 0x50d   : > { %v4364_v53 = vpop.f32.mrf.mxu0  ;;  %v8275_v34 = vadd.f32 %v3673_v9, %v8016_v20 }
 0x50f   : > { %v3068_v57 = vpop.f32.mrf.mxu2 }
 0x510   : > { %v3069_v33 = vadd.f32 %v3068_v57, %v8224_v49  ;;  %v3270_v43 = vpop.f32.mrf.mxu3  ;;  %4403 = vmatmul.bf16.gmra.mxu0 %v4282_v18  ;;  %v4262_v49 = vld [vmem:[#allocation2 + $0x121] sm:$0xff] }
 0x511   : > { %v4284_v50 = vpack.c.bf16 %v4263_v40, %v4262_v49  ;;  %v4049_v49 = vpack.c.bf16 %v4027_v6, %v4026_v7  ;;  %v3794_v7 = vld [vmem:[#allocation2 + $0x112] sm:$0xff]  ;;  %v4028_v6 = vld [vmem:[#allocation2 + $0x120] sm:$0xff] }
 0x512   : > { %v3304_v31 = vadd.f32 %v3270_v43, %v3069_v33  ;;  %v3792_v33 = vld [vmem:[#allocation2 + $0xfa] sm:$0xff] }
 0x513   : > { %v8287_v54 = vpack.c.bf16 %v3792_v33, %v3791_v17 }
 0x514   : > { %3934 = vmatmul.bf16.gmra.mxu2 %v8272_v62  ;;  %v3676_v56 = vpop.f32.mrf.mxu1 }
 0x515   : > { %4169 = vmatmul.bf16.gmra.mxu3 %v4048_v29  ;;  %v4366_v23 = vpop.f32.mrf.mxu0  ;;  %v8282_v57 = vadd.f32 %v3676_v56, %v8025_v3 }
 0x517   : > { %v3895_v47 = vpop.f32.mrf.mxu2  ;;  %3715 = vmatmul.bf16.gmra.mxu1 %v4284_v50 }
 0x518   : > { %v3975_v18 = vadd.f32 %v3895_v47, %v8234_v42  ;;  %v4130_v27 = vpop.f32.mrf.mxu3  ;;  %v8285_v42 = vadd.f32 %v3504_v16, %v3304_v31  ;;  %v4265_v47 = vld [vmem:[#allocation2 + $0x141] sm:$0xff] }
 0x51a   : > { %v4210_v60 = vadd.f32 %v4130_v27, %v3975_v18 }
 0x51c   : > { %v3678_v29 = vpop.f32.mrf.mxu1  ;;  %v8294_v27 = vadd.f32 %v4364_v53, %v4210_v60  ;;  %v3793_v53 = vld [vmem:[#allocation2 + $0x10a] sm:$0xff] }
 0x51d   : > { %v4369_v20 = vpop.f32.mrf.mxu0  ;;  %v8290_v3 = vadd.f32 %v3678_v29, %v8039_v4  ;;  %v6031_v4 = vld [vmem:[%s8937_s3 + $0x208] sm:$0xff] }
 0x51e   : > { %4595 = vmatpush.bf16.msra.mxu1 %v6031_v4 }
 0x51f   : > { %v3897_v58 = vpop.f32.mrf.mxu2 }
 0x520   : > { %v3976_v43 = vadd.f32 %v3897_v58, %v8242_v32  ;;  %v4132_v36 = vpop.f32.mrf.mxu3  ;;  %4408 = vmatmul.bf16.gmra.mxu0 %v4283_v45  ;;  %v4264_v32 = vld [vmem:[#allocation2 + $0x139] sm:$0xff] }
 0x521   : > { %v4285_v31 = vpack.c.bf16 %v4265_v47, %v4264_v32  ;;  %v4029_v32 = vld [vmem:[#allocation2 + $0x128] sm:$0xff] }
 0x522   : > { %v4211_v9 = vadd.f32 %v4132_v36, %v3976_v43 }
 0x524   : > { %3939 = vmatmul.bf16.gmra.mxu2 %v8287_v54  ;;  %v3681_v58 = vpop.f32.mrf.mxu1  ;;  %v8303_v60 = vadd.f32 %v4366_v23, %v4211_v9 }
 0x525   : > { %4174 = vmatmul.bf16.gmra.mxu3 %v4049_v49  ;;  %v4371_v40 = vpop.f32.mrf.mxu0  ;;  %v8300_v33 = vadd.f32 %v3681_v58, %v8068_v14  ;;  %v8305_v49 = vpack.c.bf16 %v3794_v7, %v3793_v53  ;;  %v4050_v14 = vpack.c.bf16 %v4029_v32, %v4028_v6  ;;  %v3796_v6 = vld [vmem:[#allocation2 + $0x12a] sm:$0xff] }
 0x527   : > { %v3900_v18 = vpop.f32.mrf.mxu2  ;;  %3720 = vmatmul.bf16.gmra.mxu1 %v4285_v31 }
 0x528   : > { %v3977_v45 = vadd.f32 %v3900_v18, %v8249_v38  ;;  %v4135_v16 = vpop.f32.mrf.mxu3 }
 0x52a   : > { %v4212_v56 = vadd.f32 %v4135_v16, %v3977_v45  ;;  %v4267_v16 = vld [vmem:[#allocation2 + $0x159] sm:$0xff] }
 0x52c   : > { %v3683_v47 = vpop.f32.mrf.mxu1  ;;  %v8312_v4 = vadd.f32 %v4369_v20, %v4212_v56  ;;  %v4031_v56 = vld [vmem:[#allocation2 + $0x140] sm:$0xff] }
 0x52d   : > { %v4374_v43 = vpop.f32.mrf.mxu0  ;;  %v8308_v18 = vadd.f32 %v3683_v47, %v8093_v28  ;;  %v4030_v47 = vld [vmem:[#allocation2 + $0x138] sm:$0xff] }
 0x52f   : > { %v3902_v36 = vpop.f32.mrf.mxu2 }
 0x530   : > { %v3978_v38 = vadd.f32 %v3902_v36, %v8257_v25  ;;  %v4137_v17 = vpop.f32.mrf.mxu3  ;;  %4413 = vmatmul.bf16.gmra.mxu0 %v4284_v50  ;;  %v4266_v25 = vld [vmem:[#allocation2 + $0x151] sm:$0xff] }
 0x531   : > { %v4286_v9 = vpack.c.bf16 %v4267_v16, %v4266_v25 }
 0x532   : > { %v4213_v29 = vadd.f32 %v4137_v17, %v3978_v38 }
 0x534   : > { %3944 = vmatmul.bf16.gmra.mxu2 %v8305_v49  ;;  %v3686_v7 = vpop.f32.mrf.mxu1 }
 0x535   : > { %4179 = vmatmul.bf16.gmra.mxu3 %v4050_v14  ;;  %v4376_v45 = vpop.f32.mrf.mxu0  ;;  %v8315_v38 = vadd.f32 %v3686_v7, %v8131_v41  ;;  %v3795_v14 = vld [vmem:[#allocation2 + $0x122] sm:$0xff] }
 0x536   : > { %v8320_v20 = vpack.c.bf16 %v3796_v6, %v3795_v14  ;;  %v3798_v14 = vld [vmem:[#allocation2 + $0x142] sm:$0xff] }
 0x537   : > { %v3905_v58 = vpop.f32.mrf.mxu2  ;;  %3725 = vmatmul.bf16.gmra.mxu1 %v4286_v9 }
 0x538   : > { %v3979_v50 = vadd.f32 %v3905_v58, %v8267_v12  ;;  %v4140_v23 = vpop.f32.mrf.mxu3  ;;  %v8318_v12 = vadd.f32 %v4371_v40, %v4213_v29  ;;  %v4051_v58 = vpack.c.bf16 %v4031_v56, %v4030_v47 }
 0x53a   : > { %v4214_v36 = vadd.f32 %v4140_v23, %v3979_v50  ;;  %v4269_v23 = vld [vmem:[#allocation2 + $0x171] sm:$0xff] }
 0x53c   : > { %v3688_v16 = vpop.f32.mrf.mxu1 }
 0x53d   : > { %v4379_v28 = vpop.f32.mrf.mxu0  ;;  %v8323_v41 = vadd.f32 %v3688_v16, %v8138_v61  ;;  %v6030_v61 = vld [vmem:[%s8937_s3 + $0x200] sm:$0xff] }
 0x53e   : > { %4596 = vmatpush.bf16.msra.mxu1 %v6030_v61 }
 0x53f   : > { %v3907_v17 = vpop.f32.mrf.mxu2 }
 0x540   : > { %v3980_v53 = vadd.f32 %v3907_v17, %v8275_v34  ;;  %v4142_v32 = vpop.f32.mrf.mxu3  ;;  %4418 = vmatmul.bf16.gmra.mxu0 %v4285_v31  ;;  %v4268_v34 = vld [vmem:[#allocation2 + $0x169] sm:$0xff]  ;;  %v8327_v17 = vadd.f32 %v4374_v43, %v4214_v36  ;;  %v3797_v43 = vld [vmem:[#allocation2 + $0x13a] sm:$0xff] }
 0x541   : > { %v4287_v29 = vpack.c.bf16 %v4269_v23, %v4268_v34  ;;  %v8338_v23 = vpack.c.bf16 %v3798_v14, %v3797_v43  ;;  %v3800_v43 = vld [vmem:[#allocation2 + $0x15a] sm:$0xff] }
 0x542   : > { %v4215_v25 = vadd.f32 %v4142_v32, %v3980_v53 }
 0x543   : > { %9192 = vst [vmem:[#allocation47_spill] sm:$0xff] %v8338_v23 }
 0x544   : > { %3949 = vmatmul.bf16.gmra.mxu2 %v8320_v20  ;;  %v3691_v53 = vpop.f32.mrf.mxu1  ;;  %v8336_v36 = vadd.f32 %v4376_v45, %v4215_v25 }
 0x545   : > { %4184 = vmatmul.bf16.gmra.mxu3 %v4051_v58  ;;  %v4381_v50 = vpop.f32.mrf.mxu0  ;;  %v8333_v32 = vadd.f32 %v3691_v53, %v8143_v13  ;;  %v4032_v58 = vld [vmem:[#allocation2 + $0x150] sm:$0xff] }
 0x546   : > { %v4271_v53 = vld [vmem:[#allocation2 + $0x189] sm:$0xff] }
 0x547   : > { %v3910_v7 = vpop.f32.mrf.mxu2  ;;  %3730 = vmatmul.bf16.gmra.mxu1 %v4287_v29 }
 0x548   : > { %v3981_v31 = vadd.f32 %v3910_v7, %v8282_v57  ;;  %v4145_v40 = vpop.f32.mrf.mxu3  ;;  %v4033_v7 = vld [vmem:[#allocation2 + $0x158] sm:$0xff] }
 0x549   : > { %v4052_v13 = vpack.c.bf16 %v4033_v7, %v4032_v58 }
 0x54a   : > { %v4216_v6 = vadd.f32 %v4145_v40, %v3981_v31 }
 0x54c   : > { %v3693_v31 = vpop.f32.mrf.mxu1  ;;  %v8345_v25 = vadd.f32 %v4379_v28, %v4216_v6  ;;  %v4035_v6 = vld [vmem:[#allocation2 + $0x170] sm:$0xff] }
 0x54d   : > { %v4384_v16 = vpop.f32.mrf.mxu0  ;;  %v8341_v40 = vadd.f32 %v3693_v31, %v8151_v52 }
 0x54f   : > { %v3912_v47 = vpop.f32.mrf.mxu2 }
 0x550   : > { %v3982_v56 = vadd.f32 %v3912_v47, %v8290_v3  ;;  %v4147_v57 = vpop.f32.mrf.mxu3  ;;  %4423 = vmatmul.bf16.gmra.mxu0 %v4286_v9  ;;  %v4270_v3 = vld [vmem:[#allocation2 + $0x181] sm:$0xff] }
 0x551   : > { %v4288_v45 = vpack.c.bf16 %v4271_v53, %v4270_v3 }
 0x552   : > { %v4217_v34 = vadd.f32 %v4147_v57, %v3982_v56 }
 0x554   : > { %3954 = vmatmul.bf16.gmra.mxu2 %v8338_v23  ;;  %v3696_v57 = vpop.f32.mrf.mxu1  ;;  %v3799_v23 = vld [vmem:[#allocation2 + $0x152] sm:$0xff] }
 0x555   : > { %4189 = vmatmul.bf16.gmra.mxu3 %v4052_v13  ;;  %v4386_v56 = vpop.f32.mrf.mxu0  ;;  %v8348_v58 = vadd.f32 %v3696_v57, %v8156_v5  ;;  %v4034_v13 = vld [vmem:[#allocation2 + $0x168] sm:$0xff]  ;;  %v8353_v28 = vpack.c.bf16 %v3800_v43, %v3799_v23  ;;  %v3802_v43 = vld [vmem:[#allocation2 + $0x172] sm:$0xff] }
 0x557   : > { %v3915_v61 = vpop.f32.mrf.mxu2  ;;  %3735 = vmatmul.bf16.gmra.mxu1 %v4288_v45 }
 0x558   : > { %v3983_v9 = vadd.f32 %v3915_v61, %v8300_v33  ;;  %v4150_v47 = vpop.f32.mrf.mxu3  ;;  %v8351_v33 = vadd.f32 %v4381_v50, %v4217_v34  ;;  %v4053_v61 = vpack.c.bf16 %v4035_v6, %v4034_v13  ;;  %v4036_v13 = vld [vmem:[#allocation2 + $0x180] sm:$0xff]  ;;  %v3801_v6 = vld [vmem:[#allocation2 + $0x16a] sm:$0xff] }
 0x55a   : > { %v4218_v14 = vadd.f32 %v4150_v47, %v3983_v9 }
 0x55c   : > { %v3698_v53 = vpop.f32.mrf.mxu1  ;;  %v8360_v57 = vadd.f32 %v4384_v16, %v4218_v14  ;;  %v8369_v14 = vpack.c.bf16 %v3802_v43, %v3801_v6 }
 0x55d   : > { %v8356_v5 = vadd.f32 %v3698_v53, %v8161_v51  ;;  %v4389_v9 = vpop.f32.mrf.mxu0  ;;  %v4037_v53 = vld [vmem:[#allocation2 + $0x188] sm:$0xff] }
 0x55f   : > { %v3917_v52 = vpop.f32.mrf.mxu2 }
 0x560   : > { %v3984_v7 = vadd.f32 %v3917_v52, %v8308_v18  ;;  %v4152_v31 = vpop.f32.mrf.mxu3  ;;  %4428 = vmatmul.bf16.gmra.mxu0 %v4287_v29 }
 0x562   : > { %v4219_v3 = vadd.f32 %v4152_v31, %v3984_v7 }
 0x564   : > { %3959 = vmatmul.bf16.gmra.mxu2 %v8353_v28  ;;  %v3701_v34 = vpop.f32.mrf.mxu1 }
 0x565   : > { %4194 = vmatmul.bf16.gmra.mxu3 %v4053_v61  ;;  %v8363_v23 = vadd.f32 %v3701_v34, %v8170_v48  ;;  %v4391_v52 = vpop.f32.mrf.mxu0  ;;  %v4054_v48 = vpack.c.bf16 %v4037_v53, %v4036_v13  ;;  %v4272_v34 = vld [vmem:[#allocation2 + $0x199] sm:$0xff] }
 0x566   : > { %v4038_v53 = vld [vmem:[#allocation2 + $0x198] sm:$0xff] }
 0x567   : > { %v3920_v18 = vpop.f32.mrf.mxu2  ;;  %4597 = vmatmul.bf16.vlgmr.msra.gmra.mxu1 %v8164_v21 }
 0x568   : > { %v3985_v47 = vadd.f32 %v3920_v18, %v8315_v38  ;;  %v4155_v29 = vpop.f32.mrf.mxu3  ;;  %v8367_v38 = vadd.f32 %v4386_v56, %v4219_v3 }
 0x56a   : > { %v4220_v50 = vadd.f32 %v4155_v29, %v3985_v47 }
 0x56c   : > { %v3703_v61 = vpop.f32.mrf.mxu1 }
 0x56d   : > { %v3758_v18 = vadd.f32 %v3703_v61, %v8178_v22  ;;  %v4394_v47 = vpop.f32.mrf.mxu0 }
 0x56f   : > { %v3922_v51 = vpop.f32.mrf.mxu2 }
 0x570   : > { %v3986_v7 = vadd.f32 %v3922_v51, %v8323_v41  ;;  %v4157_v31 = vpop.f32.mrf.mxu3  ;;  %4433 = vmatmul.bf16.gmra.mxu0 %v4288_v45  ;;  %v8374_v45 = vadd.f32 %v4389_v9, %v4220_v50  ;;  %v4273_v51 = vld [vmem:[#allocation2 + $0x1a1] sm:$0xff] }
 0x572   : > { %v4221_v16 = vadd.f32 %v4157_v31, %v3986_v7  ;;  %v4289_v7 = vpack.c.bf16 %v4273_v51, %v4272_v34  ;;  %v3804_v31 = vld [vmem:[#allocation2 + $0x18a] sm:$0xff] }
 0x574   : > { %3964 = vmatmul.bf16.gmra.mxu2 %v8369_v14  ;;  %v3706_v3 = vpop.f32.mrf.mxu1  ;;  %v8379_v61 = vadd.f32 %v4391_v52, %v4221_v16 }
 0x575   : > { %4199 = vmatmul.bf16.gmra.mxu3 %v4054_v48  ;;  %v3759_v43 = vadd.f32 %v3706_v3, %v8186_v11  ;;  %v4396_v9 = vpop.f32.mrf.mxu0 }
 0x577   : > { %v3925_v21 = vpop.f32.mrf.mxu2  ;;  %4602 = vmatmul.bf16.gmra.mxu1 %v8180_v1 }
 0x578   : > { %v3987_v41 = vadd.f32 %v3925_v21, %v8333_v32  ;;  %v4160_v29 = vpop.f32.mrf.mxu3  ;;  %v3803_v32 = vld [vmem:[#allocation2 + $0x182] sm:$0xff] }
 0x579   : > { %v8381_v48 = vpack.c.bf16 %v3804_v31, %v3803_v32  ;;  %v4039_v21 = vld [vmem:[#allocation2 + $0x1a0] sm:$0xff] }
 0x57a   : > { %v4222_v56 = vadd.f32 %v4160_v29, %v3987_v41  ;;  %v4055_v11 = vpack.c.bf16 %v4039_v21, %v4038_v53 }
 0x57c   : > { %v3708_v41 = vpop.f32.mrf.mxu1  ;;  %v8386_v34 = vadd.f32 %v4394_v47, %v4222_v56 }
 0x57d   : > { %v3760_v1 = vadd.f32 %v3708_v41, %v8191_v59 }
 0x57f   : > { %v3927_v22 = vpop.f32.mrf.mxu2 }
 0x580   : > { %v3988_v13 = vadd.f32 %v3927_v22, %v8341_v40  ;;  %v4162_v6 = vpop.f32.mrf.mxu3  ;;  %4438 = vmatmul.bf16.gmra.mxu0 %v4289_v7  ;;  %v4399_v7 = vpop.f32.mrf.mxu0 }
 0x582   : > { %v4223_v50 = vadd.f32 %v4162_v6, %v3988_v13 }
 0x584   : > { %3969 = vmatmul.bf16.gmra.mxu2 %v8381_v48  ;;  %v3711_v16 = vpop.f32.mrf.mxu1  ;;  %v8391_v13 = vadd.f32 %v4396_v9, %v4223_v50 }
 0x585   : > { %4204 = vmatmul.bf16.gmra.mxu3 %v4055_v11  ;;  %v3761_v51 = vadd.f32 %v3711_v16, %v8199_v24 }
 0x587   : > { %v3930_v29 = vpop.f32.mrf.mxu2  ;;  %4607 = vmatmul.bf16.gmra.mxu1 %v8193_v63 }
 0x588   : > { %v3989_v40 = vadd.f32 %v3930_v29, %v8348_v58  ;;  %v4165_v3 = vpop.f32.mrf.mxu3  ;;  %v4401_v47 = vpop.f32.mrf.mxu0 }
 0x58a   : > { %v4224_v52 = vadd.f32 %v4165_v3, %v3989_v40 }
 0x58c   : > { %v3713_v53 = vpop.f32.mrf.mxu1  ;;  %v8397_v24 = vadd.f32 %v4399_v7, %v4224_v52 }
 0x58d   : > { %v8394_v58 = vadd.f32 %v3713_v53, %v8207_v8 }
 0x58f   : > { %v3932_v22 = vpop.f32.mrf.mxu2 }
 0x590   : > { %v3990_v31 = vadd.f32 %v3932_v22, %v8356_v5  ;;  %v4167_v59 = vpop.f32.mrf.mxu3  ;;  %v4404_v9 = vpop.f32.mrf.mxu0 }
 0x592   : > { %v4225_v6 = vadd.f32 %v4167_v59, %v3990_v31 }
 0x594   : > { %v3716_v41 = vpop.f32.mrf.mxu1  ;;  %v8403_v8 = vadd.f32 %v4401_v47, %v4225_v6 }
 0x595   : > { %v8400_v11 = vadd.f32 %v3716_v41, %v8215_v35 }
 0x597   : > { %v3935_v56 = vpop.f32.mrf.mxu2  ;;  %4612 = vmatmul.bf16.gmra.mxu1 %v8209_v46 }
 0x598   : > { %v3991_v32 = vadd.f32 %v3935_v56, %v8363_v23  ;;  %v4170_v21 = vpop.f32.mrf.mxu3  ;;  %v4406_v35 = vpop.f32.mrf.mxu0 }
 0x59a   : > { %v4226_v63 = vadd.f32 %v4170_v21, %v3991_v32 }
 0x59c   : > { %v3718_v3 = vpop.f32.mrf.mxu1  ;;  %v8408_v22 = vadd.f32 %v4404_v9, %v4226_v63 }
 0x59d   : > { %v8406_v23 = vadd.f32 %v3718_v3, %v8220_v26 }
 0x59f   : > { %v3937_v5 = vpop.f32.mrf.mxu2 }
 0x5a0   : > { %v3992_v50 = vadd.f32 %v3937_v5, %v3758_v18  ;;  %v4172_v29 = vpop.f32.mrf.mxu3  ;;  %v4409_v32 = vpop.f32.mrf.mxu0 }
 0x5a2   : > { %v4227_v40 = vadd.f32 %v4172_v29, %v3992_v50 }
 0x5a4   : > { %v3721_v59 = vpop.f32.mrf.mxu1  ;;  %v8414_v47 = vadd.f32 %v4406_v35, %v4227_v40 }
 0x5a5   : > { %v8411_v46 = vadd.f32 %v3721_v59, %v8228_v37 }
 0x5a7   : > { %v3940_v52 = vpop.f32.mrf.mxu2  ;;  %4617 = vmatmul.bf16.gmra.mxu1 %v8222_v2 }
 0x5a8   : > { %v3993_v16 = vadd.f32 %v3940_v52, %v3759_v43  ;;  %v4175_v7 = vpop.f32.mrf.mxu3 }
 0x5aa   : > { %v4228_v31 = vadd.f32 %v4175_v7, %v3993_v16 }
 0x5ac   : > { %v3723_v56 = vpop.f32.mrf.mxu1  ;;  %v8419_v5 = vadd.f32 %v4409_v32, %v4228_v31 }
 0x5ad   : > { %v8417_v43 = vadd.f32 %v3723_v56, %v8237_v10 }
 0x5af   : > { %v3942_v18 = vpop.f32.mrf.mxu2 }
 0x5b0   : > { %v3994_v6 = vadd.f32 %v3942_v18, %v3760_v1  ;;  %v4177_v53 = vpop.f32.mrf.mxu3  ;;  %v4411_v1 = vpop.f32.mrf.mxu0 }
 0x5b2   : > { %v4229_v26 = vadd.f32 %v4177_v53, %v3994_v6 }
 0x5b4   : > { %v3726_v9 = vpop.f32.mrf.mxu1  ;;  %v8425_v50 = vadd.f32 %v4411_v1, %v4229_v26 }
 0x5b5   : > { %v8422_v2 = vadd.f32 %v3726_v9, %v8246_v55 }
 0x5b7   : > { %v3945_v21 = vpop.f32.mrf.mxu2  ;;  %4622 = vmatmul.bf16.gmra.mxu1 %v8239_v19 }
 0x5b8   : > { %v3995_v63 = vadd.f32 %v3945_v21, %v3761_v51  ;;  %v4180_v41 = vpop.f32.mrf.mxu3  ;;  %v4414_v40 = vpop.f32.mrf.mxu0 }
 0x5ba   : > { %v4230_v37 = vadd.f32 %v4180_v41, %v3995_v63  ;;  %v4507_v63 = vld [vmem:[#allocation2 + $0x1a2] sm:$0xff]  ;;  %v4506_v41 = vld [vmem:[#allocation2 + $0x19a] sm:$0xff] }
 0x5bc   : > { %v3728_v29 = vpop.f32.mrf.mxu1  ;;  %v8430_v3 = vadd.f32 %v4414_v40, %v4230_v37 }
 0x5bd   : > { %v8428_v10 = vadd.f32 %v3728_v29, %v8252_v30 }
 0x5c0   : > { %v8497_v40 = vpop.f32.mrf.mxu3 }
 0x5c4   : > { %v3731_v51 = vpop.f32.mrf.mxu1 }
 0x5c5   : > { %v8433_v52 = vadd.f32 %v3731_v51, %v8261_v0 }
 0x5c7   : > { %4627 = vmatmul.bf16.gmra.mxu1 %v8254_v44 }
 0x5cc   : > { %v3733_v55 = vpop.f32.mrf.mxu1 }
 0x5cd   : > { %v8437_v16 = vadd.f32 %v3733_v55, %v8270_v39 }
 0x5d4   : > { %v3736_v19 = vpop.f32.mrf.mxu1 }
 0x5d5   : > { %v8440_v7 = vadd.f32 %v3736_v19, %v8279_v15  ;;  %v8506_v19 = vpop.f32.mrf.mxu3 }
 0x5d7   : > { %4632 = vmatmul.bf16.gmra.mxu1 %v8272_v62 }
 0x5dc   : > { %v3738_v30 = vpop.f32.mrf.mxu1 }
 0x5dd   : > { %v8444_v35 = vadd.f32 %v3738_v30, %v8285_v42 }
 0x5e4   : > { %v4598_v31 = vpop.f32.mrf.mxu1 }
 0x5e5   : > { %v4678_v0 = vadd.f32 %v4598_v31, %v8294_v27 }
 0x5e7   : > { %4637 = vmatmul.bf16.gmra.mxu1 %v8287_v54 }
 0x5ec   : > { %v4600_v44 = vpop.f32.mrf.mxu1 }
 0x5ed   : > { %v4679_v59 = vadd.f32 %v4600_v44, %v8303_v60  ;;  %v9193_v60 = vld [vmem:[#allocation47_spill] sm:$0xff]  ;;  %v8518_v44 = vld [vmem:[%s8938_s4] ss:$0 sm:$0xff] }
 0x5f4   : > { %v4603_v39 = vpop.f32.mrf.mxu1 }
 0x5f5   : > { %v4680_v18 = vadd.f32 %v4603_v39, %v8312_v4 }
 0x5f7   : > { %4642 = vmatmul.bf16.gmra.mxu1 %v8305_v49 }
 0x5fc   : > { %v4605_v15 = vpop.f32.mrf.mxu1 }
 0x5fd   : > { %v4681_v62 = vadd.f32 %v4605_v15, %v8318_v12  ;;  %v8523_v15 = vpop.f32.mrf.mxu3 }
 0x604   : > { %v4608_v6 = vpop.f32.mrf.mxu1 }
 0x605   : > { %v4682_v42 = vadd.f32 %v4608_v6, %v8327_v17  ;;  %v8526_v6 = vadd.f32 %v8518_v44, %v4679_v59 }
 0x607   : > { %4647 = vmatmul.bf16.gmra.mxu1 %v8320_v20 }
 0x60c   : > { %v4610_v53 = vpop.f32.mrf.mxu1 }
 0x60d   : > { %v4683_v27 = vadd.f32 %v4610_v53, %v8336_v36  ;;  %v8532_v53 = vadd.f32 %v8518_v44, %v4680_v18 }
 0x614   : > { %v4613_v54 = vpop.f32.mrf.mxu1 }
 0x615   : > { %v8456_v26 = vadd.f32 %v4613_v54, %v8345_v25 }
 0x617   : > { %4652 = vmatmul.bf16.gmra.mxu1 %v9193_v60 }
 0x61c   : > { %v4615_v4 = vpop.f32.mrf.mxu1 }
 0x61d   : > { %v8460_v49 = vadd.f32 %v4615_v4, %v8351_v33  ;;  %v4784_v4 = vmul.f32 %v8526_v6, %v8526_v6 }
 0x624   : > { %v4618_v56 = vpop.f32.mrf.mxu1 }
 0x625   : > { %v8463_v12 = vadd.f32 %v4618_v56, %v8360_v57  ;;  %v8548_v56 = vadd.f32 %v8518_v44, %v4682_v42 }
 0x627   : > { %4657 = vmatmul.bf16.gmra.mxu1 %v8353_v28  ;;  %v4787_v42 = vmul.f32 %v8548_v56, %v8548_v56 }
 0x62c   : > { %v4620_v20 = vpop.f32.mrf.mxu1 }
 0x62d   : > { %v8467_v17 = vadd.f32 %v4620_v20, %v8367_v38 }
 0x634   : > { %v4623_v36 = vpop.f32.mrf.mxu1 }
 0x635   : > { %v8470_v25 = vadd.f32 %v4623_v36, %v8374_v45  ;;  %v4523_v45 = vpack.c.bf16 %v4507_v63, %v4506_v41  ;;  %v8566_v41 = vadd.f32 %v8518_v44, %v8456_v26 }
 0x637   : > { %4662 = vmatmul.bf16.gmra.mxu1 %v8369_v14  ;;  %v4789_v26 = vmul.f32 %v8566_v41, %v8566_v41 }
 0x63c   : > { %v4625_v32 = vpop.f32.mrf.mxu1 }
 0x63d   : > { %v8474_v33 = vadd.f32 %v4625_v32, %v8379_v61 }
 0x644   : > { %v4628_v21 = vpop.f32.mrf.mxu1 }
 0x645   : > { %v8477_v57 = vadd.f32 %v4628_v21, %v8386_v34 }
 0x647   : > { %4667 = vmatmul.bf16.gmra.mxu1 %v8381_v48  ;;  %v8492_v48 = vpop.f32.mrf.mxu2 }
 0x64c   : > { %v4630_v28 = vpop.f32.mrf.mxu1 }
 0x64d   : > { %v8481_v38 = vadd.f32 %v4630_v28, %v8391_v13  ;;  %v8560_v28 = vpop.f32.mrf.mxu3 }
 0x654   : > { %v4633_v37 = vpop.f32.mrf.mxu1 }
 0x655   : > { %v8484_v14 = vadd.f32 %v4633_v37, %v8397_v24  ;;  %v8499_v24 = vpop.f32.mrf.mxu0 }
 0x657   : > { %4672 = vmatmul.bf16.gmra.mxu1 %v4523_v45 }
 0x65c   : > { %v4635_v61 = vpop.f32.mrf.mxu1 }
 0x65d   : > { %v8487_v9 = vadd.f32 %v4635_v61, %v8403_v8  ;;  %v8504_v8 = vpop.f32.mrf.mxu2  ;;  %v8511_v31 = vpop.f32.mrf.mxu0 }
 0x664   : > { %v4638_v34 = vpop.f32.mrf.mxu1 }
 0x665   : > { %v8490_v1 = vadd.f32 %v4638_v34, %v8408_v22  ;;  %v8534_v54 = vpop.f32.mrf.mxu0 }
 0x66c   : > { %v4640_v13 = vpop.f32.mrf.mxu1 }
 0x66d   : > { %v8495_v29 = vadd.f32 %v4640_v13, %v8414_v47  ;;  %v8513_v47 = vpop.f32.mrf.mxu2  ;;  %v8575_v34 = vpop.f32.mrf.mxu0 }
 0x674   : > { %v4643_v51 = vpop.f32.mrf.mxu1 }
 0x675   : > { %v8502_v55 = vadd.f32 %v4643_v51, %v8419_v5  ;;  %v8536_v60 = vpop.f32.mrf.mxu2 }
 0x67c   : > { %v4645_v22 = vpop.f32.mrf.mxu1 }
 0x67d   : > { %v8509_v30 = vadd.f32 %v4645_v22, %v8425_v50  ;;  %v8529_v50 = vadd.f32 %v8518_v44, %v4678_v0  ;;  %v4785_v0 = vmul.f32 %v8532_v53, %v8532_v53  ;;  %v3957_v51 = vpop.f32.mrf.mxu2 }
 0x67f   : > { %v4783_v59 = vmul.f32 %v8529_v50, %v8529_v50  ;;  %v4746_v20 = vadd.f32 %v8526_v6, %v8529_v50 }
 0x681   : > { %v4815_v36 = vadd.f32 %v4784_v4, %v4783_v59  ;;  %v4747_v21 = vadd.f32 %v4746_v20, %v8532_v53  ;;  %v8591_v20 = vadd.f32 %v8518_v44, %v8467_v17  ;;  %v8605_v17 = vadd.f32 %v8518_v44, %v8474_v33 }
 0x683   : > { %v4816_v63 = vadd.f32 %v4815_v36, %v4785_v0  ;;  %v4794_v33 = vmul.f32 %v8605_v17, %v8605_v17 }
 0x684   : > { %v4648_v39 = vpop.f32.mrf.mxu1 }
 0x685   : > { %v8521_v5 = vadd.f32 %v4648_v39, %v8430_v3  ;;  %v8541_v3 = vadd.f32 %v8518_v44, %v4681_v62  ;;  %v8557_v62 = vadd.f32 %v8518_v44, %v4683_v27  ;;  %v8573_v27 = vadd.f32 %v8518_v44, %v8460_v49 }
 0x686   : > { %v8582_v39 = vadd.f32 %v8518_v44, %v8463_v12  ;;  %v8598_v12 = vadd.f32 %v8518_v44, %v8470_v25  ;;  %v8612_v25 = vadd.f32 %v8518_v44, %v8477_v57 }
 0x687   : > { %v4786_v32 = vmul.f32 %v8541_v3, %v8541_v3  ;;  %v4748_v45 = vadd.f32 %v4747_v21, %v8541_v3  ;;  %v4788_v61 = vmul.f32 %v8557_v62, %v8557_v62  ;;  %v4790_v49 = vmul.f32 %v8573_v27, %v8573_v27 }
 0x688   : > { %v4791_v21 = vmul.f32 %v8582_v39, %v8582_v39  ;;  %9194 = vst [vmem:[#allocation48_spill] sm:$0xff] %v8598_v12  ;;  %v4795_v57 = vmul.f32 %v8612_v25, %v8612_v25 }
 0x689   : > { %v4817_v37 = vadd.f32 %v4816_v63, %v4786_v32  ;;  %v4749_v13 = vadd.f32 %v4748_v45, %v8548_v56 }
 0x68b   : > { %v4818_v22 = vadd.f32 %v4817_v37, %v4787_v42  ;;  %v4750_v59 = vadd.f32 %v4749_v13, %v8557_v62  ;;  %v4192_v42 = vpop.f32.mrf.mxu3  ;;  %v4792_v37 = vmul.f32 %v8591_v20, %v8591_v20 }
 0x68c   : > { %v8550_v18 = vpop.f32.mrf.mxu1 }
 0x68d   : > { %v4819_v0 = vadd.f32 %v4818_v22, %v4788_v61  ;;  %v4751_v36 = vadd.f32 %v4750_v59, %v8566_v41  ;;  %v4793_v22 = vmul.f32 %v8598_v12, %v8598_v12  ;;  %v8616_v59 = vpop.f32.mrf.mxu0 }
 0x68f   : > { %v4820_v32 = vadd.f32 %v4819_v0, %v4789_v26  ;;  %v4752_v63 = vadd.f32 %v4751_v36, %v8573_v27 }
 0x691   : > { %v4821_v45 = vadd.f32 %v4820_v32, %v4790_v49  ;;  %v4753_v61 = vadd.f32 %v4752_v63, %v8582_v39  ;;  %v3960_v49 = vpop.f32.mrf.mxu2  ;;  %v8623_v32 = vadd.f32 %v8518_v44, %v8481_v38 }
 0x693   : > { %v4822_v13 = vadd.f32 %v4821_v45, %v4791_v21  ;;  %v4754_v0 = vadd.f32 %v4753_v61, %v8591_v20  ;;  %v8630_v45 = vadd.f32 %v8518_v44, %v8484_v14  ;;  %v4796_v38 = vmul.f32 %v8623_v32, %v8623_v32  ;;  %v4195_v14 = vpop.f32.mrf.mxu3 }
 0x694   : > { %v8584_v4 = vpop.f32.mrf.mxu1 }
 0x695   : > { %v4823_v36 = vadd.f32 %v4822_v13, %v4792_v37  ;;  %v4755_v21 = vadd.f32 %v4754_v0, %v8598_v12  ;;  %v3996_v37 = vadd.f32 %v8492_v48, %v8394_v58  ;;  %v8639_v0 = vadd.f32 %v8518_v44, %v8487_v9 }
 0x696   : > { %v4797_v58 = vmul.f32 %v8630_v45, %v8630_v45  ;;  %v8648_v48 = vadd.f32 %v8518_v44, %v8490_v1  ;;  %v3998_v9 = vadd.f32 %v8513_v47, %v8406_v23  ;;  %v3999_v1 = vadd.f32 %v8536_v60, %v8411_v46 }
 0x697   : > { %v4824_v63 = vadd.f32 %v4823_v36, %v4793_v22  ;;  %v4756_v61 = vadd.f32 %v4755_v21, %v8605_v17  ;;  %v3997_v22 = vadd.f32 %v8504_v8, %v8400_v11  ;;  %v4231_v21 = vadd.f32 %v8497_v40, %v3996_v37 }
 0x698   : > { %v4798_v8 = vmul.f32 %v8639_v0, %v8639_v0  ;;  %v4799_v47 = vmul.f32 %v8648_v48, %v8648_v48  ;;  %v4001_v60 = vadd.f32 %v3960_v49, %v8422_v2 }
 0x699   : > { %v4825_v13 = vadd.f32 %v4824_v63, %v4794_v33  ;;  %v4757_v36 = vadd.f32 %v4756_v61, %v8612_v25  ;;  %v4232_v61 = vadd.f32 %v8506_v19, %v3997_v22  ;;  %v3962_v37 = vpop.f32.mrf.mxu2  ;;  %v4465_v46 = vadd.f32 %v8499_v24, %v4231_v21 }
 0x69a   : > { %v8689_v24 = vadd.f32 %v8518_v44, %v8521_v5 }
 0x69b   : > { %v4826_v12 = vadd.f32 %v4825_v13, %v4795_v57  ;;  %v4758_v63 = vadd.f32 %v4757_v36, %v8623_v32  ;;  %v8658_v57 = vadd.f32 %v8518_v44, %v8495_v29  ;;  %v4429_v13 = vpop.f32.mrf.mxu0  ;;  %v4233_v29 = vadd.f32 %v8523_v15, %v3998_v9 }
 0x69c   : > { %v8614_v26 = vpop.f32.mrf.mxu1 }
 0x69d   : > { %v4827_v11 = vadd.f32 %v4826_v12, %v4796_v38  ;;  %v4759_v40 = vadd.f32 %v4758_v63, %v8630_v45  ;;  %v8668_v12 = vadd.f32 %v8518_v44, %v8502_v55  ;;  %v4000_v38 = vadd.f32 %v3957_v51, %v8417_v43 }
 0x69e   : > { %v4800_v36 = vmul.f32 %v8658_v57, %v8658_v57  ;;  %v4234_v55 = vadd.f32 %v8560_v28, %v3999_v1  ;;  %v4699_v43 = vadd.f32 %v8550_v18, %v4465_v46  ;;  %v4466_v51 = vadd.f32 %v8511_v31, %v4232_v61  ;;  %v4197_v18 = vpop.f32.mrf.mxu3 }
 0x69f   : > { %v4828_v23 = vadd.f32 %v4827_v11, %v4797_v58  ;;  %v4760_v19 = vadd.f32 %v4759_v40, %v8639_v0  ;;  %v8679_v58 = vadd.f32 %v8518_v44, %v8509_v30  ;;  %v4801_v2 = vmul.f32 %v8668_v12, %v8668_v12 }
 0x6a0   : > { %v4235_v21 = vadd.f32 %v4192_v42, %v4000_v38  ;;  %v4700_v28 = vadd.f32 %v8584_v4, %v4466_v51  ;;  %v4467_v63 = vadd.f32 %v8534_v54, %v4233_v29  ;;  %v4236_v11 = vadd.f32 %v4195_v14, %v4001_v60 }
 0x6a1   : > { %v4829_v22 = vadd.f32 %v4828_v23, %v4798_v8  ;;  %v4761_v15 = vadd.f32 %v4760_v19, %v8648_v48  ;;  %v4802_v31 = vmul.f32 %v8679_v58, %v8679_v58  ;;  %v8698_v1 = vadd.f32 %v8518_v44, %v4699_v43  ;;  %v3965_v19 = vpop.f32.mrf.mxu2 }
 0x6a2   : > { %v4701_v5 = vadd.f32 %v8614_v26, %v4467_v63  ;;  %v4468_v42 = vadd.f32 %v8575_v34, %v4234_v55  ;;  %v4803_v4 = vmul.f32 %v8689_v24, %v8689_v24  ;;  %v8706_v23 = vadd.f32 %v8518_v44, %v4700_v28 }
 0x6a3   : > { %v4830_v9 = vadd.f32 %v4829_v22, %v4799_v47  ;;  %v4762_v30 = vadd.f32 %v4761_v15, %v8658_v57  ;;  %v4431_v54 = vpop.f32.mrf.mxu0  ;;  %v4469_v29 = vadd.f32 %v8616_v59, %v4235_v21  ;;  %v4002_v38 = vadd.f32 %v3962_v37, %v8428_v10 }
 0x6a4   : > { %v4658_v33 = vpop.f32.mrf.mxu1  ;;  %v4470_v26 = vadd.f32 %v4429_v13, %v4236_v11  ;;  %v4804_v60 = vmul.f32 %v8698_v1, %v8698_v1  ;;  %v8714_v22 = vadd.f32 %v8518_v44, %v4701_v5  ;;  %v4805_v59 = vmul.f32 %v8706_v23, %v8706_v23 }
 0x6a5   : > { %v4831_v8 = vadd.f32 %v4830_v9, %v4800_v36  ;;  %v4763_v61 = vadd.f32 %v4762_v30, %v8668_v12  ;;  %v4702_v47 = vadd.f32 %v4658_v33, %v4468_v42  ;;  %v4237_v37 = vadd.f32 %v4197_v18, %v4002_v38 }
 0x6a6   : > { %v4806_v9 = vmul.f32 %v8714_v22, %v8714_v22  ;;  %v4003_v11 = vadd.f32 %v3965_v19, %v8433_v52 }
 0x6a7   : > { %v4832_v40 = vadd.f32 %v4831_v8, %v4801_v2  ;;  %v4764_v14 = vadd.f32 %v4763_v61, %v8679_v58  ;;  %v8720_v10 = vadd.f32 %v8518_v44, %v4702_v47  ;;  %v4471_v5 = vadd.f32 %v4431_v54, %v4237_v37 }
 0x6a9   : > { %v4833_v46 = vadd.f32 %v4832_v40, %v4802_v31  ;;  %v4765_v34 = vadd.f32 %v4764_v14, %v8689_v24  ;;  %v4807_v28 = vmul.f32 %v8720_v10, %v8720_v10  ;;  %v3967_v42 = vpop.f32.mrf.mxu2 }
 0x6ab   : > { %v4834_v55 = vadd.f32 %v4833_v46, %v4803_v4  ;;  %v4766_v33 = vadd.f32 %v4765_v34, %v8698_v1  ;;  %v4434_v18 = vpop.f32.mrf.mxu0 }
 0x6ac   : > { %v4660_v49 = vpop.f32.mrf.mxu1 }
 0x6ad   : > { %v4703_v36 = vadd.f32 %v4660_v49, %v4469_v29  ;;  %v4835_v43 = vadd.f32 %v4834_v55, %v4804_v60  ;;  %v4767_v51 = vadd.f32 %v4766_v33, %v8706_v23  ;;  %v4200_v49 = vpop.f32.mrf.mxu3 }
 0x6ae   : > { %v4238_v38 = vadd.f32 %v4200_v49, %v4003_v11 }
 0x6af   : > { %v8726_v2 = vadd.f32 %v8518_v44, %v4703_v36  ;;  %v4836_v21 = vadd.f32 %v4835_v43, %v4805_v59  ;;  %v4768_v30 = vadd.f32 %v4767_v51, %v8714_v22  ;;  %v4004_v36 = vadd.f32 %v3967_v42, %v8437_v16 }
 0x6b1   : > { %v4837_v8 = vadd.f32 %v4836_v21, %v4806_v9  ;;  %v4769_v31 = vadd.f32 %v4768_v30, %v8720_v10  ;;  %v4808_v61 = vmul.f32 %v8726_v2, %v8726_v2  ;;  %v3970_v37 = vpop.f32.mrf.mxu2 }
 0x6b2   : > { %v4005_v21 = vadd.f32 %v3970_v37, %v8440_v7 }
 0x6b3   : > { %v4838_v4 = vadd.f32 %v4837_v8, %v4807_v28  ;;  %v4770_v14 = vadd.f32 %v4769_v31, %v8726_v2 }
 0x6b4   : > { %v4663_v15 = vpop.f32.mrf.mxu1 }
 0x6b5   : > { %v4704_v13 = vadd.f32 %v4663_v15, %v4470_v26  ;;  %v4839_v46 = vadd.f32 %v4838_v4, %v4808_v61  ;;  %v4202_v60 = vpop.f32.mrf.mxu3  ;;  %v4472_v15 = vadd.f32 %v4434_v18, %v4238_v38 }
 0x6b6   : > { %v4239_v43 = vadd.f32 %v4202_v60, %v4004_v36 }
 0x6b7   : > { %v8732_v63 = vadd.f32 %v8518_v44, %v4704_v13  ;;  %v4436_v13 = vpop.f32.mrf.mxu0 }
 0x6b8   : > { %v4473_v28 = vadd.f32 %v4436_v13, %v4239_v43 }
 0x6b9   : > { %v4809_v47 = vmul.f32 %v8732_v63, %v8732_v63  ;;  %v4771_v52 = vadd.f32 %v4770_v14, %v8732_v63 }
 0x6bb   : > { %v4840_v26 = vadd.f32 %v4839_v46, %v4809_v47 }
 0x6bc   : > { %v4665_v40 = vpop.f32.mrf.mxu1 }
 0x6bd   : > { %v4705_v29 = vadd.f32 %v4665_v40, %v4471_v5  ;;  %v4205_v16 = vpop.f32.mrf.mxu3  ;;  %v3972_v5 = vpop.f32.mrf.mxu2 }
 0x6be   : > { %v4240_v8 = vadd.f32 %v4205_v16, %v4005_v21  ;;  %v4006_v4 = vadd.f32 %v3972_v5, %v8444_v35 }
 0x6bf   : > { %v8743_v19 = vadd.f32 %v8518_v44, %v4705_v29  ;;  %v4439_v61 = vpop.f32.mrf.mxu0 }
 0x6c0   : > { %v4474_v7 = vadd.f32 %v4439_v61, %v4240_v8 }
 0x6c1   : > { %v4772_v34 = vadd.f32 %v4771_v52, %v8743_v19  ;;  %v4810_v54 = vmul.f32 %v8743_v19, %v8743_v19 }
 0x6c3   : > { %v4841_v55 = vadd.f32 %v4840_v26, %v4810_v54 }
 0x6c4   : > { %v4668_v33 = vpop.f32.mrf.mxu1 }
 0x6c5   : > { %v4706_v59 = vadd.f32 %v4668_v33, %v4472_v15  ;;  %v4207_v38 = vpop.f32.mrf.mxu3 }
 0x6c6   : > { %v4241_v46 = vadd.f32 %v4207_v38, %v4006_v4 }
 0x6c7   : > { %v8750_v51 = vadd.f32 %v8518_v44, %v4706_v59  ;;  %v4441_v54 = vpop.f32.mrf.mxu0 }
 0x6c8   : > { %v4475_v36 = vadd.f32 %v4441_v54, %v4241_v46 }
 0x6c9   : > { %v4773_v9 = vadd.f32 %v4772_v34, %v8750_v51  ;;  %v4811_v49 = vmul.f32 %v8750_v51, %v8750_v51 }
 0x6cb   : > { %v4842_v30 = vadd.f32 %v4841_v55, %v4811_v49 }
 0x6cc   : > { %v4670_v11 = vpop.f32.mrf.mxu1 }
 0x6cd   : > { %v4707_v18 = vadd.f32 %v4670_v11, %v4473_v28 }
 0x6cf   : > { %v8757_v31 = vadd.f32 %v8518_v44, %v4707_v18 }
 0x6d1   : > { %v4774_v42 = vadd.f32 %v4773_v9, %v8757_v31  ;;  %v4812_v40 = vmul.f32 %v8757_v31, %v8757_v31 }
 0x6d3   : > { %v4843_v14 = vadd.f32 %v4842_v30, %v4812_v40 }
 0x6d4   : > { %v4673_v47 = vpop.f32.mrf.mxu1 }
 0x6d5   : > { %v4708_v29 = vadd.f32 %v4673_v47, %v4474_v7 }
 0x6d7   : > { %v8764_v52 = vadd.f32 %v8518_v44, %v4708_v29 }
 0x6d9   : > { %v4775_v26 = vadd.f32 %v4774_v42, %v8764_v52  ;;  %v4813_v34 = vmul.f32 %v8764_v52, %v8764_v52 }
 0x6db   : > { %v4844_v60 = vadd.f32 %v4843_v14, %v4813_v34 }
 0x6dc   : > { %v4675_v55 = vpop.f32.mrf.mxu1 }
 0x6dd   : > { %v4709_v15 = vadd.f32 %v4675_v55, %v4475_v36 }
 0x6df   : > { %v8770_v35 = vadd.f32 %v8518_v44, %v4709_v15 }
 0x6e1   : > { %v4776_v33 = vadd.f32 %v4775_v26, %v8770_v35  ;;  %v4814_v59 = vmul.f32 %v8770_v35, %v8770_v35 }
 0x6e3   : > { %v4777_v13 = vrot.slane %v4776_v33, 4  ;;  %v4845_v37 = vadd.f32 %v4844_v60, %v4814_v59 }
 0x6e5   : > { %v4778_v43 = vadd.f32 %v4777_v13, %v4776_v33  ;;  %v4846_v9 = vrot.slane %v4845_v37, 4 }
 0x6e7   : > { %v4779_v49 = vrot.slane %v4778_v43, 2  ;;  %v4847_v21 = vadd.f32 %v4846_v9, %v4845_v37 }
 0x6e9   : > { %v4780_v30 = vadd.f32 %v4779_v49, %v4778_v43  ;;  %v4848_v28 = vrot.slane %v4847_v21, 2 }
 0x6eb   : > { %v4781_v16 = vrot.slane %v4780_v30, 1  ;;  %v4849_v11 = vadd.f32 %v4848_v28, %v4847_v21 }
 0x6ed   : > { %v4782_v18 = vadd.f32 %v4781_v16, %v4780_v30  ;;  %v4850_v8 = vrot.slane %v4849_v11, 1 }
 0x6ef   : > { %v4851_v61 = vadd.f32 %v4850_v8, %v4849_v11  ;;  %v8775_v44 = vmul.f32 0.00390625, %v4782_v18 }
 0x6f1   : > { %v4853_v5 = vmul.f32 0.00390625, %v4851_v61  ;;  %v4854_v42 = vmul.f32 %v8775_v44, %v8775_v44  ;;  %v4883_v14 = vsub.f32 %v8732_v63, %v8775_v44  ;;  %v4884_v7 = vsub.f32 %v8743_v19, %v8775_v44 }
 0x6f2   : > { %v4885_v47 = vsub.f32 %v8750_v51, %v8775_v44  ;;  %v4886_v29 = vsub.f32 %v8757_v31, %v8775_v44  ;;  %v4887_v38 = vsub.f32 %v8764_v52, %v8775_v44  ;;  %v4888_v46 = vsub.f32 %v8770_v35, %v8775_v44  ;;  %v9201_v52 = vld [vmem:[#allocation19_spill] sm:$0xff]  ;;  %v9202_v35 = vld [vmem:[#allocation22_spill] sm:$0xff] }
 0x6f3   : > { %v4855_v40 = vsub.f32 %v4853_v5, %v4854_v42  ;;  %v4857_v36 = vsub.f32 %v8529_v50, %v8775_v44  ;;  %v4858_v55 = vsub.f32 %v8526_v6, %v8775_v44  ;;  %v4859_v15 = vsub.f32 %v8532_v53, %v8775_v44 }
 0x6f4   : > { %v4860_v33 = vsub.f32 %v8541_v3, %v8775_v44  ;;  %v4861_v59 = vsub.f32 %v8548_v56, %v8775_v44  ;;  %v4862_v13 = vsub.f32 %v8557_v62, %v8775_v44  ;;  %v4863_v37 = vsub.f32 %v8566_v41, %v8775_v44  ;;  %v9195_v3 = vld [vmem:[#allocation48_spill] sm:$0xff] }
 0x6f5   : > { %v4856_v4 = vmax.f32 %v4855_v40, 0.0  ;;  %v4864_v50 = vsub.f32 %v8573_v27, %v8775_v44  ;;  %v4865_v6 = vsub.f32 %v8582_v39, %v8775_v44  ;;  %v4866_v53 = vsub.f32 %v8591_v20, %v8775_v44 }
 0x6f6   : > { %v4867_v9 = vsub.f32 %v9195_v3, %v8775_v44  ;;  %v4868_v56 = vsub.f32 %v8605_v17, %v8775_v44  ;;  %v4869_v62 = vsub.f32 %v8612_v25, %v8775_v44  ;;  %v4870_v27 = vsub.f32 %v8623_v32, %v8775_v44  ;;  %v9198_v3 = vld [vmem:[#allocation14_spill] sm:$0xff] }
 0x6f7   : > { %v4889_v26 = vadd.f32 1e-05, %v4856_v4  ;;  %v4871_v39 = vsub.f32 %v8630_v45, %v8775_v44  ;;  %v4872_v20 = vsub.f32 %v8639_v0, %v8775_v44  ;;  %v4873_v49 = vsub.f32 %v8648_v48, %v8775_v44 }
 0x6f8   : > { %v4874_v17 = vsub.f32 %v8658_v57, %v8775_v44  ;;  %v4875_v25 = vsub.f32 %v8668_v12, %v8775_v44  ;;  %v4876_v32 = vsub.f32 %v8679_v58, %v8775_v44  ;;  %v4877_v45 = vsub.f32 %v8689_v24, %v8775_v44 }
 0x6f9   : > { %6111 = vrsqrt.f32 %v4889_v26  ;;  %vm4896_vm6 = vweird.f32 %v4889_v26  ;;  %v4878_v0 = vsub.f32 %v8698_v1, %v8775_v44  ;;  %v4879_v48 = vsub.f32 %v8706_v23, %v8775_v44 }
 0x6fa   : > { %v4880_v57 = vsub.f32 %v8714_v22, %v8775_v44  ;;  %v4881_v12 = vsub.f32 %v8720_v10, %v8775_v44  ;;  %v4882_v30 = vsub.f32 %v8726_v2, %v8775_v44 }
 0x6ff   : > { %v6112_v34 = vpop.eup %6111 }
 0x700   : > { %v4891_v54 = vmul.f32 %v6112_v34, %v4889_v26  ;;  %vm4897_vm5 = vweird.f32 %v6112_v34 }
 0x701   : > { %vm4898_vm7 = vmor %vm4896_vm6, %vm4897_vm5 }
 0x702   : > { %v4892_v60 = vmul.f32 %v6112_v34, %v4891_v54 }
 0x704   : > { %v4893_v43 = vmul.f32 0.5, %v4892_v60 }
 0x706   : > { %v4894_v41 = vsub.f32 1.5, %v4893_v43 }
 0x708   : > { %v4895_v21 = vmul.f32 %v6112_v34, %v4894_v41  ;;  %v9204_v41 = vld [vmem:[#allocation27_spill] sm:$0xff] }
 0x70a   : > { %v4899_v58 = vsel %vm4898_vm7, %v6112_v34, %v4895_v21 }
 0x70b   : > { %v4900_v28 = vmul.f32 %v4899_v58, %v4857_v36  ;;  %v4901_v24 = vmul.f32 %v4899_v58, %v4858_v55  ;;  %v4902_v16 = vmul.f32 %v4899_v58, %v4859_v15  ;;  %v4903_v11 = vmul.f32 %v4899_v58, %v4860_v33 }
 0x70c   : > { %v4904_v1 = vmul.f32 %v4899_v58, %v4861_v59  ;;  %v4905_v18 = vmul.f32 %v4899_v58, %v4862_v13  ;;  %v4906_v8 = vmul.f32 %v4899_v58, %v4863_v37  ;;  %v4907_v23 = vmul.f32 %v4899_v58, %v4864_v50 }
 0x70d   : > { %v4908_v61 = vmul.f32 %v4899_v58, %v4865_v6  ;;  %v4909_v5 = vmul.f32 %v4899_v58, %v4866_v53  ;;  %v4910_v42 = vmul.f32 %v4899_v58, %v4867_v9  ;;  %v4911_v22 = vmul.f32 %v4899_v58, %v4868_v56  ;;  %v9197_v6 = vld [vmem:[#allocation10_spill] sm:$0xff]  ;;  %v9199_v9 = vld [vmem:[#allocation15_spill] sm:$0xff] }
 0x70e   : > { %v4912_v40 = vmul.f32 %v4899_v58, %v4869_v62  ;;  %v4913_v4 = vmul.f32 %v4899_v58, %v4870_v27  ;;  %v4914_v10 = vmul.f32 %v4899_v58, %v4871_v39  ;;  %v4915_v26 = vmul.f32 %v4899_v58, %v4872_v20  ;;  %v9205_v39 = vld [vmem:[#allocation28_spill] sm:$0xff] }
 0x70f   : > { %v4916_v2 = vmul.f32 %v4899_v58, %v4873_v49  ;;  %v4917_v34 = vmul.f32 %v4899_v58, %v4874_v17  ;;  %v4918_v54 = vmul.f32 %v4899_v58, %v4875_v25  ;;  %v4919_v60 = vmul.f32 %v4899_v58, %v4876_v32  ;;  %v9206_v49 = vld [vmem:[#allocation32_spill] sm:$0xff]  ;;  %v9207_v25 = vld [vmem:[#allocation33_spill] sm:$0xff] }
 0x710   : > { %v4920_v36 = vmul.f32 %v4899_v58, %v4877_v45  ;;  %v4921_v55 = vmul.f32 %v4899_v58, %v4878_v0  ;;  %v4922_v15 = vmul.f32 %v4899_v58, %v4879_v48  ;;  %v4923_v33 = vmul.f32 %v4899_v58, %v4880_v57  ;;  %v9208_v32 = vld [vmem:[#allocation37_spill] sm:$0xff]  ;;  %v9209_v0 = vld [vmem:[#allocation38_spill] sm:$0xff]  ;;  %v9210_v57 = vld [vmem:[#allocation3_spill] sm:$0xff] }
 0x711   : > { %v4924_v59 = vmul.f32 %v4899_v58, %v4881_v12  ;;  %v4925_v13 = vmul.f32 %v4899_v58, %v4882_v30  ;;  %v4926_v37 = vmul.f32 %v4899_v58, %v4883_v14  ;;  %v4927_v43 = vmul.f32 %v4899_v58, %v4884_v7  ;;  %v9196_v7 = vld [vmem:[#allocation9_spill] sm:$0xff]  ;;  %v9211_v30 = vld [vmem:[#allocation4_spill] sm:$0xff] }
 0x712   : > { %v4928_v50 = vmul.f32 %v4899_v58, %v4885_v47  ;;  %v4929_v63 = vmul.f32 %v4899_v58, %v4886_v29  ;;  %v4930_v19 = vmul.f32 %v4899_v58, %v4887_v38  ;;  %v4931_v14 = vmul.f32 %v4899_v58, %v4888_v46  ;;  %v9200_v29 = vld [vmem:[#allocation18_spill] sm:$0xff]  ;;  %v9203_v46 = vld [vmem:[#allocation23_spill] sm:$0xff] }
 0x713   : > { %v4932_v51 = vadd.f32 %v4900_v28, %v9196_v7  ;;  %v4933_v53 = vadd.f32 %v4901_v24, %v9197_v6  ;;  %v4934_v47 = vadd.f32 %v4902_v16, %v9198_v3  ;;  %v4935_v31 = vadd.f32 %v4903_v11, %v9199_v9  ;;  %v9212_v28 = vld [vmem:[#allocation7_spill] sm:$0xff]  ;;  %v9213_v16 = vld [vmem:[#allocation8_spill] sm:$0xff] }
 0x714   : > { %v4936_v56 = vadd.f32 %v4904_v1, %v9200_v29  ;;  %v4937_v38 = vadd.f32 %v4905_v18, %v9201_v52  ;;  %v4938_v44 = vadd.f32 %v4906_v8, %v9202_v35  ;;  %v4939_v62 = vadd.f32 %v4907_v23, %v9203_v46  ;;  %v9214_v1 = vld [vmem:[#allocation12_spill] sm:$0xff]  ;;  %v9215_v8 = vld [vmem:[#allocation13_spill] sm:$0xff] }
 0x715   : > { %4964 = vst [vmem:[%s8853_s24] sm:$0xff] %v4932_v51  ;;  %v4940_v27 = vadd.f32 %v4908_v61, %v9204_v41  ;;  %v4941_v20 = vadd.f32 %v4909_v5, %v9205_v39  ;;  %v4942_v17 = vadd.f32 %v4910_v42, %v9206_v49  ;;  %v4943_v21 = vadd.f32 %v4911_v22, %v9207_v25  ;;  %v9216_v61 = vld [vmem:[#allocation16_spill] sm:$0xff]  ;;  %v9217_v42 = vld [vmem:[#allocation17_spill] sm:$0xff]  ;;  %v9224_v51 = vld [vmem:[#allocation35_spill] sm:$0xff] }
 0x716   : > { %4965 = vst [vmem:[%s8853_s24 + $0x8] sm:$0xff] %v4933_v53  ;;  %v4944_v45 = vadd.f32 %v4912_v40, %v9208_v32  ;;  %v4945_v48 = vadd.f32 %v4913_v4, %v9209_v0  ;;  %v4946_v12 = vadd.f32 %v4914_v10, %v9210_v57  ;;  %v4947_v58 = vadd.f32 %v4915_v26, %v9211_v30  ;;  %v9218_v40 = vld [vmem:[#allocation20_spill] sm:$0xff]  ;;  %v9219_v10 = vld [vmem:[#allocation21_spill] sm:$0xff] }
 0x717   : > { %4966 = vst [vmem:[%s8853_s24 + $0x10] sm:$0xff] %v4934_v47  ;;  %v4948_v24 = vadd.f32 %v4916_v2, %v9212_v28  ;;  %v4949_v11 = vadd.f32 %v4917_v34, %v9213_v16  ;;  %v4950_v18 = vadd.f32 %v4918_v54, %v9214_v1  ;;  %v4951_v23 = vadd.f32 %v4919_v60, %v9215_v8  ;;  %v9220_v2 = vld [vmem:[#allocation25_spill] sm:$0xff]  ;;  %v9221_v54 = vld [vmem:[#allocation26_spill] sm:$0xff]  ;;  %v9225_v6 = vld [vmem:[#allocation36_spill] sm:$0xff] }
 0x718   : > { %4967 = vst [vmem:[%s8853_s24 + $0x18] sm:$0xff] %v4935_v31  ;;  %v4952_v5 = vadd.f32 %v4920_v36, %v9216_v61  ;;  %v4953_v22 = vadd.f32 %v4921_v55, %v9217_v42  ;;  %v4954_v4 = vadd.f32 %v4922_v15, %v9218_v40  ;;  %v4955_v26 = vadd.f32 %v4923_v33, %v9219_v10  ;;  %v9222_v36 = vld [vmem:[#allocation30_spill] sm:$0xff]  ;;  %v9223_v15 = vld [vmem:[#allocation31_spill] sm:$0xff] }
 0x719   : > { %4968 = vst [vmem:[%s8853_s24 + $0x20] sm:$0xff] %v4936_v56  ;;  %v4956_v34 = vadd.f32 %v4924_v59, %v9220_v2  ;;  %v4957_v60 = vadd.f32 %v4925_v13, %v9221_v54  ;;  %v4958_v55 = vadd.f32 %v4926_v37, %v9222_v36  ;;  %v4959_v7 = vadd.f32 %v4927_v43, %v9223_v15  ;;  %v9226_v59 = vld [vmem:[#allocation61_spill] sm:$0xff]  ;;  %v9227_v47 = vld [vmem:[#allocation62_spill] sm:$0xff] }
 0x71a   : > { %4969 = vst [vmem:[%s8853_s24 + $0x28] sm:$0xff] %v4937_v38  ;;  %v4960_v33 = vadd.f32 %v4928_v50, %v9224_v51  ;;  %v4961_v53 = vadd.f32 %v4929_v63, %v9225_v6  ;;  %v4962_v3 = vadd.f32 %v4930_v19, %v9226_v59  ;;  %v4963_v13 = vadd.f32 %v4931_v14, %v9227_v47 }
 0x71b   : > { %4970 = vst [vmem:[%s8853_s24 + $0x30] sm:$0xff] %v4938_v44 }
 0x71c   : > { %4971 = vst [vmem:[%s8853_s24 + $0x38] sm:$0xff] %v4939_v62 }
 0x71d   : > { %4972 = vst [vmem:[%s8853_s24 + $0x40] sm:$0xff] %v4940_v27 }
 0x71e   : > { %4973 = vst [vmem:[%s8853_s24 + $0x48] sm:$0xff] %v4941_v20 }
 0x71f   : > { %4974 = vst [vmem:[%s8853_s24 + $0x50] sm:$0xff] %v4942_v17 }
 0x720   : > { %4975 = vst [vmem:[%s8853_s24 + $0x58] sm:$0xff] %v4943_v21 }
 0x721   : > { %4976 = vst [vmem:[%s8853_s24 + $0x60] sm:$0xff] %v4944_v45 }
 0x722   : > { %4977 = vst [vmem:[%s8853_s24 + $0x68] sm:$0xff] %v4945_v48 }
 0x723   : > { %4978 = vst [vmem:[%s8853_s24 + $0x70] sm:$0xff] %v4946_v12 }
 0x724   : > { %4979 = vst [vmem:[%s8853_s24 + $0x78] sm:$0xff] %v4947_v58 }
 0x725   : > { %4980 = vst [vmem:[%s8853_s24 + $0x80] sm:$0xff] %v4948_v24 }
 0x726   : > { %4981 = vst [vmem:[%s8853_s24 + $0x88] sm:$0xff] %v4949_v11 }
 0x727   : > { %4982 = vst [vmem:[%s8853_s24 + $0x90] sm:$0xff] %v4950_v18 }
 0x728   : > { %4983 = vst [vmem:[%s8853_s24 + $0x98] sm:$0xff] %v4951_v23 }
 0x729   : > { %4984 = vst [vmem:[%s8853_s24 + $0xa0] sm:$0xff] %v4952_v5 }
 0x72a   : > { %4985 = vst [vmem:[%s8853_s24 + $0xa8] sm:$0xff] %v4953_v22 }
 0x72b   : > { %4986 = vst [vmem:[%s8853_s24 + $0xb0] sm:$0xff] %v4954_v4 }
 0x72c   : > { %4987 = vst [vmem:[%s8853_s24 + $0xb8] sm:$0xff] %v4955_v26 }
 0x72d   : > { %4988 = vst [vmem:[%s8853_s24 + $0xc0] sm:$0xff] %v4956_v34 }
 0x72e   : > { %4989 = vst [vmem:[%s8853_s24 + $0xc8] sm:$0xff] %v4957_v60 }
 0x72f   : > { %4990 = vst [vmem:[%s8853_s24 + $0xd0] sm:$0xff] %v4958_v55 }
 0x730   : > { %4991 = vst [vmem:[%s8853_s24 + $0xd8] sm:$0xff] %v4959_v7 }
 0x731   : > { %4992 = vst [vmem:[%s8853_s24 + $0xe0] sm:$0xff] %v4960_v33 }
 0x732   : > { %4993 = vst [vmem:[%s8853_s24 + $0xe8] sm:$0xff] %v4961_v53 }
 0x733   : > { %4994 = vst [vmem:[%s8853_s24 + $0xf0] sm:$0xff] %v4962_v3 }
 0x734   : > { %4995 = vst [vmem:[%s8853_s24 + $0xf8] sm:$0xff] %v4963_v13 }
 0x735 PF: > { %s15_s18 = sadd.s32 1, %s6126_s18  }
 0x736   : > { %p12_p4 = scmp.ge.s32.totalorder %s15_s18, 4  }
 0x738   :  { %14 = sbr.rel (!%p12_p4) target bundleno = 1 (0x1), region = 89 }

</bundles_post_ra>
